<compile_context>
chip_gen: v5e
topology: v5e:2x2
jax: 0.10.0
libtpu: 0.0.40
codegen_flags: <defaults>
</compile_context>

<pallas_src>
import functools
import math

import jax
import jax.numpy as jnp
import numpy as np
from jax.experimental import pallas as pl
from jax.experimental.pallas import tpu as pltpu

_EPS = 1e-5  # torch LayerNorm default


# ---------------------------------------------------------------------------
# Fused encoder+decoder megakernel
# ---------------------------------------------------------------------------


def _transformer_kernel(src_ref, tgt_ref, *refs, d_model):
    out_ref = refs[-1]
    (e_qkv_w, e_qkv_b, e_out_w, e_out_b, e_n1_w, e_n1_b,
     e_ff1_w, e_ff1_b, e_ff2_w, e_ff2_b, e_n2_w, e_n2_b, e_fn_w, e_fn_b,
     d_sa_qkv_w, d_sa_qkv_b, d_sa_out_w, d_sa_out_b, d_n1_w, d_n1_b,
     d_ca_q_w, d_ca_q_b, d_ca_kv_w, d_ca_kv_b, d_ca_out_w, d_ca_out_b,
     d_n2_w, d_n2_b, d_ff1_w, d_ff1_b, d_ff2_w, d_ff2_b,
     d_n3_w, d_n3_b, d_fn_w, d_fn_b) = refs[:-1]

    D = d_model
    bpg, Ss, _ = src_ref.shape          # batches-per-grid-step, src seq len
    _, St, _ = tgt_ref.shape            # tgt seq len

    def mm(x, w_ref, b_ref):
        # bf16 MXU operands, f32 accumulation, f32 bias add.
        return jnp.dot(x.astype(w_ref.dtype), w_ref[...],
                       preferred_element_type=jnp.float32) + b_ref[...]

    def ln(x, w_ref, b_ref):
        mu = jnp.mean(x, axis=-1, keepdims=True)
        d = x - mu
        var = jnp.mean(d * d, axis=-1, keepdims=True)
        return d * jax.lax.rsqrt(var + _EPS) * w_ref[...] + b_ref[...]

    def attn(q, k, v, sq, sk):
        # Per-batch attention on the reshaped slab (block-diagonal by
        # construction).  1/sqrt(D) is already folded into the Q projection.
        qb = q.reshape(bpg, sq, D).astype(jnp.bfloat16)
        kb = k.reshape(bpg, sk, D).astype(jnp.bfloat16)
        vb = v.reshape(bpg, sk, D).astype(jnp.bfloat16)
        s = jnp.einsum("bqd,bkd->bqk", qb, kb,
                       preferred_element_type=jnp.float32)
        m = jnp.max(s, axis=-1, keepdims=True)
        p = jnp.exp(s - m)
        p = p * pl.reciprocal(jnp.sum(p, axis=-1, keepdims=True), approx=True)
        o = jnp.einsum("bqk,bkd->bqd", p.astype(jnp.bfloat16), vb,
                       preferred_element_type=jnp.float32)
        return o.reshape(bpg * sq, D)

    # ------------------- encoder layer + final encoder LN -------------------
    x = src_ref[...].reshape(bpg * Ss, D)                     # (M, D) slab
    qkv = mm(x, e_qkv_w, e_qkv_b)                             # (M, 3D)
    sa = attn(qkv[:, :D], qkv[:, D:2 * D], qkv[:, 2 * D:], Ss, Ss)
    x = ln(x + mm(sa, e_out_w, e_out_b), e_n1_w, e_n1_b)
    h = jnp.maximum(mm(x, e_ff1_w, e_ff1_b), 0.0)             # FFN, ReLU
    x = ln(x + mm(h, e_ff2_w, e_ff2_b), e_n2_w, e_n2_b)
    mem = ln(x, e_fn_w, e_fn_b)          # encoder memory: stays in VMEM

    # ------------------- decoder layer + final decoder LN -------------------
    y = tgt_ref[...].reshape(bpg * St, D)
    qkv = mm(y, d_sa_qkv_w, d_sa_qkv_b)                       # self-attn
    sa = attn(qkv[:, :D], qkv[:, D:2 * D], qkv[:, 2 * D:], St, St)
    y = ln(y + mm(sa, d_sa_out_w, d_sa_out_b), d_n1_w, d_n1_b)

    q = mm(y, d_ca_q_w, d_ca_q_b)                             # cross-attn
    kv = mm(mem, d_ca_kv_w, d_ca_kv_b)                        # fused K/V
    ca = attn(q, kv[:, :D], kv[:, D:], St, Ss)
    y = ln(y + mm(ca, d_ca_out_w, d_ca_out_b), d_n2_w, d_n2_b)

    h = jnp.maximum(mm(y, d_ff1_w, d_ff1_b), 0.0)             # FFN, ReLU
    y = ln(y + mm(h, d_ff2_w, d_ff2_b), d_n3_w, d_n3_b)

    out_ref[...] = ln(y, d_fn_w, d_fn_b).reshape(bpg, St, D)  # final norm


# ---------------------------------------------------------------------------
# pallas_call wrapper
# ---------------------------------------------------------------------------

_ENC_ORDER = ("qkv_w", "qkv_b", "out_w", "out_b", "n1_w", "n1_b",
              "ff1_w", "ff1_b", "ff2_w", "ff2_b", "n2_w", "n2_b",
              "fn_w", "fn_b")
_DEC_ORDER = ("sa_qkv_w", "sa_qkv_b", "sa_out_w", "sa_out_b", "n1_w", "n1_b",
              "ca_q_w", "ca_q_b", "ca_kv_w", "ca_kv_b", "ca_out_w", "ca_out_b",
              "n2_w", "n2_b", "ff1_w", "ff1_b", "ff2_w", "ff2_b",
              "n3_w", "n3_b", "fn_w", "fn_b")


def _full_spec(arr):
    nd = arr.ndim
    return pl.BlockSpec(arr.shape, lambda g, _nd=nd: (0,) * _nd)


def transformer_forward(source_seq, target_seq, prepared, *, num_slabs=None):
    B, Ss, D = source_seq.shape
    _, St, _ = target_seq.shape
    assert D % 128 == 0, "keep d_model a multiple of 128 (copy-free QKV slices)"
    if num_slabs is None:
        # 2 parallel slabs keeps both v7x TensorCores busy; harmless on 1-TC.
        num_slabs = 2 if (B % 2 == 0 and B >= 2) else 1
    assert B % num_slabs == 0
    bpg = B // num_slabs

    weights = ([prepared["enc"][k] for k in _ENC_ORDER]
               + [prepared["dec"][k] for k in _DEC_ORDER])

    return pl.pallas_call(
        functools.partial(_transformer_kernel, d_model=D),
        out_shape=jax.ShapeDtypeStruct((B, St, D), jnp.float32),
        grid=(num_slabs,),
        in_specs=[pl.BlockSpec((bpg, Ss, D), lambda g: (g, 0, 0)),
                  pl.BlockSpec((bpg, St, D), lambda g: (g, 0, 0))]
                 + [_full_spec(w) for w in weights],
        out_specs=pl.BlockSpec((bpg, St, D), lambda g: (g, 0, 0)),
        compiler_params=pltpu.CompilerParams(
            dimension_semantics=("parallel",),
            vmem_limit_bytes=32 * 1024 * 1024),
    )(source_seq, target_seq, *weights)


# ---------------------------------------------------------------------------
# Parameter prep (one-time, outside jit):
#   torch Linear weight (out,in) -> (in,out), bf16 for MXU operands,
#   biases/LN params -> (1,N) f32, 1/sqrt(D) folded into Q rows.
# ---------------------------------------------------------------------------


def prepare_params(params, D):
    scale = 1.0 / math.sqrt(D)
    enc, dec = params["enc"], params["dec"]

    def row(v):
        return jnp.asarray(v, jnp.float32).reshape(1, -1)

    def mat(v):
        return jnp.asarray(v, jnp.float32).T.astype(jnp.bfloat16)

    def qkv_mat(w):  # (3D, D) torch layout [q;k;v]; fold scale into Q rows
        w = jnp.asarray(w, jnp.float32)
        return jnp.concatenate([w[:D] * scale, w[D:]], axis=0).T.astype(jnp.bfloat16)

    def qkv_bias(b):
        b = jnp.asarray(b, jnp.float32)
        return jnp.concatenate([b[:D] * scale, b[D:]]).reshape(1, -1)

    ep = {
        "qkv_w": qkv_mat(enc["sa_in_w"]), "qkv_b": qkv_bias(enc["sa_in_b"]),
        "out_w": mat(enc["sa_out_w"]), "out_b": row(enc["sa_out_b"]),
        "n1_w": row(enc["n1_w"]), "n1_b": row(enc["n1_b"]),
        "ff1_w": mat(enc["ff1_w"]), "ff1_b": row(enc["ff1_b"]),
        "ff2_w": mat(enc["ff2_w"]), "ff2_b": row(enc["ff2_b"]),
        "n2_w": row(enc["n2_w"]), "n2_b": row(enc["n2_b"]),
        "fn_w": row(params["enc_norm_w"]), "fn_b": row(params["enc_norm_b"]),
    }
    dp = {
        "sa_qkv_w": qkv_mat(dec["sa_in_w"]), "sa_qkv_b": qkv_bias(dec["sa_in_b"]),
        "sa_out_w": mat(dec["sa_out_w"]), "sa_out_b": row(dec["sa_out_b"]),
        "n1_w": row(dec["n1_w"]), "n1_b": row(dec["n1_b"]),
        "ca_q_w": (jnp.asarray(dec["ca_in_w"][:D], jnp.float32) * scale
                   ).T.astype(jnp.bfloat16),
        "ca_q_b": row(jnp.asarray(dec["ca_in_b"][:D], jnp.float32) * scale),
        "ca_kv_w": mat(dec["ca_in_w"][D:]),
        "ca_kv_b": row(dec["ca_in_b"][D:]),
        "ca_out_w": mat(dec["ca_out_w"]), "ca_out_b": row(dec["ca_out_b"]),
        "n2_w": row(dec["n2_w"]), "n2_b": row(dec["n2_b"]),
        "ff1_w": mat(dec["ff1_w"]), "ff1_b": row(dec["ff1_b"]),
        "ff2_w": mat(dec["ff2_w"]), "ff2_b": row(dec["ff2_b"]),
        "n3_w": row(dec["n3_w"]), "n3_b": row(dec["n3_b"]),
        "fn_w": row(params["dec_norm_w"]), "fn_b": row(params["dec_norm_b"]),
    }
    return {"enc": ep, "dec": dp}


# ---------------------------------------------------------------------------
# Pure-JAX f32 reference (torch-layout params, torch semantics)
# ---------------------------------------------------------------------------


def _ref_ln(x, w, b):
    mu = x.mean(-1, keepdims=True)
    var = ((x - mu) ** 2).mean(-1, keepdims=True)
    return (x - mu) / jnp.sqrt(var + _EPS) * w + b


def _ref_mha(xq, xkv, in_w, in_b, out_w, out_b, D):
    q = xq @ in_w[:D].T + in_b[:D]
    k = xkv @ in_w[D:2 * D].T + in_b[D:2 * D]
    v = xkv @ in_w[2 * D:].T + in_b[2 * D:]
    s = jnp.einsum("bqd,bkd->bqk", q, k) / math.sqrt(D)
    p = jax.nn.softmax(s, axis=-1)
    return jnp.einsum("bqk,bkd->bqd", p, v) @ out_w.T + out_b


def _ref_ffn(x, p):
    return jnp.maximum(x @ p["ff1_w"].T + p["ff1_b"], 0.0) @ p["ff2_w"].T + p["ff2_b"]


def reference_forward(src, tgt, params, D):
    p = params["enc"]
    x = _ref_ln(src + _ref_mha(src, src, p["sa_in_w"], p["sa_in_b"],
                               p["sa_out_w"], p["sa_out_b"], D), p["n1_w"], p["n1_b"])
    x = _ref_ln(x + _ref_ffn(x, p), p["n2_w"], p["n2_b"])
    mem = _ref_ln(x, params["enc_norm_w"], params["enc_norm_b"])
    p = params["dec"]
    y = _ref_ln(tgt + _ref_mha(tgt, tgt, p["sa_in_w"], p["sa_in_b"],
                               p["sa_out_w"], p["sa_out_b"], D), p["n1_w"], p["n1_b"])
    y = _ref_ln(y + _ref_mha(y, mem, p["ca_in_w"], p["ca_in_b"],
                             p["ca_out_w"], p["ca_out_b"], D), p["n2_w"], p["n2_b"])
    y = _ref_ln(y + _ref_ffn(y, p), p["n3_w"], p["n3_b"])
    return _ref_ln(y, params["dec_norm_w"], params["dec_norm_b"])


# ---------------------------------------------------------------------------
# Deterministic parameter init (shapes follow torch.nn.Transformer layers)
# ---------------------------------------------------------------------------


def init_params(key, D, FF):
    keys = iter(jax.random.split(key, 32))

    def nrm(shape, scale=0.05):
        return scale * jax.random.normal(next(keys), shape, dtype=jnp.float32)

    def attn_block(prefix):
        return {
            f"{prefix}_in_w": nrm((3 * D, D)),
            f"{prefix}_in_b": nrm((3 * D,)),
            f"{prefix}_out_w": nrm((D, D)),
            f"{prefix}_out_b": nrm((D,)),
        }

    def ffn_block():
        return {
            "ff1_w": nrm((FF, D)), "ff1_b": nrm((FF,)),
            "ff2_w": nrm((D, FF)), "ff2_b": nrm((D,)),
        }

    ones, zeros = jnp.ones((D,), jnp.float32), jnp.zeros((D,), jnp.float32)
    enc = {**attn_block("sa"), **ffn_block(),
           "n1_w": ones, "n1_b": zeros, "n2_w": ones, "n2_b": zeros}
    dec = {**attn_block("sa"), **attn_block("ca"), **ffn_block(),
           "n1_w": ones, "n1_b": zeros, "n2_w": ones, "n2_b": zeros,
           "n3_w": ones, "n3_b": zeros}
    return {"enc": enc, "dec": dec,
            "enc_norm_w": ones, "enc_norm_b": zeros,
            "dec_norm_w": ones, "dec_norm_b": zeros}


# ---------------------------------------------------------------------------
# Main
# ---------------------------------------------------------------------------

if __name__ == "__main__":
    B, S_SRC, S_TGT = 4, 8, 8
    D_MODEL, D_FF = 128, 256  # small demo sizes (module default d_model=512)

    root = jax.random.PRNGKey(0)
    k_src, k_tgt, k_par = jax.random.split(root, 3)
    source_seq = jax.random.normal(k_src, (B, S_SRC, D_MODEL), dtype=jnp.float32)
    target_seq = jax.random.normal(k_tgt, (B, S_TGT, D_MODEL), dtype=jnp.float32)
    params = init_params(k_par, D_MODEL, D_FF)

    # weight transpose / bf16 cast / scale folding done exactly once
    prepared = prepare_params(params, D_MODEL)

    fwd = jax.jit(transformer_forward)
    out = jax.block_until_ready(fwd(source_seq, target_seq, prepared))

    ref = reference_forward(source_seq, target_seq, params, D_MODEL)
    assert out.shape == (B, S_TGT, D_MODEL)
    assert np.all(np.isfinite(np.asarray(out)))
    # bf16 MXU operands + approx-reciprocal softmax vs. an f32 reference:
    # tolerance relaxed accordingly (review note).
    np.testing.assert_allclose(np.asarray(out), np.asarray(ref),
                               atol=3e-2, rtol=3e-2)

    print("KERNEL_OK")
</pallas_src>

<mosaic_0001>
module attributes {stable_mosaic.version = 11 : i64} {
  func.func @_transformer_kernel(%arg0: i32, %arg1: memref<2x8x128xf32, #tpu.memory_space<vmem>>, %arg2: memref<2x8x128xf32, #tpu.memory_space<vmem>>, %arg3: memref<128x384xbf16, #tpu.memory_space<vmem>>, %arg4: memref<1x384xf32, #tpu.memory_space<vmem>>, %arg5: memref<128x128xbf16, #tpu.memory_space<vmem>>, %arg6: memref<1x128xf32, #tpu.memory_space<vmem>>, %arg7: memref<1x128xf32, #tpu.memory_space<vmem>>, %arg8: memref<1x128xf32, #tpu.memory_space<vmem>>, %arg9: memref<128x256xbf16, #tpu.memory_space<vmem>>, %arg10: memref<1x256xf32, #tpu.memory_space<vmem>>, %arg11: memref<256x128xbf16, #tpu.memory_space<vmem>>, %arg12: memref<1x128xf32, #tpu.memory_space<vmem>>, %arg13: memref<1x128xf32, #tpu.memory_space<vmem>>, %arg14: memref<1x128xf32, #tpu.memory_space<vmem>>, %arg15: memref<1x128xf32, #tpu.memory_space<vmem>>, %arg16: memref<1x128xf32, #tpu.memory_space<vmem>>, %arg17: memref<128x384xbf16, #tpu.memory_space<vmem>>, %arg18: memref<1x384xf32, #tpu.memory_space<vmem>>, %arg19: memref<128x128xbf16, #tpu.memory_space<vmem>>, %arg20: memref<1x128xf32, #tpu.memory_space<vmem>>, %arg21: memref<1x128xf32, #tpu.memory_space<vmem>>, %arg22: memref<1x128xf32, #tpu.memory_space<vmem>>, %arg23: memref<128x128xbf16, #tpu.memory_space<vmem>>, %arg24: memref<1x128xf32, #tpu.memory_space<vmem>>, %arg25: memref<128x256xbf16, #tpu.memory_space<vmem>>, %arg26: memref<1x256xf32, #tpu.memory_space<vmem>>, %arg27: memref<128x128xbf16, #tpu.memory_space<vmem>>, %arg28: memref<1x128xf32, #tpu.memory_space<vmem>>, %arg29: memref<1x128xf32, #tpu.memory_space<vmem>>, %arg30: memref<1x128xf32, #tpu.memory_space<vmem>>, %arg31: memref<128x256xbf16, #tpu.memory_space<vmem>>, %arg32: memref<1x256xf32, #tpu.memory_space<vmem>>, %arg33: memref<256x128xbf16, #tpu.memory_space<vmem>>, %arg34: memref<1x128xf32, #tpu.memory_space<vmem>>, %arg35: memref<1x128xf32, #tpu.memory_space<vmem>>, %arg36: memref<1x128xf32, #tpu.memory_space<vmem>>, %arg37: memref<1x128xf32, #tpu.memory_space<vmem>>, %arg38: memref<1x128xf32, #tpu.memory_space<vmem>>, %arg39: memref<2x8x128xf32, #tpu.memory_space<vmem>>) attributes {dimension_semantics = [#tpu.dimension_semantics<parallel>], iteration_bounds = array<i64: 2>, scalar_prefetch = 0 : i64, scratch_operands = 0 : i64, tpu.core_type = #tpu.core_type<tc>, window_params = [{transform_indices = @transform_0, window_bounds = array<i64: 2, 8, 128>}, {transform_indices = @transform_1, window_bounds = array<i64: 2, 8, 128>}, {pipeline_mode = #tpu.pipeline_mode<synchronous>, transform_indices = @transform_2, window_bounds = array<i64: 128, 384>}, {pipeline_mode = #tpu.pipeline_mode<synchronous>, transform_indices = @transform_3, window_bounds = array<i64: 1, 384>}, {pipeline_mode = #tpu.pipeline_mode<synchronous>, transform_indices = @transform_4, window_bounds = array<i64: 128, 128>}, {pipeline_mode = #tpu.pipeline_mode<synchronous>, transform_indices = @transform_5, window_bounds = array<i64: 1, 128>}, {pipeline_mode = #tpu.pipeline_mode<synchronous>, transform_indices = @transform_6, window_bounds = array<i64: 1, 128>}, {pipeline_mode = #tpu.pipeline_mode<synchronous>, transform_indices = @transform_7, window_bounds = array<i64: 1, 128>}, {pipeline_mode = #tpu.pipeline_mode<synchronous>, transform_indices = @transform_8, window_bounds = array<i64: 128, 256>}, {pipeline_mode = #tpu.pipeline_mode<synchronous>, transform_indices = @transform_9, window_bounds = array<i64: 1, 256>}, {pipeline_mode = #tpu.pipeline_mode<synchronous>, transform_indices = @transform_10, window_bounds = array<i64: 256, 128>}, {pipeline_mode = #tpu.pipeline_mode<synchronous>, transform_indices = @transform_11, window_bounds = array<i64: 1, 128>}, {pipeline_mode = #tpu.pipeline_mode<synchronous>, transform_indices = @transform_12, window_bounds = array<i64: 1, 128>}, {pipeline_mode = #tpu.pipeline_mode<synchronous>, transform_indices = @transform_13, window_bounds = array<i64: 1, 128>}, {pipeline_mode = #tpu.pipeline_mode<synchronous>, transform_indices = @transform_14, window_bounds = array<i64: 1, 128>}, {pipeline_mode = #tpu.pipeline_mode<synchronous>, transform_indices = @transform_15, window_bounds = array<i64: 1, 128>}, {pipeline_mode = #tpu.pipeline_mode<synchronous>, transform_indices = @transform_16, window_bounds = array<i64: 128, 384>}, {pipeline_mode = #tpu.pipeline_mode<synchronous>, transform_indices = @transform_17, window_bounds = array<i64: 1, 384>}, {pipeline_mode = #tpu.pipeline_mode<synchronous>, transform_indices = @transform_18, window_bounds = array<i64: 128, 128>}, {pipeline_mode = #tpu.pipeline_mode<synchronous>, transform_indices = @transform_19, window_bounds = array<i64: 1, 128>}, {pipeline_mode = #tpu.pipeline_mode<synchronous>, transform_indices = @transform_20, window_bounds = array<i64: 1, 128>}, {pipeline_mode = #tpu.pipeline_mode<synchronous>, transform_indices = @transform_21, window_bounds = array<i64: 1, 128>}, {pipeline_mode = #tpu.pipeline_mode<synchronous>, transform_indices = @transform_22, window_bounds = array<i64: 128, 128>}, {pipeline_mode = #tpu.pipeline_mode<synchronous>, transform_indices = @transform_23, window_bounds = array<i64: 1, 128>}, {pipeline_mode = #tpu.pipeline_mode<synchronous>, transform_indices = @transform_24, window_bounds = array<i64: 128, 256>}, {pipeline_mode = #tpu.pipeline_mode<synchronous>, transform_indices = @transform_25, window_bounds = array<i64: 1, 256>}, {pipeline_mode = #tpu.pipeline_mode<synchronous>, transform_indices = @transform_26, window_bounds = array<i64: 128, 128>}, {pipeline_mode = #tpu.pipeline_mode<synchronous>, transform_indices = @transform_27, window_bounds = array<i64: 1, 128>}, {pipeline_mode = #tpu.pipeline_mode<synchronous>, transform_indices = @transform_28, window_bounds = array<i64: 1, 128>}, {pipeline_mode = #tpu.pipeline_mode<synchronous>, transform_indices = @transform_29, window_bounds = array<i64: 1, 128>}, {pipeline_mode = #tpu.pipeline_mode<synchronous>, transform_indices = @transform_30, window_bounds = array<i64: 128, 256>}, {pipeline_mode = #tpu.pipeline_mode<synchronous>, transform_indices = @transform_31, window_bounds = array<i64: 1, 256>}, {pipeline_mode = #tpu.pipeline_mode<synchronous>, transform_indices = @transform_32, window_bounds = array<i64: 256, 128>}, {pipeline_mode = #tpu.pipeline_mode<synchronous>, transform_indices = @transform_33, window_bounds = array<i64: 1, 128>}, {pipeline_mode = #tpu.pipeline_mode<synchronous>, transform_indices = @transform_34, window_bounds = array<i64: 1, 128>}, {pipeline_mode = #tpu.pipeline_mode<synchronous>, transform_indices = @transform_35, window_bounds = array<i64: 1, 128>}, {pipeline_mode = #tpu.pipeline_mode<synchronous>, transform_indices = @transform_36, window_bounds = array<i64: 1, 128>}, {pipeline_mode = #tpu.pipeline_mode<synchronous>, transform_indices = @transform_37, window_bounds = array<i64: 1, 128>}, {transform_indices = @transform_38, window_bounds = array<i64: 2, 8, 128>}]} {
    %c0 = arith.constant 0 : index
    %c0_0 = arith.constant 0 : index
    %c0_1 = arith.constant 0 : index
    %0 = vector.load %arg1[%c0, %c0_0, %c0_1] : memref<2x8x128xf32, #tpu.memory_space<vmem>>, vector<2x8x128xf32>
    %1 = vector.shape_cast %0 : vector<2x8x128xf32> to vector<16x128xf32>
    %2 = arith.truncf %1 : vector<16x128xf32> to vector<16x128xbf16>
    %c0_2 = arith.constant 0 : index
    %c0_3 = arith.constant 0 : index
    %3 = vector.load %arg3[%c0_2, %c0_3] : memref<128x384xbf16, #tpu.memory_space<vmem>>, vector<128x384xbf16>
    %cst = arith.constant dense<0.000000e+00> : vector<16x384xf32>
    %4 = tpu.matmul %2, %3, %cst {dimension_numbers = #tpu.dot_dimension_numbers<[1], [0], [0], [1], [0, 0, 1, 1], [], []>} : vector<16x128xbf16>, vector<128x384xbf16>, vector<16x384xf32> -> vector<16x384xf32>
    %c0_4 = arith.constant 0 : index
    %c0_5 = arith.constant 0 : index
    %5 = vector.load %arg4[%c0_4, %c0_5] : memref<1x384xf32, #tpu.memory_space<vmem>>, vector<1x384xf32>
    %6 = vector.broadcast %5 : vector<1x384xf32> to vector<16x384xf32>
    %7 = arith.addf %4, %6 : vector<16x384xf32>
    %8 = vector.extract_strided_slice %7 {offsets = [0, 0], sizes = [16, 128], strides = [1, 1]} : vector<16x384xf32> to vector<16x128xf32>
    %9 = vector.extract_strided_slice %7 {offsets = [0, 128], sizes = [16, 128], strides = [1, 1]} : vector<16x384xf32> to vector<16x128xf32>
    %10 = vector.extract_strided_slice %7 {offsets = [0, 256], sizes = [16, 128], strides = [1, 1]} : vector<16x384xf32> to vector<16x128xf32>
    %11 = vector.shape_cast %8 : vector<16x128xf32> to vector<2x8x128xf32>
    %12 = arith.truncf %11 : vector<2x8x128xf32> to vector<2x8x128xbf16>
    %13 = vector.shape_cast %9 : vector<16x128xf32> to vector<2x8x128xf32>
    %14 = arith.truncf %13 : vector<2x8x128xf32> to vector<2x8x128xbf16>
    %15 = vector.shape_cast %10 : vector<16x128xf32> to vector<2x8x128xf32>
    %16 = arith.truncf %15 : vector<2x8x128xf32> to vector<2x8x128xbf16>
    "tpu.trace_start"() <{level = 10 : i32, message = "bqd,bkd->bqk"}> : () -> ()
    %cst_6 = arith.constant dense<0.000000e+00> : vector<2x8x8xf32>
    %17 = tpu.matmul %12, %14, %cst_6 {dimension_numbers = #tpu.dot_dimension_numbers<[2], [2], [1], [1], [0, 0, 0, 1, 1, 1], [0], [0]>} : vector<2x8x128xbf16>, vector<2x8x128xbf16>, vector<2x8x8xf32> -> vector<2x8x8xf32>
    "tpu.trace_stop"() : () -> ()
    %cst_7 = arith.constant dense<0xFF800000> : vector<2x8xf32>
    %18 = vector.multi_reduction <maximumf>, %17, %cst_7 [2] : vector<2x8x8xf32> to vector<2x8xf32>
    %19 = vector.shape_cast %18 : vector<2x8xf32> to vector<2x8x1xf32>
    %20 = vector.broadcast %19 : vector<2x8x1xf32> to vector<2x8x8xf32>
    %21 = arith.subf %17, %20 : vector<2x8x8xf32>
    %22 = math.exp %21 : vector<2x8x8xf32>
    %cst_8 = arith.constant dense<0.000000e+00> : vector<2x8xf32>
    %23 = vector.multi_reduction <add>, %22, %cst_8 [2] : vector<2x8x8xf32> to vector<2x8xf32>
    %24 = vector.shape_cast %23 : vector<2x8xf32> to vector<2x8x1xf32>
    %25 = tpu.reciprocal %24 {approx = true} : vector<2x8x1xf32> -> vector<2x8x1xf32>
    %26 = vector.broadcast %25 : vector<2x8x1xf32> to vector<2x8x8xf32>
    %27 = arith.mulf %22, %26 : vector<2x8x8xf32>
    %28 = arith.truncf %27 : vector<2x8x8xf32> to vector<2x8x8xbf16>
    "tpu.trace_start"() <{level = 10 : i32, message = "bqk,bkd->bqd"}> : () -> ()
    %cst_9 = arith.constant dense<0.000000e+00> : vector<2x8x128xf32>
    %29 = tpu.matmul %28, %16, %cst_9 {dimension_numbers = #tpu.dot_dimension_numbers<[2], [1], [1], [2], [0, 0, 0, 1, 1, 2], [0], [0]>} : vector<2x8x8xbf16>, vector<2x8x128xbf16>, vector<2x8x128xf32> -> vector<2x8x128xf32>
    "tpu.trace_stop"() : () -> ()
    %30 = vector.shape_cast %29 : vector<2x8x128xf32> to vector<16x128xf32>
    %31 = arith.truncf %30 : vector<16x128xf32> to vector<16x128xbf16>
    %c0_10 = arith.constant 0 : index
    %c0_11 = arith.constant 0 : index
    %32 = vector.load %arg5[%c0_10, %c0_11] : memref<128x128xbf16, #tpu.memory_space<vmem>>, vector<128x128xbf16>
    %cst_12 = arith.constant dense<0.000000e+00> : vector<16x128xf32>
    %33 = tpu.matmul %31, %32, %cst_12 {dimension_numbers = #tpu.dot_dimension_numbers<[1], [0], [0], [1], [0, 0, 1, 1], [], []>} : vector<16x128xbf16>, vector<128x128xbf16>, vector<16x128xf32> -> vector<16x128xf32>
    %c0_13 = arith.constant 0 : index
    %c0_14 = arith.constant 0 : index
    %34 = vector.load %arg6[%c0_13, %c0_14] : memref<1x128xf32, #tpu.memory_space<vmem>>, vector<1x128xf32>
    %35 = vector.broadcast %34 : vector<1x128xf32> to vector<16x128xf32>
    %36 = arith.addf %33, %35 : vector<16x128xf32>
    %37 = arith.addf %1, %36 : vector<16x128xf32>
    %cst_15 = arith.constant dense<0.000000e+00> : vector<16xf32>
    %38 = vector.multi_reduction <add>, %37, %cst_15 [1] : vector<16x128xf32> to vector<16xf32>
    %39 = vector.shape_cast %38 : vector<16xf32> to vector<16x1xf32>
    %cst_16 = arith.constant 1.280000e+02 : f32
    %40 = vector.broadcast %cst_16 : f32 to vector<16x1xf32>
    %41 = arith.divf %39, %40 : vector<16x1xf32>
    %42 = vector.broadcast %41 : vector<16x1xf32> to vector<16x128xf32>
    %43 = arith.subf %37, %42 : vector<16x128xf32>
    %44 = arith.mulf %43, %43 : vector<16x128xf32>
    %cst_17 = arith.constant dense<0.000000e+00> : vector<16xf32>
    %45 = vector.multi_reduction <add>, %44, %cst_17 [1] : vector<16x128xf32> to vector<16xf32>
    %46 = vector.shape_cast %45 : vector<16xf32> to vector<16x1xf32>
    %cst_18 = arith.constant 1.280000e+02 : f32
    %47 = vector.broadcast %cst_18 : f32 to vector<16x1xf32>
    %48 = arith.divf %46, %47 : vector<16x1xf32>
    %cst_19 = arith.constant 9.99999974E-6 : f32
    %49 = vector.broadcast %cst_19 : f32 to vector<16x1xf32>
    %50 = arith.addf %48, %49 : vector<16x1xf32>
    %51 = math.rsqrt %50 : vector<16x1xf32>
    %52 = vector.broadcast %51 : vector<16x1xf32> to vector<16x128xf32>
    %53 = arith.mulf %43, %52 : vector<16x128xf32>
    %c0_20 = arith.constant 0 : index
    %c0_21 = arith.constant 0 : index
    %54 = vector.load %arg7[%c0_20, %c0_21] : memref<1x128xf32, #tpu.memory_space<vmem>>, vector<1x128xf32>
    %55 = vector.broadcast %54 : vector<1x128xf32> to vector<16x128xf32>
    %56 = arith.mulf %53, %55 : vector<16x128xf32>
    %c0_22 = arith.constant 0 : index
    %c0_23 = arith.constant 0 : index
    %57 = vector.load %arg8[%c0_22, %c0_23] : memref<1x128xf32, #tpu.memory_space<vmem>>, vector<1x128xf32>
    %58 = vector.broadcast %57 : vector<1x128xf32> to vector<16x128xf32>
    %59 = arith.addf %56, %58 : vector<16x128xf32>
    %60 = arith.truncf %59 : vector<16x128xf32> to vector<16x128xbf16>
    %c0_24 = arith.constant 0 : index
    %c0_25 = arith.constant 0 : index
    %61 = vector.load %arg9[%c0_24, %c0_25] : memref<128x256xbf16, #tpu.memory_space<vmem>>, vector<128x256xbf16>
    %cst_26 = arith.constant dense<0.000000e+00> : vector<16x256xf32>
    %62 = tpu.matmul %60, %61, %cst_26 {dimension_numbers = #tpu.dot_dimension_numbers<[1], [0], [0], [1], [0, 0, 1, 1], [], []>} : vector<16x128xbf16>, vector<128x256xbf16>, vector<16x256xf32> -> vector<16x256xf32>
    %c0_27 = arith.constant 0 : index
    %c0_28 = arith.constant 0 : index
    %63 = vector.load %arg10[%c0_27, %c0_28] : memref<1x256xf32, #tpu.memory_space<vmem>>, vector<1x256xf32>
    %64 = vector.broadcast %63 : vector<1x256xf32> to vector<16x256xf32>
    %65 = arith.addf %62, %64 : vector<16x256xf32>
    %cst_29 = arith.constant 0.000000e+00 : f32
    %66 = vector.broadcast %cst_29 : f32 to vector<16x256xf32>
    %67 = arith.maximumf %65, %66 : vector<16x256xf32>
    %68 = arith.truncf %67 : vector<16x256xf32> to vector<16x256xbf16>
    %c0_30 = arith.constant 0 : index
    %c0_31 = arith.constant 0 : index
    %69 = vector.load %arg11[%c0_30, %c0_31] : memref<256x128xbf16, #tpu.memory_space<vmem>>, vector<256x128xbf16>
    %cst_32 = arith.constant dense<0.000000e+00> : vector<16x128xf32>
    %70 = tpu.matmul %68, %69, %cst_32 {dimension_numbers = #tpu.dot_dimension_numbers<[1], [0], [0], [1], [0, 0, 1, 1], [], []>} : vector<16x256xbf16>, vector<256x128xbf16>, vector<16x128xf32> -> vector<16x128xf32>
    %c0_33 = arith.constant 0 : index
    %c0_34 = arith.constant 0 : index
    %71 = vector.load %arg12[%c0_33, %c0_34] : memref<1x128xf32, #tpu.memory_space<vmem>>, vector<1x128xf32>
    %72 = vector.broadcast %71 : vector<1x128xf32> to vector<16x128xf32>
    %73 = arith.addf %70, %72 : vector<16x128xf32>
    %74 = arith.addf %59, %73 : vector<16x128xf32>
    %cst_35 = arith.constant dense<0.000000e+00> : vector<16xf32>
    %75 = vector.multi_reduction <add>, %74, %cst_35 [1] : vector<16x128xf32> to vector<16xf32>
    %76 = vector.shape_cast %75 : vector<16xf32> to vector<16x1xf32>
    %cst_36 = arith.constant 1.280000e+02 : f32
    %77 = vector.broadcast %cst_36 : f32 to vector<16x1xf32>
    %78 = arith.divf %76, %77 : vector<16x1xf32>
    %79 = vector.broadcast %78 : vector<16x1xf32> to vector<16x128xf32>
    %80 = arith.subf %74, %79 : vector<16x128xf32>
    %81 = arith.mulf %80, %80 : vector<16x128xf32>
    %cst_37 = arith.constant dense<0.000000e+00> : vector<16xf32>
    %82 = vector.multi_reduction <add>, %81, %cst_37 [1] : vector<16x128xf32> to vector<16xf32>
    %83 = vector.shape_cast %82 : vector<16xf32> to vector<16x1xf32>
    %cst_38 = arith.constant 1.280000e+02 : f32
    %84 = vector.broadcast %cst_38 : f32 to vector<16x1xf32>
    %85 = arith.divf %83, %84 : vector<16x1xf32>
    %cst_39 = arith.constant 9.99999974E-6 : f32
    %86 = vector.broadcast %cst_39 : f32 to vector<16x1xf32>
    %87 = arith.addf %85, %86 : vector<16x1xf32>
    %88 = math.rsqrt %87 : vector<16x1xf32>
    %89 = vector.broadcast %88 : vector<16x1xf32> to vector<16x128xf32>
    %90 = arith.mulf %80, %89 : vector<16x128xf32>
    %c0_40 = arith.constant 0 : index
    %c0_41 = arith.constant 0 : index
    %91 = vector.load %arg13[%c0_40, %c0_41] : memref<1x128xf32, #tpu.memory_space<vmem>>, vector<1x128xf32>
    %92 = vector.broadcast %91 : vector<1x128xf32> to vector<16x128xf32>
    %93 = arith.mulf %90, %92 : vector<16x128xf32>
    %c0_42 = arith.constant 0 : index
    %c0_43 = arith.constant 0 : index
    %94 = vector.load %arg14[%c0_42, %c0_43] : memref<1x128xf32, #tpu.memory_space<vmem>>, vector<1x128xf32>
    %95 = vector.broadcast %94 : vector<1x128xf32> to vector<16x128xf32>
    %96 = arith.addf %93, %95 : vector<16x128xf32>
    %cst_44 = arith.constant dense<0.000000e+00> : vector<16xf32>
    %97 = vector.multi_reduction <add>, %96, %cst_44 [1] : vector<16x128xf32> to vector<16xf32>
    %98 = vector.shape_cast %97 : vector<16xf32> to vector<16x1xf32>
    %cst_45 = arith.constant 1.280000e+02 : f32
    %99 = vector.broadcast %cst_45 : f32 to vector<16x1xf32>
    %100 = arith.divf %98, %99 : vector<16x1xf32>
    %101 = vector.broadcast %100 : vector<16x1xf32> to vector<16x128xf32>
    %102 = arith.subf %96, %101 : vector<16x128xf32>
    %103 = arith.mulf %102, %102 : vector<16x128xf32>
    %cst_46 = arith.constant dense<0.000000e+00> : vector<16xf32>
    %104 = vector.multi_reduction <add>, %103, %cst_46 [1] : vector<16x128xf32> to vector<16xf32>
    %105 = vector.shape_cast %104 : vector<16xf32> to vector<16x1xf32>
    %cst_47 = arith.constant 1.280000e+02 : f32
    %106 = vector.broadcast %cst_47 : f32 to vector<16x1xf32>
    %107 = arith.divf %105, %106 : vector<16x1xf32>
    %cst_48 = arith.constant 9.99999974E-6 : f32
    %108 = vector.broadcast %cst_48 : f32 to vector<16x1xf32>
    %109 = arith.addf %107, %108 : vector<16x1xf32>
    %110 = math.rsqrt %109 : vector<16x1xf32>
    %111 = vector.broadcast %110 : vector<16x1xf32> to vector<16x128xf32>
    %112 = arith.mulf %102, %111 : vector<16x128xf32>
    %c0_49 = arith.constant 0 : index
    %c0_50 = arith.constant 0 : index
    %113 = vector.load %arg15[%c0_49, %c0_50] : memref<1x128xf32, #tpu.memory_space<vmem>>, vector<1x128xf32>
    %114 = vector.broadcast %113 : vector<1x128xf32> to vector<16x128xf32>
    %115 = arith.mulf %112, %114 : vector<16x128xf32>
    %c0_51 = arith.constant 0 : index
    %c0_52 = arith.constant 0 : index
    %116 = vector.load %arg16[%c0_51, %c0_52] : memref<1x128xf32, #tpu.memory_space<vmem>>, vector<1x128xf32>
    %117 = vector.broadcast %116 : vector<1x128xf32> to vector<16x128xf32>
    %118 = arith.addf %115, %117 : vector<16x128xf32>
    %c0_53 = arith.constant 0 : index
    %c0_54 = arith.constant 0 : index
    %c0_55 = arith.constant 0 : index
    %119 = vector.load %arg2[%c0_53, %c0_54, %c0_55] : memref<2x8x128xf32, #tpu.memory_space<vmem>>, vector<2x8x128xf32>
    %120 = vector.shape_cast %119 : vector<2x8x128xf32> to vector<16x128xf32>
    %121 = arith.truncf %120 : vector<16x128xf32> to vector<16x128xbf16>
    %c0_56 = arith.constant 0 : index
    %c0_57 = arith.constant 0 : index
    %122 = vector.load %arg17[%c0_56, %c0_57] : memref<128x384xbf16, #tpu.memory_space<vmem>>, vector<128x384xbf16>
    %cst_58 = arith.constant dense<0.000000e+00> : vector<16x384xf32>
    %123 = tpu.matmul %121, %122, %cst_58 {dimension_numbers = #tpu.dot_dimension_numbers<[1], [0], [0], [1], [0, 0, 1, 1], [], []>} : vector<16x128xbf16>, vector<128x384xbf16>, vector<16x384xf32> -> vector<16x384xf32>
    %c0_59 = arith.constant 0 : index
    %c0_60 = arith.constant 0 : index
    %124 = vector.load %arg18[%c0_59, %c0_60] : memref<1x384xf32, #tpu.memory_space<vmem>>, vector<1x384xf32>
    %125 = vector.broadcast %124 : vector<1x384xf32> to vector<16x384xf32>
    %126 = arith.addf %123, %125 : vector<16x384xf32>
    %127 = vector.extract_strided_slice %126 {offsets = [0, 0], sizes = [16, 128], strides = [1, 1]} : vector<16x384xf32> to vector<16x128xf32>
    %128 = vector.extract_strided_slice %126 {offsets = [0, 128], sizes = [16, 128], strides = [1, 1]} : vector<16x384xf32> to vector<16x128xf32>
    %129 = vector.extract_strided_slice %126 {offsets = [0, 256], sizes = [16, 128], strides = [1, 1]} : vector<16x384xf32> to vector<16x128xf32>
    %130 = vector.shape_cast %127 : vector<16x128xf32> to vector<2x8x128xf32>
    %131 = arith.truncf %130 : vector<2x8x128xf32> to vector<2x8x128xbf16>
    %132 = vector.shape_cast %128 : vector<16x128xf32> to vector<2x8x128xf32>
    %133 = arith.truncf %132 : vector<2x8x128xf32> to vector<2x8x128xbf16>
    %134 = vector.shape_cast %129 : vector<16x128xf32> to vector<2x8x128xf32>
    %135 = arith.truncf %134 : vector<2x8x128xf32> to vector<2x8x128xbf16>
    "tpu.trace_start"() <{level = 10 : i32, message = "bqd,bkd->bqk"}> : () -> ()
    %cst_61 = arith.constant dense<0.000000e+00> : vector<2x8x8xf32>
    %136 = tpu.matmul %131, %133, %cst_61 {dimension_numbers = #tpu.dot_dimension_numbers<[2], [2], [1], [1], [0, 0, 0, 1, 1, 1], [0], [0]>} : vector<2x8x128xbf16>, vector<2x8x128xbf16>, vector<2x8x8xf32> -> vector<2x8x8xf32>
    "tpu.trace_stop"() : () -> ()
    %cst_62 = arith.constant dense<0xFF800000> : vector<2x8xf32>
    %137 = vector.multi_reduction <maximumf>, %136, %cst_62 [2] : vector<2x8x8xf32> to vector<2x8xf32>
    %138 = vector.shape_cast %137 : vector<2x8xf32> to vector<2x8x1xf32>
    %139 = vector.broadcast %138 : vector<2x8x1xf32> to vector<2x8x8xf32>
    %140 = arith.subf %136, %139 : vector<2x8x8xf32>
    %141 = math.exp %140 : vector<2x8x8xf32>
    %cst_63 = arith.constant dense<0.000000e+00> : vector<2x8xf32>
    %142 = vector.multi_reduction <add>, %141, %cst_63 [2] : vector<2x8x8xf32> to vector<2x8xf32>
    %143 = vector.shape_cast %142 : vector<2x8xf32> to vector<2x8x1xf32>
    %144 = tpu.reciprocal %143 {approx = true} : vector<2x8x1xf32> -> vector<2x8x1xf32>
    %145 = vector.broadcast %144 : vector<2x8x1xf32> to vector<2x8x8xf32>
    %146 = arith.mulf %141, %145 : vector<2x8x8xf32>
    %147 = arith.truncf %146 : vector<2x8x8xf32> to vector<2x8x8xbf16>
    "tpu.trace_start"() <{level = 10 : i32, message = "bqk,bkd->bqd"}> : () -> ()
    %cst_64 = arith.constant dense<0.000000e+00> : vector<2x8x128xf32>
    %148 = tpu.matmul %147, %135, %cst_64 {dimension_numbers = #tpu.dot_dimension_numbers<[2], [1], [1], [2], [0, 0, 0, 1, 1, 2], [0], [0]>} : vector<2x8x8xbf16>, vector<2x8x128xbf16>, vector<2x8x128xf32> -> vector<2x8x128xf32>
    "tpu.trace_stop"() : () -> ()
    %149 = vector.shape_cast %148 : vector<2x8x128xf32> to vector<16x128xf32>
    %150 = arith.truncf %149 : vector<16x128xf32> to vector<16x128xbf16>
    %c0_65 = arith.constant 0 : index
    %c0_66 = arith.constant 0 : index
    %151 = vector.load %arg19[%c0_65, %c0_66] : memref<128x128xbf16, #tpu.memory_space<vmem>>, vector<128x128xbf16>
    %cst_67 = arith.constant dense<0.000000e+00> : vector<16x128xf32>
    %152 = tpu.matmul %150, %151, %cst_67 {dimension_numbers = #tpu.dot_dimension_numbers<[1], [0], [0], [1], [0, 0, 1, 1], [], []>} : vector<16x128xbf16>, vector<128x128xbf16>, vector<16x128xf32> -> vector<16x128xf32>
    %c0_68 = arith.constant 0 : index
    %c0_69 = arith.constant 0 : index
    %153 = vector.load %arg20[%c0_68, %c0_69] : memref<1x128xf32, #tpu.memory_space<vmem>>, vector<1x128xf32>
    %154 = vector.broadcast %153 : vector<1x128xf32> to vector<16x128xf32>
    %155 = arith.addf %152, %154 : vector<16x128xf32>
    %156 = arith.addf %120, %155 : vector<16x128xf32>
    %cst_70 = arith.constant dense<0.000000e+00> : vector<16xf32>
    %157 = vector.multi_reduction <add>, %156, %cst_70 [1] : vector<16x128xf32> to vector<16xf32>
    %158 = vector.shape_cast %157 : vector<16xf32> to vector<16x1xf32>
    %cst_71 = arith.constant 1.280000e+02 : f32
    %159 = vector.broadcast %cst_71 : f32 to vector<16x1xf32>
    %160 = arith.divf %158, %159 : vector<16x1xf32>
    %161 = vector.broadcast %160 : vector<16x1xf32> to vector<16x128xf32>
    %162 = arith.subf %156, %161 : vector<16x128xf32>
    %163 = arith.mulf %162, %162 : vector<16x128xf32>
    %cst_72 = arith.constant dense<0.000000e+00> : vector<16xf32>
    %164 = vector.multi_reduction <add>, %163, %cst_72 [1] : vector<16x128xf32> to vector<16xf32>
    %165 = vector.shape_cast %164 : vector<16xf32> to vector<16x1xf32>
    %cst_73 = arith.constant 1.280000e+02 : f32
    %166 = vector.broadcast %cst_73 : f32 to vector<16x1xf32>
    %167 = arith.divf %165, %166 : vector<16x1xf32>
    %cst_74 = arith.constant 9.99999974E-6 : f32
    %168 = vector.broadcast %cst_74 : f32 to vector<16x1xf32>
    %169 = arith.addf %167, %168 : vector<16x1xf32>
    %170 = math.rsqrt %169 : vector<16x1xf32>
    %171 = vector.broadcast %170 : vector<16x1xf32> to vector<16x128xf32>
    %172 = arith.mulf %162, %171 : vector<16x128xf32>
    %c0_75 = arith.constant 0 : index
    %c0_76 = arith.constant 0 : index
    %173 = vector.load %arg21[%c0_75, %c0_76] : memref<1x128xf32, #tpu.memory_space<vmem>>, vector<1x128xf32>
    %174 = vector.broadcast %173 : vector<1x128xf32> to vector<16x128xf32>
    %175 = arith.mulf %172, %174 : vector<16x128xf32>
    %c0_77 = arith.constant 0 : index
    %c0_78 = arith.constant 0 : index
    %176 = vector.load %arg22[%c0_77, %c0_78] : memref<1x128xf32, #tpu.memory_space<vmem>>, vector<1x128xf32>
    %177 = vector.broadcast %176 : vector<1x128xf32> to vector<16x128xf32>
    %178 = arith.addf %175, %177 : vector<16x128xf32>
    %179 = arith.truncf %178 : vector<16x128xf32> to vector<16x128xbf16>
    %c0_79 = arith.constant 0 : index
    %c0_80 = arith.constant 0 : index
    %180 = vector.load %arg23[%c0_79, %c0_80] : memref<128x128xbf16, #tpu.memory_space<vmem>>, vector<128x128xbf16>
    %cst_81 = arith.constant dense<0.000000e+00> : vector<16x128xf32>
    %181 = tpu.matmul %179, %180, %cst_81 {dimension_numbers = #tpu.dot_dimension_numbers<[1], [0], [0], [1], [0, 0, 1, 1], [], []>} : vector<16x128xbf16>, vector<128x128xbf16>, vector<16x128xf32> -> vector<16x128xf32>
    %c0_82 = arith.constant 0 : index
    %c0_83 = arith.constant 0 : index
    %182 = vector.load %arg24[%c0_82, %c0_83] : memref<1x128xf32, #tpu.memory_space<vmem>>, vector<1x128xf32>
    %183 = vector.broadcast %182 : vector<1x128xf32> to vector<16x128xf32>
    %184 = arith.addf %181, %183 : vector<16x128xf32>
    %185 = arith.truncf %118 : vector<16x128xf32> to vector<16x128xbf16>
    %c0_84 = arith.constant 0 : index
    %c0_85 = arith.constant 0 : index
    %186 = vector.load %arg25[%c0_84, %c0_85] : memref<128x256xbf16, #tpu.memory_space<vmem>>, vector<128x256xbf16>
    %cst_86 = arith.constant dense<0.000000e+00> : vector<16x256xf32>
    %187 = tpu.matmul %185, %186, %cst_86 {dimension_numbers = #tpu.dot_dimension_numbers<[1], [0], [0], [1], [0, 0, 1, 1], [], []>} : vector<16x128xbf16>, vector<128x256xbf16>, vector<16x256xf32> -> vector<16x256xf32>
    %c0_87 = arith.constant 0 : index
    %c0_88 = arith.constant 0 : index
    %188 = vector.load %arg26[%c0_87, %c0_88] : memref<1x256xf32, #tpu.memory_space<vmem>>, vector<1x256xf32>
    %189 = vector.broadcast %188 : vector<1x256xf32> to vector<16x256xf32>
    %190 = arith.addf %187, %189 : vector<16x256xf32>
    %191 = vector.extract_strided_slice %190 {offsets = [0, 0], sizes = [16, 128], strides = [1, 1]} : vector<16x256xf32> to vector<16x128xf32>
    %192 = vector.extract_strided_slice %190 {offsets = [0, 128], sizes = [16, 128], strides = [1, 1]} : vector<16x256xf32> to vector<16x128xf32>
    %193 = vector.shape_cast %184 : vector<16x128xf32> to vector<2x8x128xf32>
    %194 = arith.truncf %193 : vector<2x8x128xf32> to vector<2x8x128xbf16>
    %195 = vector.shape_cast %191 : vector<16x128xf32> to vector<2x8x128xf32>
    %196 = arith.truncf %195 : vector<2x8x128xf32> to vector<2x8x128xbf16>
    %197 = vector.shape_cast %192 : vector<16x128xf32> to vector<2x8x128xf32>
    %198 = arith.truncf %197 : vector<2x8x128xf32> to vector<2x8x128xbf16>
    "tpu.trace_start"() <{level = 10 : i32, message = "bqd,bkd->bqk"}> : () -> ()
    %cst_89 = arith.constant dense<0.000000e+00> : vector<2x8x8xf32>
    %199 = tpu.matmul %194, %196, %cst_89 {dimension_numbers = #tpu.dot_dimension_numbers<[2], [2], [1], [1], [0, 0, 0, 1, 1, 1], [0], [0]>} : vector<2x8x128xbf16>, vector<2x8x128xbf16>, vector<2x8x8xf32> -> vector<2x8x8xf32>
    "tpu.trace_stop"() : () -> ()
    %cst_90 = arith.constant dense<0xFF800000> : vector<2x8xf32>
    %200 = vector.multi_reduction <maximumf>, %199, %cst_90 [2] : vector<2x8x8xf32> to vector<2x8xf32>
    %201 = vector.shape_cast %200 : vector<2x8xf32> to vector<2x8x1xf32>
    %202 = vector.broadcast %201 : vector<2x8x1xf32> to vector<2x8x8xf32>
    %203 = arith.subf %199, %202 : vector<2x8x8xf32>
    %204 = math.exp %203 : vector<2x8x8xf32>
    %cst_91 = arith.constant dense<0.000000e+00> : vector<2x8xf32>
    %205 = vector.multi_reduction <add>, %204, %cst_91 [2] : vector<2x8x8xf32> to vector<2x8xf32>
    %206 = vector.shape_cast %205 : vector<2x8xf32> to vector<2x8x1xf32>
    %207 = tpu.reciprocal %206 {approx = true} : vector<2x8x1xf32> -> vector<2x8x1xf32>
    %208 = vector.broadcast %207 : vector<2x8x1xf32> to vector<2x8x8xf32>
    %209 = arith.mulf %204, %208 : vector<2x8x8xf32>
    %210 = arith.truncf %209 : vector<2x8x8xf32> to vector<2x8x8xbf16>
    "tpu.trace_start"() <{level = 10 : i32, message = "bqk,bkd->bqd"}> : () -> ()
    %cst_92 = arith.constant dense<0.000000e+00> : vector<2x8x128xf32>
    %211 = tpu.matmul %210, %198, %cst_92 {dimension_numbers = #tpu.dot_dimension_numbers<[2], [1], [1], [2], [0, 0, 0, 1, 1, 2], [0], [0]>} : vector<2x8x8xbf16>, vector<2x8x128xbf16>, vector<2x8x128xf32> -> vector<2x8x128xf32>
    "tpu.trace_stop"() : () -> ()
    %212 = vector.shape_cast %211 : vector<2x8x128xf32> to vector<16x128xf32>
    %213 = arith.truncf %212 : vector<16x128xf32> to vector<16x128xbf16>
    %c0_93 = arith.constant 0 : index
    %c0_94 = arith.constant 0 : index
    %214 = vector.load %arg27[%c0_93, %c0_94] : memref<128x128xbf16, #tpu.memory_space<vmem>>, vector<128x128xbf16>
    %cst_95 = arith.constant dense<0.000000e+00> : vector<16x128xf32>
    %215 = tpu.matmul %213, %214, %cst_95 {dimension_numbers = #tpu.dot_dimension_numbers<[1], [0], [0], [1], [0, 0, 1, 1], [], []>} : vector<16x128xbf16>, vector<128x128xbf16>, vector<16x128xf32> -> vector<16x128xf32>
    %c0_96 = arith.constant 0 : index
    %c0_97 = arith.constant 0 : index
    %216 = vector.load %arg28[%c0_96, %c0_97] : memref<1x128xf32, #tpu.memory_space<vmem>>, vector<1x128xf32>
    %217 = vector.broadcast %216 : vector<1x128xf32> to vector<16x128xf32>
    %218 = arith.addf %215, %217 : vector<16x128xf32>
    %219 = arith.addf %178, %218 : vector<16x128xf32>
    %cst_98 = arith.constant dense<0.000000e+00> : vector<16xf32>
    %220 = vector.multi_reduction <add>, %219, %cst_98 [1] : vector<16x128xf32> to vector<16xf32>
    %221 = vector.shape_cast %220 : vector<16xf32> to vector<16x1xf32>
    %cst_99 = arith.constant 1.280000e+02 : f32
    %222 = vector.broadcast %cst_99 : f32 to vector<16x1xf32>
    %223 = arith.divf %221, %222 : vector<16x1xf32>
    %224 = vector.broadcast %223 : vector<16x1xf32> to vector<16x128xf32>
    %225 = arith.subf %219, %224 : vector<16x128xf32>
    %226 = arith.mulf %225, %225 : vector<16x128xf32>
    %cst_100 = arith.constant dense<0.000000e+00> : vector<16xf32>
    %227 = vector.multi_reduction <add>, %226, %cst_100 [1] : vector<16x128xf32> to vector<16xf32>
    %228 = vector.shape_cast %227 : vector<16xf32> to vector<16x1xf32>
    %cst_101 = arith.constant 1.280000e+02 : f32
    %229 = vector.broadcast %cst_101 : f32 to vector<16x1xf32>
    %230 = arith.divf %228, %229 : vector<16x1xf32>
    %cst_102 = arith.constant 9.99999974E-6 : f32
    %231 = vector.broadcast %cst_102 : f32 to vector<16x1xf32>
    %232 = arith.addf %230, %231 : vector<16x1xf32>
    %233 = math.rsqrt %232 : vector<16x1xf32>
    %234 = vector.broadcast %233 : vector<16x1xf32> to vector<16x128xf32>
    %235 = arith.mulf %225, %234 : vector<16x128xf32>
    %c0_103 = arith.constant 0 : index
    %c0_104 = arith.constant 0 : index
    %236 = vector.load %arg29[%c0_103, %c0_104] : memref<1x128xf32, #tpu.memory_space<vmem>>, vector<1x128xf32>
    %237 = vector.broadcast %236 : vector<1x128xf32> to vector<16x128xf32>
    %238 = arith.mulf %235, %237 : vector<16x128xf32>
    %c0_105 = arith.constant 0 : index
    %c0_106 = arith.constant 0 : index
    %239 = vector.load %arg30[%c0_105, %c0_106] : memref<1x128xf32, #tpu.memory_space<vmem>>, vector<1x128xf32>
    %240 = vector.broadcast %239 : vector<1x128xf32> to vector<16x128xf32>
    %241 = arith.addf %238, %240 : vector<16x128xf32>
    %242 = arith.truncf %241 : vector<16x128xf32> to vector<16x128xbf16>
    %c0_107 = arith.constant 0 : index
    %c0_108 = arith.constant 0 : index
    %243 = vector.load %arg31[%c0_107, %c0_108] : memref<128x256xbf16, #tpu.memory_space<vmem>>, vector<128x256xbf16>
    %cst_109 = arith.constant dense<0.000000e+00> : vector<16x256xf32>
    %244 = tpu.matmul %242, %243, %cst_109 {dimension_numbers = #tpu.dot_dimension_numbers<[1], [0], [0], [1], [0, 0, 1, 1], [], []>} : vector<16x128xbf16>, vector<128x256xbf16>, vector<16x256xf32> -> vector<16x256xf32>
    %c0_110 = arith.constant 0 : index
    %c0_111 = arith.constant 0 : index
    %245 = vector.load %arg32[%c0_110, %c0_111] : memref<1x256xf32, #tpu.memory_space<vmem>>, vector<1x256xf32>
    %246 = vector.broadcast %245 : vector<1x256xf32> to vector<16x256xf32>
    %247 = arith.addf %244, %246 : vector<16x256xf32>
    %cst_112 = arith.constant 0.000000e+00 : f32
    %248 = vector.broadcast %cst_112 : f32 to vector<16x256xf32>
    %249 = arith.maximumf %247, %248 : vector<16x256xf32>
    %250 = arith.truncf %249 : vector<16x256xf32> to vector<16x256xbf16>
    %c0_113 = arith.constant 0 : index
    %c0_114 = arith.constant 0 : index
    %251 = vector.load %arg33[%c0_113, %c0_114] : memref<256x128xbf16, #tpu.memory_space<vmem>>, vector<256x128xbf16>
    %cst_115 = arith.constant dense<0.000000e+00> : vector<16x128xf32>
    %252 = tpu.matmul %250, %251, %cst_115 {dimension_numbers = #tpu.dot_dimension_numbers<[1], [0], [0], [1], [0, 0, 1, 1], [], []>} : vector<16x256xbf16>, vector<256x128xbf16>, vector<16x128xf32> -> vector<16x128xf32>
    %c0_116 = arith.constant 0 : index
    %c0_117 = arith.constant 0 : index
    %253 = vector.load %arg34[%c0_116, %c0_117] : memref<1x128xf32, #tpu.memory_space<vmem>>, vector<1x128xf32>
    %254 = vector.broadcast %253 : vector<1x128xf32> to vector<16x128xf32>
    %255 = arith.addf %252, %254 : vector<16x128xf32>
    %256 = arith.addf %241, %255 : vector<16x128xf32>
    %cst_118 = arith.constant dense<0.000000e+00> : vector<16xf32>
    %257 = vector.multi_reduction <add>, %256, %cst_118 [1] : vector<16x128xf32> to vector<16xf32>
    %258 = vector.shape_cast %257 : vector<16xf32> to vector<16x1xf32>
    %cst_119 = arith.constant 1.280000e+02 : f32
    %259 = vector.broadcast %cst_119 : f32 to vector<16x1xf32>
    %260 = arith.divf %258, %259 : vector<16x1xf32>
    %261 = vector.broadcast %260 : vector<16x1xf32> to vector<16x128xf32>
    %262 = arith.subf %256, %261 : vector<16x128xf32>
    %263 = arith.mulf %262, %262 : vector<16x128xf32>
    %cst_120 = arith.constant dense<0.000000e+00> : vector<16xf32>
    %264 = vector.multi_reduction <add>, %263, %cst_120 [1] : vector<16x128xf32> to vector<16xf32>
    %265 = vector.shape_cast %264 : vector<16xf32> to vector<16x1xf32>
    %cst_121 = arith.constant 1.280000e+02 : f32
    %266 = vector.broadcast %cst_121 : f32 to vector<16x1xf32>
    %267 = arith.divf %265, %266 : vector<16x1xf32>
    %cst_122 = arith.constant 9.99999974E-6 : f32
    %268 = vector.broadcast %cst_122 : f32 to vector<16x1xf32>
    %269 = arith.addf %267, %268 : vector<16x1xf32>
    %270 = math.rsqrt %269 : vector<16x1xf32>
    %271 = vector.broadcast %270 : vector<16x1xf32> to vector<16x128xf32>
    %272 = arith.mulf %262, %271 : vector<16x128xf32>
    %c0_123 = arith.constant 0 : index
    %c0_124 = arith.constant 0 : index
    %273 = vector.load %arg35[%c0_123, %c0_124] : memref<1x128xf32, #tpu.memory_space<vmem>>, vector<1x128xf32>
    %274 = vector.broadcast %273 : vector<1x128xf32> to vector<16x128xf32>
    %275 = arith.mulf %272, %274 : vector<16x128xf32>
    %c0_125 = arith.constant 0 : index
    %c0_126 = arith.constant 0 : index
    %276 = vector.load %arg36[%c0_125, %c0_126] : memref<1x128xf32, #tpu.memory_space<vmem>>, vector<1x128xf32>
    %277 = vector.broadcast %276 : vector<1x128xf32> to vector<16x128xf32>
    %278 = arith.addf %275, %277 : vector<16x128xf32>
    %cst_127 = arith.constant dense<0.000000e+00> : vector<16xf32>
    %279 = vector.multi_reduction <add>, %278, %cst_127 [1] : vector<16x128xf32> to vector<16xf32>
    %280 = vector.shape_cast %279 : vector<16xf32> to vector<16x1xf32>
    %cst_128 = arith.constant 1.280000e+02 : f32
    %281 = vector.broadcast %cst_128 : f32 to vector<16x1xf32>
    %282 = arith.divf %280, %281 : vector<16x1xf32>
    %283 = vector.broadcast %282 : vector<16x1xf32> to vector<16x128xf32>
    %284 = arith.subf %278, %283 : vector<16x128xf32>
    %285 = arith.mulf %284, %284 : vector<16x128xf32>
    %cst_129 = arith.constant dense<0.000000e+00> : vector<16xf32>
    %286 = vector.multi_reduction <add>, %285, %cst_129 [1] : vector<16x128xf32> to vector<16xf32>
    %287 = vector.shape_cast %286 : vector<16xf32> to vector<16x1xf32>
    %cst_130 = arith.constant 1.280000e+02 : f32
    %288 = vector.broadcast %cst_130 : f32 to vector<16x1xf32>
    %289 = arith.divf %287, %288 : vector<16x1xf32>
    %cst_131 = arith.constant 9.99999974E-6 : f32
    %290 = vector.broadcast %cst_131 : f32 to vector<16x1xf32>
    %291 = arith.addf %289, %290 : vector<16x1xf32>
    %292 = math.rsqrt %291 : vector<16x1xf32>
    %293 = vector.broadcast %292 : vector<16x1xf32> to vector<16x128xf32>
    %294 = arith.mulf %284, %293 : vector<16x128xf32>
    %c0_132 = arith.constant 0 : index
    %c0_133 = arith.constant 0 : index
    %295 = vector.load %arg37[%c0_132, %c0_133] : memref<1x128xf32, #tpu.memory_space<vmem>>, vector<1x128xf32>
    %296 = vector.broadcast %295 : vector<1x128xf32> to vector<16x128xf32>
    %297 = arith.mulf %294, %296 : vector<16x128xf32>
    %c0_134 = arith.constant 0 : index
    %c0_135 = arith.constant 0 : index
    %298 = vector.load %arg38[%c0_134, %c0_135] : memref<1x128xf32, #tpu.memory_space<vmem>>, vector<1x128xf32>
    %299 = vector.broadcast %298 : vector<1x128xf32> to vector<16x128xf32>
    %300 = arith.addf %297, %299 : vector<16x128xf32>
    %301 = vector.shape_cast %300 : vector<16x128xf32> to vector<2x8x128xf32>
    %c0_136 = arith.constant 0 : index
    %c0_137 = arith.constant 0 : index
    %c0_138 = arith.constant 0 : index
    %302 = vector.load %arg39[%c0_136, %c0_137, %c0_138] : memref<2x8x128xf32, #tpu.memory_space<vmem>>, vector<2x8x128xf32>
    tpu.vector_store %arg39[%c0_136, %c0_137, %c0_138], %301 {strides = array<i32>} : memref<2x8x128xf32, #tpu.memory_space<vmem>>, vector<2x8x128xf32>,
    return
  }
  func.func @transform_0(%arg0: i32) -> (i32, i32, i32) {
    %c0_i32 = arith.constant 0 : i32
    %c0_i32_0 = arith.constant 0 : i32
    %c0_i32_1 = arith.constant 0 : i32
    return %arg0, %c0_i32, %c0_i32_0 : i32, i32, i32
  }
  func.func @transform_1(%arg0: i32) -> (i32, i32, i32) {
    %c0_i32 = arith.constant 0 : i32
    %c0_i32_0 = arith.constant 0 : i32
    %c0_i32_1 = arith.constant 0 : i32
    return %arg0, %c0_i32, %c0_i32_0 : i32, i32, i32
  }
  func.func @transform_2(%arg0: i32) -> (i32, i32) {
    %c0_i32 = arith.constant 0 : i32
    %c0_i32_0 = arith.constant 0 : i32
    %c0_i32_1 = arith.constant 0 : i32
    return %c0_i32, %c0_i32_0 : i32, i32
  }
  func.func @transform_3(%arg0: i32) -> (i32, i32) {
    %c0_i32 = arith.constant 0 : i32
    %c0_i32_0 = arith.constant 0 : i32
    %c0_i32_1 = arith.constant 0 : i32
    return %c0_i32, %c0_i32_0 : i32, i32
  }
  func.func @transform_4(%arg0: i32) -> (i32, i32) {
    %c0_i32 = arith.constant 0 : i32
    %c0_i32_0 = arith.constant 0 : i32
    %c0_i32_1 = arith.constant 0 : i32
    return %c0_i32, %c0_i32_0 : i32, i32
  }
  func.func @transform_5(%arg0: i32) -> (i32, i32) {
    %c0_i32 = arith.constant 0 : i32
    %c0_i32_0 = arith.constant 0 : i32
    %c0_i32_1 = arith.constant 0 : i32
    return %c0_i32, %c0_i32_0 : i32, i32
  }
  func.func @transform_6(%arg0: i32) -> (i32, i32) {
    %c0_i32 = arith.constant 0 : i32
    %c0_i32_0 = arith.constant 0 : i32
    %c0_i32_1 = arith.constant 0 : i32
    return %c0_i32, %c0_i32_0 : i32, i32
  }
  func.func @transform_7(%arg0: i32) -> (i32, i32) {
    %c0_i32 = arith.constant 0 : i32
    %c0_i32_0 = arith.constant 0 : i32
    %c0_i32_1 = arith.constant 0 : i32
    return %c0_i32, %c0_i32_0 : i32, i32
  }
  func.func @transform_8(%arg0: i32) -> (i32, i32) {
    %c0_i32 = arith.constant 0 : i32
    %c0_i32_0 = arith.constant 0 : i32
    %c0_i32_1 = arith.constant 0 : i32
    return %c0_i32, %c0_i32_0 : i32, i32
  }
  func.func @transform_9(%arg0: i32) -> (i32, i32) {
    %c0_i32 = arith.constant 0 : i32
    %c0_i32_0 = arith.constant 0 : i32
    %c0_i32_1 = arith.constant 0 : i32
    return %c0_i32, %c0_i32_0 : i32, i32
  }
  func.func @transform_10(%arg0: i32) -> (i32, i32) {
    %c0_i32 = arith.constant 0 : i32
    %c0_i32_0 = arith.constant 0 : i32
    %c0_i32_1 = arith.constant 0 : i32
    return %c0_i32, %c0_i32_0 : i32, i32
  }
  func.func @transform_11(%arg0: i32) -> (i32, i32) {
    %c0_i32 = arith.constant 0 : i32
    %c0_i32_0 = arith.constant 0 : i32
    %c0_i32_1 = arith.constant 0 : i32
    return %c0_i32, %c0_i32_0 : i32, i32
  }
  func.func @transform_12(%arg0: i32) -> (i32, i32) {
    %c0_i32 = arith.constant 0 : i32
    %c0_i32_0 = arith.constant 0 : i32
    %c0_i32_1 = arith.constant 0 : i32
    return %c0_i32, %c0_i32_0 : i32, i32
  }
  func.func @transform_13(%arg0: i32) -> (i32, i32) {
    %c0_i32 = arith.constant 0 : i32
    %c0_i32_0 = arith.constant 0 : i32
    %c0_i32_1 = arith.constant 0 : i32
    return %c0_i32, %c0_i32_0 : i32, i32
  }
  func.func @transform_14(%arg0: i32) -> (i32, i32) {
    %c0_i32 = arith.constant 0 : i32
    %c0_i32_0 = arith.constant 0 : i32
    %c0_i32_1 = arith.constant 0 : i32
    return %c0_i32, %c0_i32_0 : i32, i32
  }
  func.func @transform_15(%arg0: i32) -> (i32, i32) {
    %c0_i32 = arith.constant 0 : i32
    %c0_i32_0 = arith.constant 0 : i32
    %c0_i32_1 = arith.constant 0 : i32
    return %c0_i32, %c0_i32_0 : i32, i32
  }
  func.func @transform_16(%arg0: i32) -> (i32, i32) {
    %c0_i32 = arith.constant 0 : i32
    %c0_i32_0 = arith.constant 0 : i32
    %c0_i32_1 = arith.constant 0 : i32
    return %c0_i32, %c0_i32_0 : i32, i32
  }
  func.func @transform_17(%arg0: i32) -> (i32, i32) {
    %c0_i32 = arith.constant 0 : i32
    %c0_i32_0 = arith.constant 0 : i32
    %c0_i32_1 = arith.constant 0 : i32
    return %c0_i32, %c0_i32_0 : i32, i32
  }
  func.func @transform_18(%arg0: i32) -> (i32, i32) {
    %c0_i32 = arith.constant 0 : i32
    %c0_i32_0 = arith.constant 0 : i32
    %c0_i32_1 = arith.constant 0 : i32
    return %c0_i32, %c0_i32_0 : i32, i32
  }
  func.func @transform_19(%arg0: i32) -> (i32, i32) {
    %c0_i32 = arith.constant 0 : i32
    %c0_i32_0 = arith.constant 0 : i32
    %c0_i32_1 = arith.constant 0 : i32
    return %c0_i32, %c0_i32_0 : i32, i32
  }
  func.func @transform_20(%arg0: i32) -> (i32, i32) {
    %c0_i32 = arith.constant 0 : i32
    %c0_i32_0 = arith.constant 0 : i32
    %c0_i32_1 = arith.constant 0 : i32
    return %c0_i32, %c0_i32_0 : i32, i32
  }
  func.func @transform_21(%arg0: i32) -> (i32, i32) {
    %c0_i32 = arith.constant 0 : i32
    %c0_i32_0 = arith.constant 0 : i32
    %c0_i32_1 = arith.constant 0 : i32
    return %c0_i32, %c0_i32_0 : i32, i32
  }
  func.func @transform_22(%arg0: i32) -> (i32, i32) {
    %c0_i32 = arith.constant 0 : i32
    %c0_i32_0 = arith.constant 0 : i32
    %c0_i32_1 = arith.constant 0 : i32
    return %c0_i32, %c0_i32_0 : i32, i32
  }
  func.func @transform_23(%arg0: i32) -> (i32, i32) {
    %c0_i32 = arith.constant 0 : i32
    %c0_i32_0 = arith.constant 0 : i32
    %c0_i32_1 = arith.constant 0 : i32
    return %c0_i32, %c0_i32_0 : i32, i32
  }
  func.func @transform_24(%arg0: i32) -> (i32, i32) {
    %c0_i32 = arith.constant 0 : i32
    %c0_i32_0 = arith.constant 0 : i32
    %c0_i32_1 = arith.constant 0 : i32
    return %c0_i32, %c0_i32_0 : i32, i32
  }
  func.func @transform_25(%arg0: i32) -> (i32, i32) {
    %c0_i32 = arith.constant 0 : i32
    %c0_i32_0 = arith.constant 0 : i32
    %c0_i32_1 = arith.constant 0 : i32
    return %c0_i32, %c0_i32_0 : i32, i32
  }
  func.func @transform_26(%arg0: i32) -> (i32, i32) {
    %c0_i32 = arith.constant 0 : i32
    %c0_i32_0 = arith.constant 0 : i32
    %c0_i32_1 = arith.constant 0 : i32
    return %c0_i32, %c0_i32_0 : i32, i32
  }
  func.func @transform_27(%arg0: i32) -> (i32, i32) {
    %c0_i32 = arith.constant 0 : i32
    %c0_i32_0 = arith.constant 0 : i32
    %c0_i32_1 = arith.constant 0 : i32
    return %c0_i32, %c0_i32_0 : i32, i32
  }
  func.func @transform_28(%arg0: i32) -> (i32, i32) {
    %c0_i32 = arith.constant 0 : i32
    %c0_i32_0 = arith.constant 0 : i32
    %c0_i32_1 = arith.constant 0 : i32
    return %c0_i32, %c0_i32_0 : i32, i32
  }
  func.func @transform_29(%arg0: i32) -> (i32, i32) {
    %c0_i32 = arith.constant 0 : i32
    %c0_i32_0 = arith.constant 0 : i32
    %c0_i32_1 = arith.constant 0 : i32
    return %c0_i32, %c0_i32_0 : i32, i32
  }
  func.func @transform_30(%arg0: i32) -> (i32, i32) {
    %c0_i32 = arith.constant 0 : i32
    %c0_i32_0 = arith.constant 0 : i32
    %c0_i32_1 = arith.constant 0 : i32
    return %c0_i32, %c0_i32_0 : i32, i32
  }
  func.func @transform_31(%arg0: i32) -> (i32, i32) {
    %c0_i32 = arith.constant 0 : i32
    %c0_i32_0 = arith.constant 0 : i32
    %c0_i32_1 = arith.constant 0 : i32
    return %c0_i32, %c0_i32_0 : i32, i32
  }
  func.func @transform_32(%arg0: i32) -> (i32, i32) {
    %c0_i32 = arith.constant 0 : i32
    %c0_i32_0 = arith.constant 0 : i32
    %c0_i32_1 = arith.constant 0 : i32
    return %c0_i32, %c0_i32_0 : i32, i32
  }
  func.func @transform_33(%arg0: i32) -> (i32, i32) {
    %c0_i32 = arith.constant 0 : i32
    %c0_i32_0 = arith.constant 0 : i32
    %c0_i32_1 = arith.constant 0 : i32
    return %c0_i32, %c0_i32_0 : i32, i32
  }
  func.func @transform_34(%arg0: i32) -> (i32, i32) {
    %c0_i32 = arith.constant 0 : i32
    %c0_i32_0 = arith.constant 0 : i32
    %c0_i32_1 = arith.constant 0 : i32
    return %c0_i32, %c0_i32_0 : i32, i32
  }
  func.func @transform_35(%arg0: i32) -> (i32, i32) {
    %c0_i32 = arith.constant 0 : i32
    %c0_i32_0 = arith.constant 0 : i32
    %c0_i32_1 = arith.constant 0 : i32
    return %c0_i32, %c0_i32_0 : i32, i32
  }
  func.func @transform_36(%arg0: i32) -> (i32, i32) {
    %c0_i32 = arith.constant 0 : i32
    %c0_i32_0 = arith.constant 0 : i32
    %c0_i32_1 = arith.constant 0 : i32
    return %c0_i32, %c0_i32_0 : i32, i32
  }
  func.func @transform_37(%arg0: i32) -> (i32, i32) {
    %c0_i32 = arith.constant 0 : i32
    %c0_i32_0 = arith.constant 0 : i32
    %c0_i32_1 = arith.constant 0 : i32
    return %c0_i32, %c0_i32_0 : i32, i32
  }
  func.func @transform_38(%arg0: i32) -> (i32, i32, i32) {
    %c0_i32 = arith.constant 0 : i32
    %c0_i32_0 = arith.constant 0 : i32
    %c0_i32_1 = arith.constant 0 : i32
    return %arg0, %c0_i32, %c0_i32_0 : i32, i32, i32
  }
}

</mosaic_0001>

<bundles_post_ra>
// kernel: transformer_forward.1
= control target key start
LH: loop header
LB: loop body
LE: loop exit
PB: predicated region body
PF: predicated region fallthrough
CT: control target
= control target key end

     0   :  { %s6126_s6 = smov 1   ;;  %s6127_s10 = smov 2   ;;  %s7043_s0 = inlined_call_operand.smem [shape: u32[39], index: -1, kind: input, shape index: {}] }
   0x1   :  { %s6206_s5 = sld [smem:[%s7043_s0]]   ;;  %s6128_s14 = smov 3  }
   0x2   :  { %s6211_s9 = sld [smem:[%s7043_s0 + %s6126_s6]]   ;;  %s6129_s18 = smov 4  }
   0x3   :  { %s6216_s13 = sld [smem:[%s7043_s0 + %s6127_s10]]   ;;  %s6130_s22 = smov 5  }
   0x4   :  { %s6221_s17 = sld [smem:[%s7043_s0 + %s6128_s14]]   ;;  %s6131_s26 = smov 6  }
   0x5   :  { %s6226_s21 = sld [smem:[%s7043_s0 + %s6129_s18]]   ;;  %s6132_s30 = smov 7  }
   0x6   :  { %s6231_s25 = sld [smem:[%s7043_s0 + %s6130_s22]]   ;;  %s6133_s4 = smov 8  }
   0x7   :  { %7089 = sst [smem:[#allocation57_spill]] %s6206_s5  ;;  %s6134_s10 = smov 9  }
   0x8   :  { %7090 = sst [smem:[#allocation58_spill]] %s6211_s9  ;;  %s6135_s15 = smov 10  }
   0x9   :  { %7091 = sst [smem:[#allocation59_spill]] %s6216_s13  ;;  %s6136_s20 = smov 11  }
   0xa   :  { %7092 = sst [smem:[#allocation60_spill]] %s6221_s17  ;;  %s6138_s1 = smov 13  }
   0xb   :  { %7093 = sst [smem:[#allocation61_spill]] %s6226_s21  ;;  %s6139_s7 = smov 14  }
   0xc   :  { %7094 = sst [smem:[#allocation62_spill]] %s6231_s25  ;;  %s6141_s22 = smov 16  }
   0xd   :  { %s6236_s29 = sld [smem:[%s7043_s0 + %s6131_s26]]   ;;  %s6137_s26 = smov 12  }
   0xe   :  { %s6241_s3 = sld [smem:[%s7043_s0 + %s6132_s30]]   ;;  %s6142_s28 = smov 17  }
   0xf   :  { %s6246_s8 = sld [smem:[%s7043_s0 + %s6133_s4]]  }
  0x10   :  { %s6251_s14 = sld [smem:[%s7043_s0 + %s6134_s10]]  }
  0x11   :  { %s6256_s19 = sld [smem:[%s7043_s0 + %s6135_s15]]   ;;  %s6140_s15 = smov 15  }
  0x12   :  { %s6261_s24 = sld [smem:[%s7043_s0 + %s6136_s20]]  }
  0x13   :  { %7095 = sst [smem:[#allocation63_spill]] %s6236_s29 }
  0x14   :  { %7096 = sst [smem:[#allocation64_spill]] %s6241_s3 }
  0x15   :  { %7097 = sst [smem:[#allocation65_spill]] %s6246_s8 }
  0x16   :  { %7098 = sst [smem:[#allocation66_spill]] %s6251_s14 }
  0x17   :  { %s6266_s30 = sld [smem:[%s7043_s0 + %s6137_s26]]  }
  0x18   :  { %7099 = sst [smem:[#allocation67_spill]] %s6261_s24 }
  0x19   :  { %s6271_s6 = sld [smem:[%s7043_s0 + %s6138_s1]]  }
  0x1a   :  { %s6276_s12 = sld [smem:[%s7043_s0 + %s6139_s7]]   ;;  %s6143_s7 = smov 18  }
  0x1b   :  { %s6281_s20 = sld [smem:[%s7043_s0 + %s6140_s15]]   ;;  %s6144_s15 = smov 19  }
  0x1c   :  { %s6286_s27 = sld [smem:[%s7043_s0 + %s6141_s22]]   ;;  %s6145_s22 = smov 20  }
  0x1d   :  { %7100 = sst [smem:[#allocation68_spill]] %s6266_s30 }
  0x1e   :  { %s6291_s4 = sld [smem:[%s7043_s0 + %s6142_s28]]   ;;  %s6146_s28 = smov 21  }
  0x1f   :  { %7101 = sst [smem:[#allocation69_spill]] %s6271_s6 }
  0x20   :  { %7102 = sst [smem:[#allocation70_spill]] %s6276_s12 }
  0x21   :  { %7103 = sst [smem:[#allocation71_spill]] %s6281_s20 }
  0x22   :  { %s6296_s12 = sld [smem:[%s7043_s0 + %s6143_s7]]   ;;  %s6147_s7 = smov 22  }
  0x23   :  { %s6301_s20 = sld [smem:[%s7043_s0 + %s6144_s15]]   ;;  %s6148_s15 = smov 23  }
  0x24   :  { %7104 = sst [smem:[#allocation72_spill]] %s6291_s4 }
  0x25   :  { %s6306_s6 = sld [smem:[%s7043_s0 + %s6145_s22]]   ;;  %s6149_s22 = smov 24  }
  0x26   :  { %s6311_s30 = sld [smem:[%s7043_s0 + %s6146_s28]]   ;;  %s6150_s28 = smov 25  }
  0x27   :  { %s6316_s24 = sld [smem:[%s7043_s0 + %s6147_s7]]   ;;  %s6151_s7 = smov 26  }
  0x28   :  { %7105 = sst [smem:[#allocation73_spill]] %s6296_s12 }
  0x29   :  { %7106 = sst [smem:[#allocation74_spill]] %s6301_s20 }
  0x2a   :  { %s6321_s20 = sld [smem:[%s7043_s0 + %s6148_s15]]   ;;  %s6152_s15 = smov 27  }
  0x2b   :  { %7107 = sst [smem:[#allocation75_spill]] %s6306_s6 }
  0x2c   :  { %s6326_s4 = sld [smem:[%s7043_s0 + %s6149_s22]]   ;;  %s6153_s22 = smov 28  }
  0x2d   :  { %7108 = sst [smem:[#allocation76_spill]] %s6316_s24 }
  0x2e   :  { %s6331_s14 = sld [smem:[%s7043_s0 + %s6150_s28]]   ;;  %s6154_s28 = smov 29  }
  0x2f   :  { %s6336_s3 = sld [smem:[%s7043_s0 + %s6151_s7]]   ;;  %s6155_s7 = smov 30  }
  0x30   :  { %s6341_s29 = sld [smem:[%s7043_s0 + %s6152_s15]]   ;;  %s6156_s15 = smov 31  }
  0x31   :  { %s6346_s25 = sld [smem:[%s7043_s0 + %s6153_s22]]   ;;  %s6157_s22 = smov 32  }
  0x32   :  { %7109 = sst [smem:[#allocation77_spill]] %s6326_s4 }
  0x33   :  { %s6351_s17 = sld [smem:[%s7043_s0 + %s6154_s28]]   ;;  %s6158_s28 = smov 33  }
  0x34   :  { %s6356_s9 = sld [smem:[%s7043_s0 + %s6155_s7]]   ;;  %s6159_s7 = smov 34  }
  0x35   :  { %7110 = sst [smem:[#allocation78_spill]] %s6336_s3 }
  0x36   :  { %s6361_s5 = sld [smem:[%s7043_s0 + %s6156_s15]]   ;;  %s6160_s15 = smov 35  }
  0x37   :  { %7111 = sst [smem:[#allocation79_spill]] %s6346_s25 }
  0x38   :  { %s6366_s25 = sld [smem:[%s7043_s0 + %s6157_s22]]   ;;  %s6161_s22 = smov 36  }
  0x39   :  { %s6371_s3 = sld [smem:[%s7043_s0 + %s6158_s28]]   ;;  %s6162_s28 = smov 37  }
  0x3a   :  { %7112 = sst [smem:[#allocation80_spill]] %s6356_s9 }
  0x3b   :  { %s6376_s9 = sld [smem:[%s7043_s0 + %s6159_s7]]   ;;  %s6163_s7 = smov 38  }
  0x3c   :  { %7113 = sst [smem:[#allocation81_spill]] %s6361_s5 }
  0x3d   :  { %s6381_s4 = sld [smem:[%s7043_s0 + %s6160_s15]]  }
  0x3e   :  { %7114 = sst [smem:[#allocation82_spill]] %s6366_s25 }
  0x3f   :  { %7115 = sst [smem:[#allocation83_spill]] %s6371_s3 }
  0x40   :  { %s6386_s25 = sld [smem:[%s7043_s0 + %s6161_s22]]  }
  0x41   :  { %7116 = sst [smem:[#allocation84_spill]] %s6376_s9 }
  0x42   :  { %s6391_s24 = sld [smem:[%s7043_s0 + %s6162_s28]]  }
  0x43   :  { %7117 = sst [smem:[#allocation85_spill]] %s6381_s4 }
  0x44   :  { %s6396_s9 = sld [smem:[%s7043_s0 + %s6163_s7]]  }
  0x4a   :  { %7118 = sst [smem:[#allocation86_spill]] %s6396_s9 }
  0x4b   :  { %82 = vsyncpa [#allocation3], 0 }
  0x4c   :  { %84 = vsyncpa [#allocation3 + $0x1], 0 }
  0x4d   :  { %85 = vsyncpa [#allocation6], 0 }
  0x4e   :  { %87 = vsyncpa [#allocation6 + $0x1], 0 }
  0x4f   :  { %88 = vsyncpa [#allocation9], 0 }
  0x50   :  { %89 = vsyncpa [#allocation12], 0 }
  0x51   :  { %90 = vsyncpa [#allocation15], 0 }
  0x52   :  { %91 = vsyncpa [#allocation18], 0 }
  0x53   :  { %92 = vsyncpa [#allocation21], 0 }
  0x54   :  { %93 = vsyncpa [#allocation24], 0 }
  0x55   :  { %94 = vsyncpa [#allocation27], 0 }
  0x56   :  { %95 = vsyncpa [#allocation30], 0 }
  0x57   :  { %96 = vsyncpa [#allocation33], 0 }
  0x58   :  { %97 = vsyncpa [#allocation36], 0 }
  0x59   :  { %98 = vsyncpa [#allocation39], 0 }
  0x5a   :  { %99 = vsyncpa [#allocation4], 0 }
  0x5b   :  { %101 = vsyncpa [#allocation4 + $0x1], 0  ;;  %s6398_s15 = smov 0   ;;  %s6400_s0 = smov 0  }
  0x5c   :  { %s6402_s16 = smov 0   ;;  %s6404_s18 = smov 0  }
  0x5d LB: > { %s7119_s13 = sld [smem:[#allocation59_spill]]  ;;  %s6419_s22 = sadd.s32 4294967295, %s6124_s18   ;;  %s6124_s18 = sphi %s6404_s18, %s7178_s18   ;;  %s6120_s16 = sphi %s6402_s16, %s7182_s16   ;;  %s6116_s0 = sphi %s6400_s0, %s7181_s0   ;;  %s6112_s15 = sphi %s6398_s15, %s7179_s15  }
  0x5e   : > { %s7120_s4 = sld [smem:[#allocation85_spill]]  ;;  %s4094_s23 = sadd.s32 4294967294, %s6124_s18  }
  0x5f   : > { %s7121_s12 = sld [smem:[#allocation73_spill]]  ;;  %s6423_s26 = sadd.s32 1, %s6124_s18  }
  0x60   : > { %s7122_s8 = sld [smem:[#allocation65_spill]]  ;;  %s114_s28 = sadd.s32 1, %s6120_s16 }
  0x61   : > { %s7123_s6 = sld [smem:[#allocation75_spill]]  ;;  %s111_s1 = ssub.s32 %s6124_s18, %s6423_s26 }
  0x62   : > { %s7124_s5 = sld [smem:[#allocation81_spill]]  ;;  %p121_p0 = scmp.ne.s32.totalorder %s6120_s16, %s6116_s0 }
  0x63   : > { %s7125_s3 = sld [smem:[#allocation83_spill]]  ;;  %p112_p1 = scmp.eq.s32.totalorder %s111_s1, 0 }
  0x64   : > { %s7126_s21 = sld [smem:[#allocation61_spill]]  ;;  %p122_p2 = scmp.eq.s32.totalorder %s6124_s18, 0 }
  0x65   : > { %7127 = sst [smem:[#allocation87_spill]] %s6112_s15  ;;  %p127_p3 = scmp.ne.s32.totalorder %s6116_s0, %s6112_s15 }
  0x66   : > { %7128 = sst [smem:[#allocation88_spill]] %s6116_s0  ;;  %p128_p4 = scmp.eq.s32.totalorder %s6419_s22, 0 }
  0x67   : > { %7129 = sst [smem:[#allocation89_spill]] %s6423_s26  ;;  %p6437_p5 = por %p122_p2, %p121_p0 }
  0x68   : > { %s6435_s2 = scalar_select %p112_p1, %s6120_s16, %s114_s28  }
  0x69   : > { %p6443_p6 = por %p128_p4, %p127_p3  ;;  %p933_p7 = scmp.eq.s32.totalorder %s6419_s22, 1 }
  0x6a   : > { %7130 = sst [smem:[#allocation90_spill]] %s6435_s2  ;;  %p939_p8 = scmp.eq.s32.totalorder %s4094_s23, 1 }
  0x6b   : > { %s7132_s10 = scalar_select %p6443_p6, 1, 0 }
  0x6c   : > { %p4095_p9 = scmp.ge.s32.totalorder %s6124_s18, 1  ;;  %p946_p10 = scmp.lt.s32.totalorder %s6124_s18, 3 }
  0x6d   : > { %7133 = sst [smem:[#allocation91_spill]] %s7132_s10  ;;  %p6450_p11 = por %p933_p7, %p121_p0 }
  0x6e   : > { %p6454_p12 = por %p939_p8, %p127_p3  ;;  %p6458_p13 = pnand %p4095_p9, %p946_p10 }
  0x6f   : > { %s7134_s11 = scalar_select %p6450_p11, 1, 0 }
  0x70   : > { %s7136_s28 = scalar_select %p6454_p12, 1, 0 }
  0x71   : > { %7135 = sst [smem:[#allocation92_spill]] %s7134_s11  ;;  %950 = sbr.rel (%p6458_p13) target bundleno = 421 (0x1a5), region = 12 }
  0x72   : > { %7137 = sst [smem:[#allocation93_spill]] %s7136_s28  ;;  %s974_s23 = sshll.u32 (!%p6458_p13), %s7126_s21, 4  ;;  %s975_s23 = int_to_ptr.hbm [resolvable:$true] %s974_s23 }
  0x73   : > { %s7138_s1 = scalar_select %p6458_p13, 1, 0 }
  0x74   : > { %s6164_s2 = smov (!%p6458_p13), [#allocation8]   ;;  %s1014_s15 = sshll.u32 (!%p6458_p13), %s6256_s19, 4  ;;  %s1015_s15 = int_to_ptr.hbm [resolvable:$true] %s1014_s15 }
  0x75   : > { %7139 = sst [smem:[#allocation94_spill]] %s7138_s1  ;;  %s976_s26 = sshll.u32 (!%p6458_p13), %s6164_s2, 4  ;;  %s977_s26 = int_to_ptr.vmem [resolvable:$true] %s976_s26 }
  0x76   : > { %s5302_s11 = sshra.s32 %s975_s23, 4  ;;  %s5308_s9 = scalar_lea.hbm %s7126_s21, 64  ;;  %s5303_s11 = int_to_ptr.hbm [resolvable:$true] %s5302_s11 }
  0x77   : > { %s5304_s28 = scalar_lea.hbm %s5303_s11, 64  ;;  %p5309_p3 = scmp.lt.s32.totalorder %s5303_s11, %s7126_s21 }
  0x78   : > { %p5305_p0 = scmp.ne.s32.totalorder %s5303_s11, %s5304_s28  ;;  %p5310_p7 = scmp.lt.s32.totalorder %s5308_s9, %s5304_s28 }
  0x7a   : > { %p5306_p1 = pnand %p5305_p0, %p128_p4  ;;  %p5311_p8 = por %p5310_p7, %p5309_p3 }
  0x7c   : > { %p5307_p2 = pneg %p5306_p1 }
  0x7e   : > { %p5312_p9 = pnand %p5311_p8, %p5307_p2 }
  0x80   : > { %5315 = shalt.err (!%p5312_p9)
}
  0x81   : > { %s7064_s10 = smov 64   ;;  %s7066_s2 = smov 4  }
  0x82   : > { %4970 = dma.hbm_to_vmem [thread:$0]  (%p128_p4), %s975_s23, 1024, %s977_s26, [#allocation9], %s7064_s10, %s7064_s10, %s7066_s2  }
  0x83   : > { %s6167_s0 = smov [#allocation11]   ;;  %s1060_s11 = sshll.u32 %s7121_s12, 4  ;;  %s6476_s11 = int_to_ptr.hbm [resolvable:$true] %s1060_s11 }
  0x84   : > { %s1016_s1 = sshll.u32 %s6167_s0, 4  ;;  %s5330_s9 = sshra.s32 %s1015_s15, 4  ;;  %s1017_s1 = int_to_ptr.vmem [resolvable:$true] %s1016_s1  ;;  %s5331_s9 = int_to_ptr.hbm [resolvable:$true] %s5330_s9 }
  0x85   : > { %s5332_s28 = scalar_lea.hbm %s5331_s9, 128  ;;  %s5336_s21 = scalar_lea.hbm %s6256_s19, 128 }
  0x86   : > { %p5333_p10 = scmp.ne.s32.totalorder %s5331_s9, %s5332_s28  ;;  %p5337_p2 = scmp.lt.s32.totalorder %s5331_s9, %s6256_s19 }
  0x87   : > { %p5338_p3 = scmp.lt.s32.totalorder %s5336_s21, %s5332_s28 }
  0x88   : > { %p5334_p0 = pnand %p5333_p10, %p128_p4 }
  0x89   : > { %p5339_p7 = por %p5338_p3, %p5337_p2 }
  0x8a   : > { %p5335_p1 = pneg %p5334_p0 }
  0x8c   : > { %p5340_p8 = pnand %p5339_p7, %p5335_p1 }
  0x8e   : > { %5343 = shalt.err (!%p5340_p8)
}
  0x8f   : > { %4974 = dma.hbm_to_vmem [thread:$0]  (%p128_p4), %s1015_s15, 2048, %s1017_s1, [#allocation12], %s7064_s10, %s7064_s10, %s7066_s2  }
  0x90   : > { %s1090_s0 = sshll.u32 %s6311_s30, 4  ;;  %s6168_s26 = smov [#allocation14]   ;;  %s6488_s0 = int_to_ptr.hbm [resolvable:$true] %s1090_s0 }
  0x91   : > { %s1062_s23 = sshll.u32 %s6168_s26, 4  ;;  %s5358_s21 = sshra.s32 %s6476_s11, 4  ;;  %s1063_s23 = int_to_ptr.vmem [resolvable:$true] %s1062_s23  ;;  %s5359_s21 = int_to_ptr.hbm [resolvable:$true] %s5358_s21 }
  0x92   : > { %s5360_s9 = scalar_lea.hbm %s5359_s21, 64  ;;  %s5364_s28 = scalar_lea.hbm %s7121_s12, 64 }
  0x93   : > { %p5361_p9 = scmp.ne.s32.totalorder %s5359_s21, %s5360_s9  ;;  %p5365_p1 = scmp.lt.s32.totalorder %s5359_s21, %s7121_s12 }
  0x94   : > { %p5366_p2 = scmp.lt.s32.totalorder %s5364_s28, %s5360_s9 }
  0x95   : > { %p5362_p10 = pnand %p5361_p9, %p128_p4 }
  0x96   : > { %p5367_p3 = por %p5366_p2, %p5365_p1 }
  0x97   : > { %p5363_p0 = pneg %p5362_p10 }
  0x99   : > { %p5368_p7 = pnand %p5367_p3, %p5363_p0 }
  0x9b   : > { %5371 = shalt.err (!%p5368_p7)
}
  0x9c   : > { %4978 = dma.hbm_to_vmem [thread:$0]  (%p128_p4), %s6476_s11, 1024, %s1063_s23, [#allocation15], %s7064_s10, %s7064_s10, %s7066_s2  }
  0x9d   : > { %s6169_s15 = smov [#allocation17]   ;;  %s1116_s26 = sshll.u32 %s6321_s20, 4  ;;  %s6502_s26 = int_to_ptr.hbm [resolvable:$true] %s1116_s26 }
  0x9e   : > { %s1092_s1 = sshll.u32 %s6169_s15, 4  ;;  %s5386_s21 = sshra.s32 %s6488_s0, 4  ;;  %s1093_s1 = int_to_ptr.vmem [resolvable:$true] %s1092_s1  ;;  %s5387_s21 = int_to_ptr.hbm [resolvable:$true] %s5386_s21 }
  0x9f   : > { %s5388_s9 = scalar_lea.hbm %s5387_s21, 1  ;;  %s5392_s28 = scalar_lea.hbm %s6311_s30, 1 }
  0xa0   : > { %p5389_p8 = scmp.ne.s32.totalorder %s5387_s21, %s5388_s9  ;;  %p5393_p0 = scmp.lt.s32.totalorder %s5387_s21, %s6311_s30 }
  0xa1   : > { %p5394_p1 = scmp.lt.s32.totalorder %s5392_s28, %s5388_s9 }
  0xa2   : > { %p5390_p9 = pnand %p5389_p8, %p128_p4 }
  0xa3   : > { %p5395_p2 = por %p5394_p1, %p5393_p0 }
  0xa4   : > { %p5391_p10 = pneg %p5390_p9 }
  0xa6   : > { %p5396_p3 = pnand %p5395_p2, %p5391_p10 }
  0xa8   : > { %5399 = shalt.err (!%p5396_p3)
}
  0xa9   : > { %4982 = dma.hbm_to_vmem [thread:$0]  (%p128_p4), %s6488_s0, 16, %s1093_s1, [#allocation18]  }
  0xaa   : > { %s1142_s11 = sshll.u32 %s6331_s14, 4  ;;  %s6170_s23 = smov [#allocation20]   ;;  %s6513_s11 = int_to_ptr.hbm [resolvable:$true] %s1142_s11 }
  0xab   : > { %s1118_s15 = sshll.u32 %s6170_s23, 4  ;;  %s5414_s21 = sshra.s32 %s6502_s26, 4  ;;  %s1119_s15 = int_to_ptr.vmem [resolvable:$true] %s1118_s15  ;;  %s5415_s21 = int_to_ptr.hbm [resolvable:$true] %s5414_s21 }
  0xac   : > { %s5416_s9 = scalar_lea.hbm %s5415_s21, 1  ;;  %s5420_s28 = scalar_lea.hbm %s6321_s20, 1 }
  0xad   : > { %p5417_p7 = scmp.ne.s32.totalorder %s5415_s21, %s5416_s9  ;;  %p5421_p10 = scmp.lt.s32.totalorder %s5415_s21, %s6321_s20 }
  0xae   : > { %p5422_p0 = scmp.lt.s32.totalorder %s5420_s28, %s5416_s9 }
  0xaf   : > { %p5418_p8 = pnand %p5417_p7, %p128_p4 }
  0xb0   : > { %p5423_p1 = por %p5422_p0, %p5421_p10 }
  0xb1   : > { %p5419_p9 = pneg %p5418_p8 }
  0xb3   : > { %p5424_p2 = pnand %p5423_p1, %p5419_p9 }
  0xb5   : > { %5427 = shalt.err (!%p5424_p2)
}
  0xb6   : > { %4986 = dma.hbm_to_vmem [thread:$0]  (%p128_p4), %s6502_s26, 16, %s1119_s15, [#allocation21]  }
  0xb7   : > { %s6171_s0 = smov [#allocation23]   ;;  %s1168_s23 = sshll.u32 %s6341_s29, 4  ;;  %s6524_s23 = int_to_ptr.hbm [resolvable:$true] %s1168_s23 }
  0xb8   : > { %s1144_s1 = sshll.u32 %s6171_s0, 4  ;;  %s5442_s21 = sshra.s32 %s6513_s11, 4  ;;  %s1145_s1 = int_to_ptr.vmem [resolvable:$true] %s1144_s1  ;;  %s5443_s21 = int_to_ptr.hbm [resolvable:$true] %s5442_s21 }
  0xb9   : > { %s5444_s9 = scalar_lea.hbm %s5443_s21, 2  ;;  %s5448_s28 = scalar_lea.hbm %s6331_s14, 2 }
  0xba   : > { %p5445_p3 = scmp.ne.s32.totalorder %s5443_s21, %s5444_s9  ;;  %p5449_p9 = scmp.lt.s32.totalorder %s5443_s21, %s6331_s14 }
  0xbb   : > { %p5450_p10 = scmp.lt.s32.totalorder %s5448_s28, %s5444_s9 }
  0xbc   : > { %p5446_p7 = pnand %p5445_p3, %p128_p4 }
  0xbd   : > { %p5451_p0 = por %p5450_p10, %p5449_p9 }
  0xbe   : > { %p5447_p8 = pneg %p5446_p7 }
  0xc0   : > { %p5452_p1 = pnand %p5451_p0, %p5447_p8 }
  0xc2   : > { %5455 = shalt.err (!%p5452_p1)
}
  0xc3   : > { %4990 = dma.hbm_to_vmem [thread:$0]  (%p128_p4), %s6513_s11, 32, %s1145_s1, [#allocation24]  }
  0xc4   : > { %s1192_s26 = sshll.u32 %s6351_s17, 4  ;;  %s6172_s15 = smov [#allocation26]   ;;  %s6535_s26 = int_to_ptr.hbm [resolvable:$true] %s1192_s26 }
  0xc5   : > { %s1170_s0 = sshll.u32 %s6172_s15, 4  ;;  %s5470_s21 = sshra.s32 %s6524_s23, 4  ;;  %s1171_s0 = int_to_ptr.vmem [resolvable:$true] %s1170_s0  ;;  %s5471_s21 = int_to_ptr.hbm [resolvable:$true] %s5470_s21 }
  0xc6   : > { %s5472_s9 = scalar_lea.hbm %s5471_s21, 1  ;;  %s5476_s28 = scalar_lea.hbm %s6341_s29, 1 }
  0xc7   : > { %p5473_p2 = scmp.ne.s32.totalorder %s5471_s21, %s5472_s9  ;;  %p5477_p8 = scmp.lt.s32.totalorder %s5471_s21, %s6341_s29 }
  0xc8   : > { %p5478_p9 = scmp.lt.s32.totalorder %s5476_s28, %s5472_s9 }
  0xc9   : > { %p5474_p3 = pnand %p5473_p2, %p128_p4 }
  0xca   : > { %p5479_p10 = por %p5478_p9, %p5477_p8 }
  0xcb   : > { %p5475_p7 = pneg %p5474_p3 }
  0xcd   : > { %p5480_p0 = pnand %p5479_p10, %p5475_p7 }
  0xcf   : > { %5483 = shalt.err (!%p5480_p0)
}
  0xd0   : > { %4994 = dma.hbm_to_vmem [thread:$0]  (%p128_p4), %s6524_s23, 16, %s1171_s0, [#allocation27]  }
  0xd1   : > { %s6173_s11 = smov [#allocation29]   ;;  %s1218_s15 = sshll.u32 %s7124_s5, 4  ;;  %s6546_s15 = int_to_ptr.hbm [resolvable:$true] %s1218_s15 }
  0xd2   : > { %s1194_s1 = sshll.u32 %s6173_s11, 4  ;;  %s5498_s21 = sshra.s32 %s6535_s26, 4  ;;  %s1195_s1 = int_to_ptr.vmem [resolvable:$true] %s1194_s1  ;;  %s5499_s21 = int_to_ptr.hbm [resolvable:$true] %s5498_s21 }
  0xd3   : > { %s5500_s9 = scalar_lea.hbm %s5499_s21, 1  ;;  %s5504_s28 = scalar_lea.hbm %s6351_s17, 1 }
  0xd4   : > { %p5501_p1 = scmp.ne.s32.totalorder %s5499_s21, %s5500_s9  ;;  %p5505_p7 = scmp.lt.s32.totalorder %s5499_s21, %s6351_s17 }
  0xd5   : > { %p5506_p8 = scmp.lt.s32.totalorder %s5504_s28, %s5500_s9 }
  0xd6   : > { %p5502_p2 = pnand %p5501_p1, %p128_p4 }
  0xd7   : > { %p5507_p9 = por %p5506_p8, %p5505_p7 }
  0xd8   : > { %p5503_p3 = pneg %p5502_p2 }
  0xda   : > { %p5508_p10 = pnand %p5507_p9, %p5503_p3 }
  0xdc   : > { %5511 = shalt.err (!%p5508_p10)
}
  0xdd   : > { %4998 = dma.hbm_to_vmem [thread:$0]  (%p128_p4), %s6535_s26, 16, %s1195_s1, [#allocation30]  }
  0xde   : > { %s1244_s23 = sshll.u32 %s7125_s3, 4  ;;  %s6174_s0 = smov [#allocation32]   ;;  %s6557_s23 = int_to_ptr.hbm [resolvable:$true] %s1244_s23 }
  0xdf   : > { %s1220_s11 = sshll.u32 %s6174_s0, 4  ;;  %s5526_s21 = sshra.s32 %s6546_s15, 4  ;;  %s1221_s11 = int_to_ptr.vmem [resolvable:$true] %s1220_s11  ;;  %s5527_s21 = int_to_ptr.hbm [resolvable:$true] %s5526_s21 }
  0xe0   : > { %s5528_s9 = scalar_lea.hbm %s5527_s21, 2  ;;  %s5532_s28 = scalar_lea.hbm %s7124_s5, 2 }
  0xe1   : > { %p5529_p0 = scmp.ne.s32.totalorder %s5527_s21, %s5528_s9  ;;  %p5533_p3 = scmp.lt.s32.totalorder %s5527_s21, %s7124_s5 }
  0xe2   : > { %p5534_p7 = scmp.lt.s32.totalorder %s5532_s28, %s5528_s9 }
  0xe3   : > { %p5530_p1 = pnand %p5529_p0, %p128_p4 }
  0xe4   : > { %p5535_p8 = por %p5534_p7, %p5533_p3 }
  0xe5   : > { %p5531_p2 = pneg %p5530_p1 }
  0xe7   : > { %p5536_p9 = pnand %p5535_p8, %p5531_p2 }
  0xe9   : > { %5539 = shalt.err (!%p5536_p9)
}
  0xea   : > { %5002 = dma.hbm_to_vmem [thread:$0]  (%p128_p4), %s6546_s15, 32, %s1221_s11, [#allocation33]  }
  0xeb   : > { %s6175_s26 = smov [#allocation35]   ;;  %s1271_s0 = sshll.u32 %s6386_s25, 4  ;;  %s6568_s0 = int_to_ptr.hbm [resolvable:$true] %s1271_s0 }
  0xec   : > { %s1246_s1 = sshll.u32 %s6175_s26, 4  ;;  %s5554_s21 = sshra.s32 %s6557_s23, 4  ;;  %s1247_s1 = int_to_ptr.vmem [resolvable:$true] %s1246_s1  ;;  %s5555_s21 = int_to_ptr.hbm [resolvable:$true] %s5554_s21 }
  0xed   : > { %s5556_s9 = scalar_lea.hbm %s5555_s21, 1  ;;  %s5560_s28 = scalar_lea.hbm %s7125_s3, 1 }
  0xee   : > { %p5557_p10 = scmp.ne.s32.totalorder %s5555_s21, %s5556_s9  ;;  %p5561_p2 = scmp.lt.s32.totalorder %s5555_s21, %s7125_s3 }
  0xef   : > { %p5562_p3 = scmp.lt.s32.totalorder %s5560_s28, %s5556_s9 }
  0xf0   : > { %p5558_p0 = pnand %p5557_p10, %p128_p4 }
  0xf1   : > { %p5563_p7 = por %p5562_p3, %p5561_p2 }
  0xf2   : > { %p5559_p1 = pneg %p5558_p0 }
  0xf4   : > { %p5564_p8 = pnand %p5563_p7, %p5559_p1 }
  0xf6   : > { %5567 = shalt.err (!%p5564_p8)
}
  0xf7   : > { %5006 = dma.hbm_to_vmem [thread:$0]  (%p128_p4), %s6557_s23, 16, %s1247_s1, [#allocation36]  }
  0xf8   : > { %s6176_s15 = smov [#allocation38]   ;;  %s957_s26 = sshll.u32 %s7119_s13, 4  ;;  %s6579_s26 = int_to_ptr.hbm [resolvable:$true] %s957_s26 }
  0xf9   : > { %s1273_s11 = sshll.u32 %s6176_s15, 4  ;;  %s5582_s21 = sshra.s32 %s6568_s0, 4  ;;  %s1274_s11 = int_to_ptr.vmem [resolvable:$true] %s1273_s11  ;;  %s5583_s21 = int_to_ptr.hbm [resolvable:$true] %s5582_s21 }
  0xfa   : > { %s5584_s9 = scalar_lea.hbm %s5583_s21, 1  ;;  %s5588_s28 = scalar_lea.hbm %s6386_s25, 1 }
  0xfb   : > { %p5585_p9 = scmp.ne.s32.totalorder %s5583_s21, %s5584_s9  ;;  %p5589_p1 = scmp.lt.s32.totalorder %s5583_s21, %s6386_s25 }
  0xfc   : > { %p5590_p2 = scmp.lt.s32.totalorder %s5588_s28, %s5584_s9 }
  0xfd   : > { %p5586_p10 = pnand %p5585_p9, %p128_p4 }
  0xfe   : > { %p5591_p3 = por %p5590_p2, %p5589_p1 }
  0xff   : > { %p5587_p0 = pneg %p5586_p10 }
 0x101   : > { %p5592_p7 = pnand %p5591_p3, %p5587_p0 }
 0x103   : > { %5595 = shalt.err (!%p5592_p7)
}
 0x104   : > { %5010 = dma.hbm_to_vmem [thread:$0]  (%p128_p4), %s6568_s0, 16, %s1274_s11, [#allocation39]  }
 0x105   : > { %s6177_s23 = smov [#allocation7]   ;;  %s997_s15 = sshll.u32 %s7122_s8, 4  ;;  %s998_s15 = int_to_ptr.hbm [resolvable:$true] %s997_s15 }
 0x106   : > { %s959_s1 = sshll.u32 %s6177_s23, 4  ;;  %s5610_s10 = sshra.s32 %s6579_s26, 4  ;;  %s960_s1 = int_to_ptr.vmem [resolvable:$true] %s959_s1  ;;  %s5611_s10 = int_to_ptr.hbm [resolvable:$true] %s5610_s10 }
 0x107   : > { %s5612_s21 = scalar_lea.hbm %s5611_s10, 192  ;;  %s5616_s9 = scalar_lea.hbm %s7119_s13, 192 }
 0x108   : > { %p5613_p8 = scmp.ne.s32.totalorder %s5611_s10, %s5612_s21  ;;  %p5617_p0 = scmp.lt.s32.totalorder %s5611_s10, %s7119_s13 }
 0x109   : > { %p5618_p1 = scmp.lt.s32.totalorder %s5616_s9, %s5612_s21 }
 0x10a   : > { %p5614_p9 = pnand %p5613_p8, %p128_p4 }
 0x10b   : > { %p5619_p2 = por %p5618_p1, %p5617_p0 }
 0x10c   : > { %p5615_p10 = pneg %p5614_p9 }
 0x10e   : > { %p5620_p3 = pnand %p5619_p2, %p5615_p10 }
 0x110   : > { %5623 = shalt.err (!%p5620_p3)
}
 0x111   : > { %s7068_s28 = smov 192   ;;  %s7069_s0 = smov 12  }
 0x112   : > { %4968 = dma.hbm_to_vmem [thread:$0]  (%p128_p4), %s6579_s26, 3072, %s960_s1, [#allocation6], %s7068_s28, %s7068_s28, %s7069_s0  }
 0x113   : > { %s6180_s11 = smov [#allocation10]   ;;  %s5638_s10 = sshra.s32 %s998_s15, 4  ;;  %s5639_s10 = int_to_ptr.hbm [resolvable:$true] %s5638_s10 }
 0x114   : > { %s999_s23 = sshll.u32 %s6180_s11, 4  ;;  %s5640_s21 = scalar_lea.hbm %s5639_s10, 128  ;;  %s1000_s23 = int_to_ptr.vmem [resolvable:$true] %s999_s23 }
 0x115   : > { %p5641_p7 = scmp.ne.s32.totalorder %s5639_s10, %s5640_s21  ;;  %s5644_s9 = scalar_lea.hbm %s7122_s8, 128 }
 0x116   : > { %p5645_p10 = scmp.lt.s32.totalorder %s5639_s10, %s7122_s8  ;;  %p5646_p0 = scmp.lt.s32.totalorder %s5644_s9, %s5640_s21 }
 0x117   : > { %p5642_p8 = pnand %p5641_p7, %p128_p4 }
 0x118   : > { %p5647_p1 = por %p5646_p0, %p5645_p10 }
 0x119   : > { %p5643_p9 = pneg %p5642_p8 }
 0x11b   : > { %p5648_p2 = pnand %p5647_p1, %p5643_p9 }
 0x11d   : > { %5651 = shalt.err (!%p5648_p2)
}
 0x11e   : > { %s7070_s2 = smov 128   ;;  %s7072_s26 = smov 8  }
 0x11f   : > { %4972 = dma.hbm_to_vmem [thread:$0]  (%p128_p4), %s998_s15, 2048, %s1000_s23, [#allocation9], %s7070_s2, %s7070_s2, %s7072_s26  }
 0x120   : > { %s1043_s1 = sshll.u32 %s6286_s27, 4  ;;  %s6183_s11 = smov [#allocation13]   ;;  %s1044_s1 = int_to_ptr.hbm [resolvable:$true] %s1043_s1 }
 0x121   : > { %s1045_s10 = sshll.u32 %s6183_s11, 4  ;;  %s1078_s21 = sshll.u32 %s7123_s6, 4  ;;  %s1046_s10 = int_to_ptr.vmem [resolvable:$true] %s1045_s10  ;;  %s1079_s21 = int_to_ptr.hbm [resolvable:$true] %s1078_s21 }
 0x122   : > { %s5666_s9 = sshra.s32 %s1044_s1, 4  ;;  %s5672_s0 = scalar_lea.hbm %s6286_s27, 192  ;;  %s5667_s9 = int_to_ptr.hbm [resolvable:$true] %s5666_s9 }
 0x123   : > { %s5668_s28 = scalar_lea.hbm %s5667_s9, 192  ;;  %p5673_p9 = scmp.lt.s32.totalorder %s5667_s9, %s6286_s27 }
 0x124   : > { %p5669_p3 = scmp.ne.s32.totalorder %s5667_s9, %s5668_s28  ;;  %p5674_p10 = scmp.lt.s32.totalorder %s5672_s0, %s5668_s28 }
 0x126   : > { %p5670_p7 = pnand %p5669_p3, %p128_p4  ;;  %p5675_p0 = por %p5674_p10, %p5673_p9 }
 0x128   : > { %p5671_p8 = pneg %p5670_p7 }
 0x12a   : > { %p5676_p1 = pnand %p5675_p0, %p5671_p8 }
 0x12c   : > { %5679 = shalt.err (!%p5676_p1)
}
 0x12d   : > { %s7140_s15 = smov 12   ;;  %s7141_s23 = smov 192  }
 0x12e   : > { %s7142_s11 = sld [smem:[#allocation76_spill]]  ;;  %s6184_s2 = smov [#allocation16]  }
 0x12f   : > { %4976 = dma.hbm_to_vmem [thread:$0]  (%p128_p4), %s1044_s1, 3072, %s1046_s10, [#allocation12], %s7141_s23, %s7141_s23, %s7140_s15  }
 0x130   : > { %s1080_s26 = sshll.u32 %s6184_s2, 4  ;;  %s5694_s28 = sshra.s32 %s1079_s21, 4  ;;  %s1081_s26 = int_to_ptr.vmem [resolvable:$true] %s1080_s26  ;;  %s5695_s28 = int_to_ptr.hbm [resolvable:$true] %s5694_s28 }
 0x131   : > { %s5696_s0 = scalar_lea.hbm %s5695_s28, 1  ;;  %s5700_s9 = scalar_lea.hbm %s7123_s6, 1 }
 0x132   : > { %p5697_p2 = scmp.ne.s32.totalorder %s5695_s28, %s5696_s0  ;;  %p5701_p8 = scmp.lt.s32.totalorder %s5695_s28, %s7123_s6 }
 0x133   : > { %p5702_p9 = scmp.lt.s32.totalorder %s5700_s9, %s5696_s0 }
 0x134   : > { %s1101_s3 = sshll.u32 %s7142_s11, 4  ;;  %p5698_p3 = pnand %p5697_p2, %p128_p4  ;;  %s6622_s3 = int_to_ptr.hbm [resolvable:$true] %s1101_s3 }
 0x135   : > { %p5703_p10 = por %p5702_p9, %p5701_p8 }
 0x136   : > { %p5699_p7 = pneg %p5698_p3 }
 0x138   : > { %p5704_p0 = pnand %p5703_p10, %p5699_p7 }
 0x13a   : > { %5707 = shalt.err (!%p5704_p0)
}
 0x13b   : > { %s7143_s2 = sld [smem:[#allocation77_spill]]  ;;  %s6185_s10 = smov [#allocation19]  }
 0x13c   : > { %4980 = dma.hbm_to_vmem [thread:$0]  (%p128_p4), %s1079_s21, 16, %s1081_s26, [#allocation15]  }
 0x13d   : > { %s1103_s15 = sshll.u32 %s6185_s10, 4  ;;  %s5722_s23 = sshra.s32 %s6622_s3, 4  ;;  %s1104_s15 = int_to_ptr.vmem [resolvable:$true] %s1103_s15  ;;  %s5723_s23 = int_to_ptr.hbm [resolvable:$true] %s5722_s23 }
 0x13e   : > { %s5724_s28 = scalar_lea.hbm %s5723_s23, 64  ;;  %s5728_s0 = scalar_lea.hbm %s7142_s11, 64 }
 0x13f   : > { %p5725_p1 = scmp.ne.s32.totalorder %s5723_s23, %s5724_s28  ;;  %p5729_p7 = scmp.lt.s32.totalorder %s5723_s23, %s7142_s11 }
 0x140   : > { %p5730_p8 = scmp.lt.s32.totalorder %s5728_s0, %s5724_s28 }
 0x141   : > { %s1127_s1 = sshll.u32 %s7143_s2, 4  ;;  %p5726_p2 = pnand %p5725_p1, %p128_p4  ;;  %s6631_s1 = int_to_ptr.hbm [resolvable:$true] %s1127_s1 }
 0x142   : > { %p5731_p9 = por %p5730_p8, %p5729_p7 }
 0x143   : > { %p5727_p3 = pneg %p5726_p2 }
 0x145   : > { %p5732_p10 = pnand %p5731_p9, %p5727_p3 }
 0x147   : > { %5735 = shalt.err (!%p5732_p10)
}
 0x148   : > { %s7144_s26 = smov 4   ;;  %s7145_s21 = smov 64  }
 0x149   : > { %s7146_s9 = sld [smem:[#allocation78_spill]]  ;;  %s6186_s10 = smov [#allocation22]  }
 0x14a   : > { %4984 = dma.hbm_to_vmem [thread:$0]  (%p128_p4), %s6622_s3, 1024, %s1104_s15, [#allocation18], %s7145_s21, %s7145_s21, %s7144_s26  }
 0x14b   : > { %s1129_s5 = sshll.u32 %s6186_s10, 4  ;;  %s5750_s23 = sshra.s32 %s6631_s1, 4  ;;  %s1130_s5 = int_to_ptr.vmem [resolvable:$true] %s1129_s5  ;;  %s5751_s23 = int_to_ptr.hbm [resolvable:$true] %s5750_s23 }
 0x14c   : > { %s5752_s28 = scalar_lea.hbm %s5751_s23, 128  ;;  %s5756_s0 = scalar_lea.hbm %s7143_s2, 128 }
 0x14d   : > { %p5753_p0 = scmp.ne.s32.totalorder %s5751_s23, %s5752_s28  ;;  %p5757_p3 = scmp.lt.s32.totalorder %s5751_s23, %s7143_s2 }
 0x14e   : > { %p5758_p7 = scmp.lt.s32.totalorder %s5756_s0, %s5752_s28 }
 0x14f   : > { %s1153_s6 = sshll.u32 %s7146_s9, 4  ;;  %p5754_p1 = pnand %p5753_p0, %p128_p4  ;;  %s6645_s6 = int_to_ptr.hbm [resolvable:$true] %s1153_s6 }
 0x150   : > { %p5759_p8 = por %p5758_p7, %p5757_p3 }
 0x151   : > { %p5755_p2 = pneg %p5754_p1 }
 0x153   : > { %p5760_p9 = pnand %p5759_p8, %p5755_p2 }
 0x155   : > { %5763 = shalt.err (!%p5760_p9)
}
 0x156   : > { %s7147_s3 = smov 8   ;;  %s7148_s15 = smov 128  }
 0x157   : > { %s7149_s10 = sld [smem:[#allocation79_spill]]  ;;  %s6187_s11 = smov [#allocation25]  }
 0x158   : > { %4988 = dma.hbm_to_vmem [thread:$0]  (%p128_p4), %s6631_s1, 2048, %s1130_s5, [#allocation21], %s7148_s15, %s7148_s15, %s7147_s3  }
 0x159   : > { %s1155_s12 = sshll.u32 %s6187_s11, 4  ;;  %s5778_s23 = sshra.s32 %s6645_s6, 4  ;;  %s1156_s12 = int_to_ptr.vmem [resolvable:$true] %s1155_s12  ;;  %s5779_s23 = int_to_ptr.hbm [resolvable:$true] %s5778_s23 }
 0x15a   : > { %s5780_s28 = scalar_lea.hbm %s5779_s23, 64  ;;  %s5784_s0 = scalar_lea.hbm %s7146_s9, 64 }
 0x15b   : > { %p5781_p10 = scmp.ne.s32.totalorder %s5779_s23, %s5780_s28  ;;  %p5785_p2 = scmp.lt.s32.totalorder %s5779_s23, %s7146_s9 }
 0x15c   : > { %p5786_p3 = scmp.lt.s32.totalorder %s5784_s0, %s5780_s28 }
 0x15d   : > { %s1180_s8 = sshll.u32 %s7149_s10, 4  ;;  %p5782_p0 = pnand %p5781_p10, %p128_p4  ;;  %s6659_s8 = int_to_ptr.hbm [resolvable:$true] %s1180_s8 }
 0x15e   : > { %p5787_p7 = por %p5786_p3, %p5785_p2 }
 0x15f   : > { %p5783_p1 = pneg %p5782_p0 }
 0x161   : > { %p5788_p8 = pnand %p5787_p7, %p5783_p1 }
 0x163   : > { %5791 = shalt.err (!%p5788_p8)
}
 0x164   : > { %s7150_s5 = sld [smem:[#allocation80_spill]]  ;;  %s6188_s11 = smov [#allocation28]  }
 0x165   : > { %4992 = dma.hbm_to_vmem [thread:$0]  (%p128_p4), %s6645_s6, 1024, %s1156_s12, [#allocation24], %s7145_s21, %s7145_s21, %s7144_s26  }
 0x166   : > { %s1182_s1 = sshll.u32 %s6188_s11, 4  ;;  %s5806_s23 = sshra.s32 %s6659_s8, 4  ;;  %s1183_s1 = int_to_ptr.vmem [resolvable:$true] %s1182_s1  ;;  %s5807_s23 = int_to_ptr.hbm [resolvable:$true] %s5806_s23 }
 0x167   : > { %s5808_s28 = scalar_lea.hbm %s5807_s23, 1  ;;  %s5812_s0 = scalar_lea.hbm %s7149_s10, 1 }
 0x168   : > { %p5809_p9 = scmp.ne.s32.totalorder %s5807_s23, %s5808_s28  ;;  %p5813_p1 = scmp.lt.s32.totalorder %s5807_s23, %s7149_s10 }
 0x169   : > { %p5814_p2 = scmp.lt.s32.totalorder %s5812_s0, %s5808_s28 }
 0x16a   : > { %s1203_s2 = sshll.u32 %s7150_s5, 4  ;;  %p5810_p10 = pnand %p5809_p9, %p128_p4  ;;  %s6673_s2 = int_to_ptr.hbm [resolvable:$true] %s1203_s2 }
 0x16b   : > { %p5815_p3 = por %p5814_p2, %p5813_p1 }
 0x16c   : > { %p5811_p0 = pneg %p5810_p10 }
 0x16e   : > { %p5816_p7 = pnand %p5815_p3, %p5811_p0 }
 0x170   : > { %5819 = shalt.err (!%p5816_p7)
}
 0x171   : > { %s7151_s6 = sld [smem:[#allocation82_spill]]  ;;  %s6189_s11 = smov [#allocation31]  }
 0x172   : > { %4996 = dma.hbm_to_vmem [thread:$0]  (%p128_p4), %s6659_s8, 16, %s1183_s1, [#allocation27]  }
 0x173   : > { %s1205_s9 = sshll.u32 %s6189_s11, 4  ;;  %s5834_s23 = sshra.s32 %s6673_s2, 4  ;;  %s1206_s9 = int_to_ptr.vmem [resolvable:$true] %s1205_s9  ;;  %s5835_s23 = int_to_ptr.hbm [resolvable:$true] %s5834_s23 }
 0x174   : > { %s5836_s28 = scalar_lea.hbm %s5835_s23, 128  ;;  %s5840_s0 = scalar_lea.hbm %s7150_s5, 128 }
 0x175   : > { %p5837_p8 = scmp.ne.s32.totalorder %s5835_s23, %s5836_s28  ;;  %p5841_p0 = scmp.lt.s32.totalorder %s5835_s23, %s7150_s5 }
 0x176   : > { %p5842_p1 = scmp.lt.s32.totalorder %s5840_s0, %s5836_s28 }
 0x177   : > { %s1229_s12 = sshll.u32 %s7151_s6, 4  ;;  %p5838_p9 = pnand %p5837_p8, %p128_p4  ;;  %s6684_s12 = int_to_ptr.hbm [resolvable:$true] %s1229_s12 }
 0x178   : > { %p5843_p2 = por %p5842_p1, %p5841_p0 }
 0x179   : > { %p5839_p10 = pneg %p5838_p9 }
 0x17b   : > { %p5844_p3 = pnand %p5843_p2, %p5839_p10 }
 0x17d   : > { %5847 = shalt.err (!%p5844_p3)
}
 0x17e   : > { %5000 = dma.hbm_to_vmem [thread:$0]  (%p128_p4), %s6673_s2, 2048, %s1206_s9, [#allocation30], %s7148_s15, %s7148_s15, %s7147_s3  }
 0x17f   : > { %s6190_s8 = smov [#allocation34]   ;;  %s1259_s11 = sshll.u32 %s7120_s4, 4  ;;  %s6698_s11 = int_to_ptr.hbm [resolvable:$true] %s1259_s11 }
 0x180   : > { %s1231_s1 = sshll.u32 %s6190_s8, 4  ;;  %s5862_s23 = sshra.s32 %s6684_s12, 4  ;;  %s1232_s1 = int_to_ptr.vmem [resolvable:$true] %s1231_s1  ;;  %s5863_s23 = int_to_ptr.hbm [resolvable:$true] %s5862_s23 }
 0x181   : > { %s5864_s28 = scalar_lea.hbm %s5863_s23, 128  ;;  %s5868_s0 = scalar_lea.hbm %s7151_s6, 128 }
 0x182   : > { %p5865_p7 = scmp.ne.s32.totalorder %s5863_s23, %s5864_s28  ;;  %p5869_p10 = scmp.lt.s32.totalorder %s5863_s23, %s7151_s6 }
 0x183   : > { %p5870_p0 = scmp.lt.s32.totalorder %s5868_s0, %s5864_s28 }
 0x184   : > { %p5866_p8 = pnand %p5865_p7, %p128_p4 }
 0x185   : > { %p5871_p1 = por %p5870_p0, %p5869_p10 }
 0x186   : > { %p5867_p9 = pneg %p5866_p8 }
 0x188   : > { %p5872_p2 = pnand %p5871_p1, %p5867_p9 }
 0x18a   : > { %5875 = shalt.err (!%p5872_p2)
}
 0x18b   : > { %5004 = dma.hbm_to_vmem [thread:$0]  (%p128_p4), %s6684_s12, 2048, %s1232_s1, [#allocation33], %s7145_s21, %s7145_s21, %s7144_s26  }
 0x18c   : > { %s1283_s2 = sshll.u32 %s6391_s24, 4  ;;  %s6191_s9 = smov [#allocation37]   ;;  %s6712_s2 = int_to_ptr.hbm [resolvable:$true] %s1283_s2 }
 0x18d   : > { %s1261_s3 = sshll.u32 %s6191_s9, 4  ;;  %s5890_s15 = sshra.s32 %s6698_s11, 4  ;;  %s1262_s3 = int_to_ptr.vmem [resolvable:$true] %s1261_s3  ;;  %s5891_s15 = int_to_ptr.hbm [resolvable:$true] %s5890_s15 }
 0x18e   : > { %s5892_s8 = scalar_lea.hbm %s5891_s15, 1  ;;  %s5896_s23 = scalar_lea.hbm %s7120_s4, 1 }
 0x18f   : > { %p5893_p3 = scmp.ne.s32.totalorder %s5891_s15, %s5892_s8  ;;  %p5897_p9 = scmp.lt.s32.totalorder %s5891_s15, %s7120_s4 }
 0x190   : > { %p5898_p10 = scmp.lt.s32.totalorder %s5896_s23, %s5892_s8 }
 0x191   : > { %p5894_p7 = pnand %p5893_p3, %p128_p4 }
 0x192   : > { %p5899_p0 = por %p5898_p10, %p5897_p9 }
 0x193   : > { %p5895_p8 = pneg %p5894_p7 }
 0x195   : > { %p5900_p1 = pnand %p5899_p0, %p5895_p8 }
 0x197   : > { %5903 = shalt.err (!%p5900_p1)
}
 0x198   : > { %5008 = dma.hbm_to_vmem [thread:$0]  (%p128_p4), %s6698_s11, 16, %s1262_s3, [#allocation36]  }
 0x199   : > { %s6192_s26 = smov [#allocation40]   ;;  %s5918_s12 = sshra.s32 %s6712_s2, 4  ;;  %s5919_s12 = int_to_ptr.hbm [resolvable:$true] %s5918_s12 }
 0x19a   : > { %s1285_s21 = sshll.u32 %s6192_s26, 4  ;;  %s5920_s1 = scalar_lea.hbm %s5919_s12, 1  ;;  %s1286_s21 = int_to_ptr.vmem [resolvable:$true] %s1285_s21 }
 0x19b   : > { %p5921_p2 = scmp.ne.s32.totalorder %s5919_s12, %s5920_s1  ;;  %s5924_s28 = scalar_lea.hbm %s6391_s24, 1 }
 0x19c   : > { %p5925_p8 = scmp.lt.s32.totalorder %s5919_s12, %s6391_s24  ;;  %p5926_p9 = scmp.lt.s32.totalorder %s5924_s28, %s5920_s1 }
 0x19d   : > { %p5922_p3 = pnand %p5921_p2, %p128_p4 }
 0x19e   : > { %p5927_p10 = por %p5926_p9, %p5925_p8 }
 0x19f   : > { %p5923_p7 = pneg %p5922_p3 }
 0x1a1   : > { %p5928_p0 = pnand %p5927_p10, %p5923_p7 }
 0x1a3   : > { %5931 = shalt.err (!%p5928_p0)
}
 0x1a4   : > { %5012 = dma.hbm_to_vmem [thread:$0]  (%p128_p4), %s6712_s2, 16, %s1286_s21, [#allocation39]  }
 0x1a5 PF: > { %s7152_s11 = sld [smem:[#allocation57_spill]]  ;;  %p5099_p2 = scmp.lt.s32.totalorder %s6124_s18, 2 }
 0x1a6   : > { %s1296_s0 = sand.u32 1, %s6120_s16   ;;  %s7082_s9 = sshll.u32 %s6124_s18, 4 }
 0x1a7   : > { %s6734_s3 = sshll.u32 %s1296_s0, 4  ;;  %p6742_p3 = pnand %p5099_p2, %p6437_p5 }
 0x1a8   : > { %s1300_s8 = scalar_lea.vmem [#allocation2], %s6734_s3  ;;  %s1318_s21 = sand.u32 1, %s6124_s18  }
 0x1a9   : > { %s1308_s23 = sshll.u32 %s1300_s8, 4  ;;  %s1297_s12 = scalar_lea.sflag [#allocation3], %s1296_s0  ;;  %s1309_s23 = int_to_ptr.vmem [resolvable:$true] %s1308_s23 }
 0x1aa   : > { %p5950_p8 = pneg %p6742_p3 }
 0x1ab   : > { %s1305_s15 = scalar_lea.hbm %s7152_s11, %s7082_s9 }
 0x1ac   : > { %s1306_s2 = sshll.u32 %s1305_s15, 4  ;;  %s5953_s15 = scalar_lea.hbm %s7152_s11, 32  ;;  %s1307_s2 = int_to_ptr.hbm [resolvable:$true] %s1306_s2 }
 0x1ad   : > { %s5946_s1 = sshra.s32 %s1307_s2, 4  ;;  %s5947_s1 = int_to_ptr.hbm [resolvable:$true] %s5946_s1 }
 0x1ae   : > { %s5948_s28 = scalar_lea.hbm %s5947_s1, 16  ;;  %p5954_p0 = scmp.lt.s32.totalorder %s5947_s1, %s7152_s11 }
 0x1af   : > { %p5949_p7 = scmp.ne.s32.totalorder %s5947_s1, %s5948_s28  ;;  %p5955_p5 = scmp.lt.s32.totalorder %s5953_s15, %s5948_s28 }
 0x1b1   : > { %p5951_p9 = pnand %p5950_p8, %p5949_p7  ;;  %p5956_p2 = por %p5955_p5, %p5954_p0 }
 0x1b3   : > { %p5952_p10 = pneg %p5951_p9 }
 0x1b5   : > { %p5957_p1 = pnand %p5956_p2, %p5952_p10 }
 0x1b7   : > { %5960 = shalt.err (!%p5957_p1)
}
 0x1b8   : > { %s6193_s7 = smov 128   ;;  %s7154_s0 = sld [smem:[#allocation58_spill]] }
 0x1b9   : > { %s6194_s9 = smov 8   ;;  %s7156_s4 = sshll.u32 %s6124_s18, 4 }
 0x1ba   : > { %5068 = dma.hbm_to_vmem [thread:$0]  (!%p6742_p3), %s1307_s2, 256, %s1309_s23, %s1297_s12, %s6193_s7, %s6193_s7, %s6194_s9  }
 0x1bb   : > { %s1322_s10 = scalar_lea.vmem [#allocation5], %s6734_s3  ;;  %s1319_s28 = scalar_lea.sflag [#allocation6], %s1318_s21 }
 0x1bc   : > { %s1330_s1 = sshll.u32 %s1322_s10, 4  ;;  %s1331_s1 = int_to_ptr.vmem [resolvable:$true] %s1330_s1 }
 0x1be   : > { %s7155_s8 = smov %s7154_s0  ;;  %s1327_s5 = scalar_lea.hbm %s7154_s0, %s7156_s4 }
 0x1bf   : > { %s1328_s6 = sshll.u32 %s1327_s5, 4  ;;  %s5983_s13 = scalar_lea.hbm %s7155_s8, 32  ;;  %s1329_s6 = int_to_ptr.hbm [resolvable:$true] %s1328_s6 }
 0x1c0   : > { %s5976_s15 = sshra.s32 %s1329_s6, 4  ;;  %s5977_s15 = int_to_ptr.hbm [resolvable:$true] %s5976_s15 }
 0x1c1   : > { %s5978_s11 = scalar_lea.hbm %s5977_s15, 16  ;;  %p5984_p10 = scmp.lt.s32.totalorder %s5977_s15, %s7155_s8 }
 0x1c2   : > { %p5979_p1 = scmp.ne.s32.totalorder %s5977_s15, %s5978_s11  ;;  %p5985_p0 = scmp.lt.s32.totalorder %s5983_s13, %s5978_s11 }
 0x1c4   : > { %p5981_p7 = pnand %p5979_p1, %p5950_p8  ;;  %p5986_p5 = por %p5985_p0, %p5984_p10 }
 0x1c6   : > { %p5982_p9 = pneg %p5981_p7 }
 0x1c8   : > { %p5987_p2 = pnand %p5986_p5, %p5982_p9 }
 0x1ca   : > { %5990 = shalt.err (!%p5987_p2)
}
 0x1cb   : > { %5071 = dma.hbm_to_vmem [thread:$0]  (!%p6742_p3), %s1329_s6, 256, %s1331_s1, %s1319_s28, %s6193_s7, %s6193_s7, %s6194_s9  }
 0x1cc   : > { %1342 = sbr.rel (%p6458_p13) target bundleno = 4592 (0x11f0), region = 172  ;;  %s7158_s10 = sld [smem:[#allocation88_spill]] (!%p6458_p13) }
 0x1d2   : > { %s6770_s3 = sand.u32 1, %s7158_s10  }
 0x1d3   : > { %s6773_s2 = sshll.u32 %s6770_s3, 4  ;;  %s1345_s23 = scalar_lea.sflag [#allocation3], %s6770_s3 }
 0x1d4   : > { %s1348_s13 = scalar_lea.vmem [#allocation2], %s6773_s2 }
 0x1d5   : > { %6051 = dma.done.wait (%p6443_p6), %s1345_s23, 256  }
 0x1d6   : > { %6053 = vsyncadd (%p6443_p6), %s1345_s23, 4294967040  ;;  %s1354_s6 = sand.u32 1, %s6419_s22   ;;  %s1358_s9 = scalar_lea.vmem [#allocation5], %s6773_s2 }
 0x1d7   : > { %s1355_s11 = scalar_lea.sflag [#allocation6], %s1354_s6 }
 0x1d8   : > { %6055 = dma.done.wait (%p6443_p6), %s1355_s11, 256  }
 0x1d9   : > { %6057 = vsyncadd (%p6443_p6), %s1355_s11, 4294967040 }
 0x1da   : > { %6059 = dma.done.wait (%p128_p4), [#allocation6], 3072  }
 0x1db   : > { %6061 = vsyncadd (%p128_p4), [#allocation6], 4294964224 }
 0x1dc   : > { %6063 = dma.done.wait (%p128_p4), [#allocation9], 3072  }
 0x1dd   : > { %6065 = vsyncadd (%p128_p4), [#allocation9], 4294964224 }
 0x1de   : > { %6067 = dma.done.wait (%p128_p4), [#allocation12], 5120  }
 0x1df   : > { %6069 = vsyncadd (%p128_p4), [#allocation12], 4294962176 }
 0x1e0   : > { %6071 = dma.done.wait (%p128_p4), [#allocation15], 1040  }
 0x1e1   : > { %6073 = vsyncadd (%p128_p4), [#allocation15], 4294966256 }
 0x1e2   : > { %6075 = dma.done.wait (%p128_p4), [#allocation18], 1040  }
 0x1e3   : > { %6077 = vsyncadd (%p128_p4), [#allocation18], 4294966256 }
 0x1e4   : > { %6079 = dma.done.wait (%p128_p4), [#allocation21], 2064  }
 0x1e5   : > { %6081 = vsyncadd (%p128_p4), [#allocation21], 4294965232 }
 0x1e6   : > { %6083 = dma.done.wait (%p128_p4), [#allocation24], 1056  }
 0x1e7   : > { %6085 = vsyncadd (%p128_p4), [#allocation24], 4294966240 }
 0x1e8   : > { %6087 = dma.done.wait (%p128_p4), [#allocation27], 32  }
 0x1e9   : > { %6089 = vsyncadd (%p128_p4), [#allocation27], 4294967264 }
 0x1ea   : > { %6091 = dma.done.wait (%p128_p4), [#allocation30], 2064  }
 0x1eb   : > { %6093 = vsyncadd (%p128_p4), [#allocation30], 4294965232 }
 0x1ec   : > { %6095 = dma.done.wait (%p128_p4), [#allocation33], 2080  }
 0x1ed   : > { %6097 = vsyncadd (%p128_p4), [#allocation33], 4294965216 }
 0x1ee   : > { %6099 = dma.done.wait (%p128_p4), [#allocation36], 32  }
 0x1ef   : > { %6101 = vsyncadd (%p128_p4), [#allocation36], 4294967264 }
 0x1f0   : > { %6103 = dma.done.wait (%p128_p4), [#allocation39], 32  }
 0x1f1   : > { %6105 = vsyncadd (%p128_p4), [#allocation39], 4294967264  ;;  %v4239_v0 = vld [vmem:[#allocation7 + $0xa8] sm:$0xf]  ;;  %v4828_v1 = vld [vmem:[#allocation7 + $0xb0] sm:$0xf0] }
 0x1f2   : > { %v4827_v2 = vld [vmem:[#allocation7 + $0xac] sm:$0xf]  ;;  %v4240_v3 = vor.u32 %v4828_v1, %v4239_v0  ;;  %v4241_v4 = vld [vmem:[#allocation7 + $0xb4] sm:$0xf0]  ;;  %v4227_v5 = vld [vmem:[#allocation7 + $0x90] sm:$0xf] }
 0x1f3   : > { %v4825_v6 = vld [vmem:[#allocation7 + $0x98] sm:$0xf0]  ;;  %v4244_v7 = vor.u32 %v4827_v2, %v4241_v4  ;;  %v4824_v8 = vld [vmem:[#allocation7 + $0x94] sm:$0xf]  ;;  %v4229_v9 = vld [vmem:[#allocation7 + $0x9c] sm:$0xf0] }
 0x1f4   : > { %1747 = vmatpush.bf16.msra.mxu0 %v4240_v3  ;;  %v4228_v10 = vor.u32 %v4825_v6, %v4227_v5  ;;  %v4232_v11 = vor.u32 %v4824_v8, %v4229_v9  ;;  %v4215_v12 = vld [vmem:[#allocation7 + $0x78] sm:$0xf]  ;;  %v4822_v13 = vld [vmem:[#allocation7 + $0x80] sm:$0xf0]  ;;  %v4821_v14 = vld [vmem:[#allocation7 + $0x7c] sm:$0xf] }
 0x1f5   : > { %1761 = vmatpush.bf16.msra.mxu1 %v4244_v7  ;;  %v4217_v15 = vld [vmem:[#allocation7 + $0x84] sm:$0xf0]  ;;  %v4216_v16 = vor.u32 %v4822_v13, %v4215_v12  ;;  %v4203_v18 = vld [vmem:[#allocation7 + $0x60] sm:$0xf]  ;;  %v4819_v19 = vld [vmem:[#allocation7 + $0x68] sm:$0xf0] }
 0x1f6   : > { %v4220_v17 = vor.u32 %v4821_v14, %v4217_v15  ;;  %v4818_v20 = vld [vmem:[#allocation7 + $0x64] sm:$0xf]  ;;  %v4205_v21 = vld [vmem:[#allocation7 + $0x6c] sm:$0xf0]  ;;  %v4191_v22 = vld [vmem:[#allocation7 + $0x48] sm:$0xf]  ;;  %v4204_v23 = vor.u32 %v4819_v19, %v4203_v18 }
 0x1f7   : > { %v4816_v24 = vld [vmem:[#allocation7 + $0x50] sm:$0xf0]  ;;  %v4815_v25 = vld [vmem:[#allocation7 + $0x4c] sm:$0xf]  ;;  %v4208_v26 = vor.u32 %v4818_v20, %v4205_v21  ;;  %v4193_v27 = vld [vmem:[#allocation7 + $0x54] sm:$0xf0] }
 0x1f8   : > { %1748 = vmatpush.bf16.msra.mxu0 %v4228_v10  ;;  %v4179_v28 = vld [vmem:[#allocation7 + $0x30] sm:$0xf]  ;;  %v4813_v29 = vld [vmem:[#allocation7 + $0x38] sm:$0xf0]  ;;  %v4192_v30 = vor.u32 %v4816_v24, %v4191_v22  ;;  %v4812_v31 = vld [vmem:[#allocation7 + $0x34] sm:$0xf]  ;;  %v4196_v33 = vor.u32 %v4815_v25, %v4193_v27 }
 0x1f9   : > { %1762 = vmatpush.bf16.msra.mxu1 %v4232_v11  ;;  %v4181_v32 = vld [vmem:[#allocation7 + $0x3c] sm:$0xf0]  ;;  %v4180_v34 = vor.u32 %v4813_v29, %v4179_v28  ;;  %v4167_v36 = vld [vmem:[#allocation7 + $0x18] sm:$0xf]  ;;  %v4810_v37 = vld [vmem:[#allocation7 + $0x20] sm:$0xf0] }
 0x1fa   : > { %v4184_v35 = vor.u32 %v4812_v31, %v4181_v32  ;;  %v4809_v38 = vld [vmem:[#allocation7 + $0x1c] sm:$0xf]  ;;  %v4169_v39 = vld [vmem:[#allocation7 + $0x24] sm:$0xf0]  ;;  %v4168_v40 = vor.u32 %v4810_v37, %v4167_v36  ;;  %s7160_s26 = sld [smem:[#allocation60_spill]]  ;;  %v6837_v47 = vld [vmem:[%s1348_s13] sm:$0xff] }
 0x1fb   : > { %v4172_v41 = vor.u32 %v4809_v38, %v4169_v39  ;;  %v4155_v42 = vld [vmem:[#allocation7] sm:$0xf]  ;;  %v4807_v43 = vld [vmem:[#allocation7 + $0x8] sm:$0xf0]  ;;  %v4806_v44 = vld [vmem:[#allocation7 + $0x4] sm:$0xf] }
 0x1fc   : > { %1749 = vmatpush.bf16.msra.mxu0 %v4216_v16  ;;  %v4157_v45 = vld [vmem:[#allocation7 + $0xc] sm:$0xf0]  ;;  %v4156_v46 = vor.u32 %v4807_v43, %v4155_v42  ;;  %v6841_v48 = vld [vmem:[%s1348_s13 + $0x8] sm:$0xff]  ;;  %v4826_v6 = vld [vmem:[#allocation7 + $0xa0] sm:$0xf0]  ;;  %vm1821_vm0 = vcmask 64512  }
 0x1fd   : > { %1763 = vmatpush.bf16.msra.mxu1 %v4220_v17  ;;  %v4160_v49 = vor.u32 %v4806_v44, %v4157_v45  ;;  %v6845_v50 = vpack.c.bf16 %v6841_v48, %v6837_v47  ;;  %v4247_v2 = vld [vmem:[#allocation7 + $0xb0] sm:$0xf]  ;;  %v4829_v3 = vld [vmem:[#allocation7 + $0xb8] sm:$0xf0]  ;;  %v4235_v4 = vld [vmem:[#allocation7 + $0x98] sm:$0xf] }
 0x1fe   : > { %v4248_v5 = vor.u32 %v4829_v3, %v4247_v2  ;;  %v4236_v7 = vor.u32 %v4826_v6, %v4235_v4  ;;  %v4223_v8 = vld [vmem:[#allocation7 + $0x80] sm:$0xf]  ;;  %v4823_v9 = vld [vmem:[#allocation7 + $0x88] sm:$0xf0]  ;;  %v4211_v12 = vld [vmem:[#allocation7 + $0x68] sm:$0xf] }
 0x1ff   : > { %v4224_v10 = vor.u32 %v4823_v9, %v4223_v8  ;;  %v4820_v13 = vld [vmem:[#allocation7 + $0x70] sm:$0xf0]  ;;  %v4199_v16 = vld [vmem:[#allocation7 + $0x50] sm:$0xf]  ;;  %v4817_v17 = vld [vmem:[#allocation7 + $0x58] sm:$0xf0] }
 0x200   : > { %1750 = vmatpush.bf16.msra.mxu0 %v4204_v23  ;;  %v6850_v51 = vld [vmem:[%s7160_s26] sm:$0x7]  ;;  %1775 = vmatpush.bf16.msra.mxu2 %v4248_v5  ;;  %v4212_v15 = vor.u32 %v4820_v13, %v4211_v12  ;;  %v4200_v18 = vor.u32 %v4817_v17, %v4199_v16  ;;  %v4187_v20 = vld [vmem:[#allocation7 + $0x38] sm:$0xf]  ;;  %v4814_v21 = vld [vmem:[#allocation7 + $0x40] sm:$0xf0] }
 0x201   : > { %1764 = vmatpush.bf16.msra.mxu1 %v4208_v26  ;;  %v1614_v52 = vperm.slane %v6850_v51, 1  ;;  %v1613_v53 = vperm.slane %v6850_v51, 0  ;;  %v4188_v22 = vor.u32 %v4814_v21, %v4187_v20  ;;  %v4175_v23 = vld [vmem:[#allocation7 + $0x20] sm:$0xf]  ;;  %v4811_v24 = vld [vmem:[#allocation7 + $0x28] sm:$0xf0] }
 0x202   : > { %v4176_v25 = vor.u32 %v4811_v24, %v4175_v23  ;;  %v4163_v27 = vld [vmem:[#allocation7 + $0x8] sm:$0xf]  ;;  %v4808_v28 = vld [vmem:[#allocation7 + $0x10] sm:$0xf0]  ;;  %v1615_v42 = vperm.slane %v6850_v51, 2  ;;  %vm1849_vm1 = vcmask 1043456  }
 0x203   : > { %v4835_v51 = vld [vmem:[#allocation8 + $0x28] sm:$0xff]  ;;  %s7161_s21 = sld [smem:[#allocation62_spill]]  ;;  %v4832_v2 = vld [vmem:[#allocation8 + $0x10] sm:$0xff]  ;;  %v4830_v4 = vld [vmem:[#allocation8] sm:$0xff]  ;;  %v6195_v17 = vmov 128.0   ;;  %s4966_s11 = sshll.u32 %s6419_s22, 4 }
 0x204   : > { %1751 = vmatpush.bf16.msra.mxu0 %v4192_v30  ;;  %1776 = vmatpush.bf16.msra.mxu2 %v4236_v7  ;;  %v4164_v30 = vor.u32 %v4808_v28, %v4163_v27  ;;  %v4831_v3 = vld [vmem:[#allocation8 + $0x8] sm:$0xff]  ;;  %v4852_v20 = vld [vmem:[#allocation10 + $0x74] sm:$0xf]  ;;  %v4343_v21 = vld [vmem:[#allocation10 + $0x78] sm:$0xf0]  ;;  %s7162_s12 = sld [smem:[#allocation63_spill]] }
 0x205   : > { %1765 = vmatpush.bf16.msra.mxu1 %v4196_v33  ;;  %v4346_v23 = vor.u32 %v4852_v20, %v4343_v21  ;;  %v4335_v24 = vld [vmem:[#allocation10 + $0x68] sm:$0xf0]  ;;  %v4892_v20 = vld [vmem:[#allocation13 + $0xb0] sm:$0xf0]  ;;  %s7163_s7 = sld [smem:[#allocation64_spill]]  ;;  %s1571_s26 = scalar_lea.vmem [#allocation41], %s6773_s2 }
 0x206   : > { %s7164_s0 = sld [smem:[#allocation66_spill]]  ;;  %s3727_s22 = scalar_lea.sflag [#allocation4], %s6770_s3 }
 0x207   : > { %s7165_s1 = sld [smem:[#allocation72_spill]] }
 0x208   : > { %1752 = vmatpush.bf16.msra.mxu0 %v4180_v34  ;;  %1777 = vmatpush.bf16.msra.mxu2 %v4224_v10  ;;  %s7166_s28 = sld [smem:[#allocation67_spill]] }
 0x209   : > { %1766 = vmatpush.bf16.msra.mxu1 %v4184_v35  ;;  %v5228_v10 = vld [vmem:[%s7161_s21] ss:$0 sm:$0xff]  ;;  %s7167_s15 = sld [smem:[#allocation68_spill]] }
 0x20a   : > { %s7168_s4 = sld [smem:[#allocation69_spill]] }
 0x20b   : > { %s7169_s10 = sld [smem:[#allocation74_spill]] }
 0x20c   : > { %1753 = vmatpush.bf16.msra.mxu0 %v4168_v40  ;;  %1778 = vmatpush.bf16.msra.mxu2 %v4212_v15  ;;  %s7170_s5 = sld [smem:[#allocation70_spill]] }
 0x20d   : > { %1767 = vmatpush.bf16.msra.mxu1 %v4172_v41  ;;  %s7171_s23 = sld [smem:[#allocation71_spill]] }
 0x20e   : > { %s7172_s13 = sld [smem:[#allocation84_spill]] }
 0x20f   : > { %s7173_s6 = sld [smem:[#allocation86_spill]] }
 0x210   : > { %1754 = vmatpush.bf16.msra.mxu0 %v4156_v46  ;;  %1779 = vmatpush.bf16.msra.mxu2 %v4200_v18 }
 0x211   : > { %1768 = vmatpush.bf16.msra.mxu1 %v4160_v49 }
 0x213   : > { %1755 = vmatmul.bf16.vlgmr.msra.gmra.mxu0 %v6845_v50 }
 0x214   : > { %1769 = vmatmul.bf16.vlgmr.msra.gmra.mxu1 %v6845_v50  ;;  %1780 = vmatpush.bf16.msra.mxu2 %v4188_v22  ;;  %v4850_v22 = vld [vmem:[#allocation10 + $0x64] sm:$0xf] }
 0x215   : > { %s6026_s2 = scalar_lea.hbm %s7173_s6, 32 }
 0x218   : > { %1781 = vmatpush.bf16.msra.mxu2 %v4176_v25 }
 0x21c   : > { %1782 = vmatpush.bf16.msra.mxu2 %v4164_v30 }
 0x21f   : > { %1783 = vmatmul.bf16.vlgmr.msra.gmra.mxu2 %v6845_v50 }
 0x290   : > { %v1756_v56 = vpop.f32.mrf.mxu0 }
 0x291   : > { %v1770_v54 = vpop.f32.mrf.mxu1  ;;  %v1757_v58 = vadd.f32 %v1756_v56, %v1613_v53 }
 0x292   : > { %v1771_v55 = vadd.f32 %v1770_v54, %v1614_v52  ;;  %v4837_v54 = vld [vmem:[#allocation8 + $0x38] sm:$0xff] }
 0x293   : > { %v1789_v59 = vpack.c.bf16 %v1757_v58, %v1757_v58  ;;  %1954 = vmatpush.bf16.msrb.mxu1 %v4837_v54 }
 0x294   : > { %v1791_v57 = vpack.c.bf16 %v1771_v55, %v1771_v55  ;;  %v4836_v55 = vld [vmem:[#allocation8 + $0x30] sm:$0xff] }
 0x296   : > { %1802 = vmatpush.bf16.xpose.msra.mxu3 %v1791_v57  ;;  %v4834_v57 = vld [vmem:[#allocation8 + $0x20] sm:$0xff] }
 0x297   : > { %1955 = vmatpush.bf16.msrb.mxu1 %v4836_v55  ;;  %v4847_v55 = vld [vmem:[#allocation10 + $0x44] sm:$0xf0] }
 0x298   : > { %v1758_v63 = vpop.f32.mrf.mxu0 }
 0x299   : > { %v1772_v60 = vpop.f32.mrf.mxu1  ;;  %v1759_v0 = vadd.f32 %v1758_v63, %v1613_v53 }
 0x29a   : > { %v1773_v61 = vadd.f32 %v1772_v60, %v1614_v52 }
 0x29b   : > { %v1790_v1 = vpack.c.bf16 %v1759_v0, %v1759_v0  ;;  %1956 = vmatpush.bf16.msrb.mxu1 %v4835_v51  ;;  %v4844_v51 = vld [vmem:[#allocation10 + $0x34] sm:$0xf] }
 0x29c   : > { %v1792_v62 = vpack.c.bf16 %v1773_v61, %v1773_v61  ;;  %v4833_v61 = vld [vmem:[#allocation8 + $0x18] sm:$0xff] }
 0x29d   : > { %1803 = vmatmul.bf16.vlgmr.msra.gmra.mxu3 %v1789_v59 }
 0x29e   : > { %1815 = vmatpush.bf16.xpose.msrb.mxu3 %v1792_v62 }
 0x29f   : > { %1957 = vmatpush.bf16.msrb.mxu1 %v4834_v57  ;;  %v4311_v57 = vld [vmem:[#allocation10 + $0x38] sm:$0xf0] }
 0x2a2   : > { %v1784_v43 = vpop.f32.mrf.mxu2 }
 0x2a3   : > { %v1785_v44 = vadd.f32 %v1784_v43, %v1615_v42  ;;  %1958 = vmatpush.bf16.msrb.mxu1 %v4833_v61  ;;  %v4327_v43 = vld [vmem:[#allocation10 + $0x58] sm:$0xf0] }
 0x2a5   : > { %v1793_v45 = vpack.c.bf16 %v1785_v44, %v1785_v44  ;;  %v4325_v44 = vld [vmem:[#allocation10 + $0x50] sm:$0xf] }
 0x2a7   : > { %v1851_v46 = vsel %vm1849_vm1, %v1793_v45, 0  ;;  %1959 = vmatpush.bf16.msrb.mxu1 %v4832_v2  ;;  %v4843_v2 = vld [vmem:[#allocation10 + $0x24] sm:$0xf0] }
 0x2a8   : > { %1860 = vmatpush.bf16.msra.mxu3 %v1851_v46  ;;  %v4849_v46 = vld [vmem:[#allocation10 + $0x54] sm:$0xf0] }
 0x2aa   : > { %v1786_v49 = vpop.f32.mrf.mxu2 }
 0x2ab   : > { %v1787_v50 = vadd.f32 %v1786_v49, %v1615_v42  ;;  %1960 = vmatpush.bf16.msrb.mxu1 %v4831_v3  ;;  %v4848_v42 = vld [vmem:[#allocation10 + $0x54] sm:$0xf]  ;;  %v4326_v49 = vor.u32 %v4849_v46, %v4325_v44  ;;  %v4879_v44 = vld [vmem:[#allocation13 + $0x4c] sm:$0xf]  ;;  %v4449_v46 = vld [vmem:[#allocation13 + $0x48] sm:$0xf] }
 0x2ac   : > { %v4330_v45 = vor.u32 %v4848_v42, %v4327_v43 }
 0x2ad   : > { %1816 = vmatmul.bf16.vlgmr.msrb.gmra.mxu3 %v1790_v1  ;;  %v1794_v52 = vpack.c.bf16 %v1787_v50, %v1787_v50  ;;  %v4846_v50 = vld [vmem:[#allocation10 + $0x44] sm:$0xf] }
 0x2ae   : > { %2146 = vmatpush.bf16.msrb.mxu3 %v4346_v23  ;;  %v4487_v23 = vld [vmem:[#allocation13 + $0x9c] sm:$0xf0] }
 0x2af   : > { %v1870_v53 = vsel %vm1849_vm1, %v1794_v52, 0  ;;  %1961 = vmatpush.bf16.msrb.mxu1 %v4830_v4  ;;  %v4319_v52 = vld [vmem:[#allocation10 + $0x48] sm:$0xf0]  ;;  %v4840_v4 = vld [vmem:[#allocation10 + $0x14] sm:$0xf] }
 0x2b0   : > { %1879 = vmatpush.bf16.msrb.mxu0 %v1870_v53  ;;  %v4317_v53 = vld [vmem:[#allocation10 + $0x40] sm:$0xf]  ;;  %v4322_v54 = vor.u32 %v4846_v50, %v4319_v52  ;;  %v4880_v50 = vld [vmem:[#allocation13 + $0x50] sm:$0xf0] }
 0x2b1   : > { %v4876_v52 = vld [vmem:[#allocation13 + $0x34] sm:$0xf] }
 0x320   : > { %v1804_v11 = vpop.f32.mrf.mxu3 }
 0x321   : > { %v1822_v14 = vsel %vm1821_vm0, %v1804_v11, -inf }
 0x322   : > { %1823 = vmax.xlane.f32.xlu0 %v1822_v14 }
 0x328   : > { %v1806_v19 = vpop.f32.mrf.mxu3 }
 0x330   : > { %v1817_v26 = vpop.f32.mrf.mxu3 }
 0x331   : > { %v1825_v29 = vsel %vm1821_vm0, %v1817_v26, -inf }
 0x332   : > { %1826 = vmax.xlane.f32.xlu0 %v1825_v29 }
 0x338   : > { %v1819_v31 = vpop.f32.mrf.mxu3 }
 0x395   : > { %v1824_v32 = vpop.xlane.xlu0 %1823 }
 0x396   : > { %v1828_v33 = vsub.f32 %v1804_v11, %v1824_v32 }
 0x398   : > { %v1830_v34 = vmul.f32 1.442695, %v1828_v33 }
 0x39a   : > { %5248 = vpow2.f32 %v1830_v34 }
 0x3a0   : > { %v5249_v35 = vpop.eup %5248 }
 0x3a1   : > { %v1834_v36 = vsel %vm1821_vm0, %v5249_v35, 0.0 }
 0x3a2   : > { %1835 = vadd.xlane.f32.xlu1 %v1834_v36  ;;  %v4341_v36 = vld [vmem:[#allocation10 + $0x70] sm:$0xf] }
 0x3a5   : > { %v1827_v37 = vpop.xlane.xlu0 %1826 }
 0x3a6   : > { %v1829_v38 = vsub.f32 %v1817_v26, %v1827_v37  ;;  %v4338_v26 = vor.u32 %v4850_v22, %v4335_v24  ;;  %v4853_v37 = vld [vmem:[#allocation10 + $0x74] sm:$0xf0]  ;;  %v4888_v22 = vld [vmem:[#allocation13 + $0x94] sm:$0xf]  ;;  %v4485_v24 = vld [vmem:[#allocation13 + $0x90] sm:$0xf] }
 0x3a8   : > { %v1832_v39 = vmul.f32 1.442695, %v1829_v38  ;;  %2147 = vmatpush.bf16.msrb.mxu3 %v4338_v26  ;;  %v4342_v38 = vor.u32 %v4853_v37, %v4341_v36  ;;  %v4889_v26 = vld [vmem:[#allocation13 + $0x98] sm:$0xf0] }
 0x3aa   : > { %5250 = vpow2.f32 %v1832_v39  ;;  %2132 = vmatpush.bf16.msrb.mxu2 %v4342_v38  ;;  %v4333_v39 = vld [vmem:[#allocation10 + $0x60] sm:$0xf] }
 0x3ac   : > { %2148 = vmatpush.bf16.msrb.mxu3 %v4330_v45  ;;  %v4451_v45 = vld [vmem:[#allocation13 + $0x54] sm:$0xf0] }
 0x3b0   : > { %v5251_v40 = vpop.eup %5250  ;;  %2149 = vmatpush.bf16.msrb.mxu3 %v4322_v54  ;;  %v4450_v54 = vor.u32 %v4880_v50, %v4449_v46  ;;  %v4855_v46 = vld [vmem:[#allocation11 + $0x8] sm:$0xff]  ;;  %v4854_v50 = vld [vmem:[#allocation11] sm:$0xff] }
 0x3b1   : > { %v1837_v41 = vsel %vm1821_vm0, %v5251_v40, 0.0 }
 0x3b2   : > { %1838 = vadd.xlane.f32.xlu1 %v1837_v41 }
 0x415   : > { %v1836_v56 = vpop.xlane.xlu1 %1835 }
 0x416   : > { %5252 = vrcp.f32 %v1836_v56  ;;  %v4318_v56 = vor.u32 %v4847_v55, %v4317_v53  ;;  %v4439_v53 = vld [vmem:[#allocation13 + $0x3c] sm:$0xf0] }
 0x41c   : > { %v5253_v58 = vpop.eup %5252 }
 0x41d   : > { %v1842_v59 = vmul.f32 %v5253_v58, %v5249_v35  ;;  %v4309_v58 = vld [vmem:[#allocation10 + $0x30] sm:$0xf] }
 0x41f   : > { %v1844_v60 = vpack.c.bf16 %v1842_v59, %v1842_v59  ;;  %v4314_v59 = vor.u32 %v4844_v51, %v4311_v57  ;;  %v4437_v51 = vld [vmem:[#allocation13 + $0x30] sm:$0xf]  ;;  %v4877_v57 = vld [vmem:[#allocation13 + $0x38] sm:$0xf0] }
 0x421   : > { %4249 = vmatmul.msk.bf16.vlgmr.msra.gmra.mxu3 %vm1821_vm0, %v1844_v60  ;;  %v4845_v60 = vld [vmem:[#allocation10 + $0x34] sm:$0xf0] }
 0x422   : > { %v4310_v61 = vor.u32 %v4845_v60, %v4309_v58  ;;  %2150 = vmatpush.bf16.msrb.mxu3 %v4314_v59  ;;  %v4873_v59 = vld [vmem:[#allocation13 + $0x1c] sm:$0xf]  ;;  %v4427_v60 = vld [vmem:[#allocation13 + $0x24] sm:$0xf0] }
 0x425   : > { %v1839_v62 = vpop.xlane.xlu1 %1838 }
 0x426   : > { %5254 = vrcp.f32 %v1839_v62  ;;  %v4842_v62 = vld [vmem:[#allocation10 + $0x24] sm:$0xf] }
 0x427   : > { %5256 = vrcp.f32 %v6195_v17 }
 0x42c   : > { %v5255_v63 = vpop.eup %5254 }
 0x42d   : > { %v1843_v0 = vmul.f32 %v5255_v63, %v5251_v40  ;;  %v5257_v18 = vpop.eup %5256  ;;  %v4851_v40 = vld [vmem:[#allocation10 + $0x64] sm:$0xf0]  ;;  %v4303_v63 = vld [vmem:[#allocation10 + $0x28] sm:$0xf0] }
 0x42e   : > { %v1975_v19 = vmul.f32 128.0, %v5257_v18  ;;  %vm1979_vm2 = vweird.f32 %v5257_v18  ;;  %v4334_v41 = vor.u32 %v4851_v40, %v4333_v39  ;;  %v4461_v40 = vld [vmem:[#allocation13 + $0x60] sm:$0xf] }
 0x42f   : > { %v1845_v1 = vpack.c.bf16 %v1843_v0, %v1843_v0  ;;  %v4301_v0 = vld [vmem:[#allocation10 + $0x20] sm:$0xf] }
 0x430   : > { %v1976_v25 = vsub.f32 1.0, %v1975_v19  ;;  %2133 = vmatpush.bf16.msrb.mxu2 %v4334_v41  ;;  %v4302_v3 = vor.u32 %v4843_v2, %v4301_v0  ;;  %v4497_v19 = vld [vmem:[#allocation13 + $0xa8] sm:$0xf]  ;;  %v4883_v41 = vld [vmem:[#allocation13 + $0x68] sm:$0xf0] }
 0x431   : > { %4250 = vmatmul.msk.bf16.vlgmr.msrb.gmra.mxu0 %vm1821_vm0, %v1845_v1  ;;  %v4306_v1 = vor.u32 %v4842_v62, %v4303_v63  ;;  %v4498_v21 = vor.u32 %v4892_v20, %v4497_v19  ;;  %v4462_v42 = vor.u32 %v4883_v41, %v4461_v40  ;;  %v4425_v62 = vld [vmem:[#allocation13 + $0x18] sm:$0xf]  ;;  %v4874_v63 = vld [vmem:[#allocation13 + $0x20] sm:$0xf0] }
 0x432   : > { %v1977_v27 = vmul.f32 %v5257_v18, %v1976_v25  ;;  %v4490_v25 = vor.u32 %v4888_v22, %v4487_v23  ;;  %v4869_v19 = vld [vmem:[#allocation11 + $0x78] sm:$0xff]  ;;  %v4860_v22 = vld [vmem:[#allocation11 + $0x30] sm:$0xff] }
 0x433   : > { %2151 = vmatpush.bf16.msrb.mxu3 %v4306_v1  ;;  %2312 = vmatpush.bf16.msra.mxu1 %v4869_v19  ;;  %v4868_v23 = vld [vmem:[#allocation11 + $0x70] sm:$0xff]  ;;  %v6897_v40 = vld [vmem:[%s1358_s9 + $0x8] sm:$0xff] }
 0x434   : > { %2134 = vmatpush.bf16.msrb.mxu2 %v4326_v49  ;;  %v4454_v49 = vor.u32 %v4879_v44, %v4451_v45  ;;  %v4856_v44 = vld [vmem:[#allocation11 + $0x10] sm:$0xff] }
 0x435   : > { %v4864_v45 = vld [vmem:[#allocation11 + $0x50] sm:$0xff] }
 0x437   : > { %2313 = vmatpush.bf16.msra.mxu1 %v4868_v23 }
 0x438   : > { %2135 = vmatpush.bf16.msrb.mxu2 %v4318_v56  ;;  %v4442_v56 = vor.u32 %v4876_v52, %v4439_v53  ;;  %v4862_v52 = vld [vmem:[#allocation11 + $0x40] sm:$0xff] }
 0x439   : > { %v2046_v53 = vld [vmem:[%s7164_s0] sm:$0x3] }
 0x43c   : > { %2136 = vmatpush.bf16.msrb.mxu2 %v4310_v61  ;;  %v4438_v61 = vor.u32 %v4877_v57, %v4437_v51  ;;  %v2049_v51 = vperm.slane %v2046_v53, 1 }
 0x440   : > { %2137 = vmatpush.bf16.msrb.mxu2 %v4302_v3  ;;  %v4430_v3 = vor.u32 %v4873_v59, %v4427_v60 }
 0x4a4   : > { %v1862_v5 = vpop.f32.mrf.mxu3 }
 0x4ac   : > { %v1864_v6 = vpop.f32.mrf.mxu3 }
 0x4ad   : > { %v4293_v6 = vld [vmem:[#allocation10 + $0x10] sm:$0xf] }
 0x4ae   : > { %v1881_v7 = vpop.f32.mrf.mxu0 }
 0x4af   : > { %v1885_v8 = vpack.c.bf16 %v1881_v7, %v1862_v5  ;;  %v4295_v5 = vld [vmem:[#allocation10 + $0x18] sm:$0xf0] }
 0x4b0   : > { %v4298_v7 = vor.u32 %v4840_v4, %v4295_v5  ;;  %v4870_v4 = vld [vmem:[#allocation13 + $0x4] sm:$0xf]  ;;  %v4415_v5 = vld [vmem:[#allocation13 + $0xc] sm:$0xf0] }
 0x4b1   : > { %1962 = vmatmul.bf16.vlgmr.msrb.gmra.mxu1 %v1885_v8  ;;  %v4841_v8 = vld [vmem:[#allocation10 + $0x14] sm:$0xf0] }
 0x4b2   : > { %2152 = vmatpush.bf16.msrb.mxu3 %v4298_v7 }
 0x4b6   : > { %v1883_v9 = vpop.f32.mrf.mxu0 }
 0x4b7   : > { %v4294_v9 = vor.u32 %v4841_v8, %v4293_v6  ;;  %v4426_v6 = vor.u32 %v4874_v63, %v4425_v62  ;;  %v6907_v63 = vld [vmem:[%s7165_s1] sm:$0x7] }
 0x4b9   : > { %2138 = vmatpush.bf16.msrb.mxu2 %v4294_v9  ;;  %v4418_v9 = vor.u32 %v4870_v4, %v4415_v5 }
 0x52e   : > { %v1963_v11 = vpop.f32.mrf.mxu1 }
 0x52f   : > { %v1964_v12 = vadd.f32 %v5228_v10, %v1963_v11  ;;  %v4287_v11 = vld [vmem:[#allocation10 + $0x8] sm:$0xf0] }
 0x531   : > { %v1968_v13 = vadd.f32 %v1964_v12, %v6837_v47  ;;  %v1978_v47 = vadd.f32 %v5257_v18, %v1977_v27  ;;  %v4285_v12 = vld [vmem:[#allocation10] sm:$0xf]  ;;  %v4486_v27 = vor.u32 %v4889_v26, %v4485_v24 }
 0x532   : > { %v5229_v26 = vld [vmem:[%s7162_s12] ss:$0 sm:$0xff]  ;;  %s3739_s12 = sshll.u32 %s1571_s26, 4  ;;  %s3740_s12 = int_to_ptr.vmem [resolvable:$true] %s3739_s12 }
 0x533   : > { %1970 = vadd.xlane.f32.xlu2 %v1968_v13  ;;  %v6867_v28 = vsel %vm1979_vm2, %v5257_v18, %v1978_v47  ;;  %v4885_v47 = vld [vmem:[#allocation13 + $0x7c] sm:$0xf] }
 0x536   : > { %v1965_v14 = vpop.f32.mrf.mxu1 }
 0x537   : > { %v1966_v15 = vadd.f32 %v5228_v10, %v1965_v14  ;;  %v4838_v10 = vld [vmem:[#allocation10 + $0x4] sm:$0xf]  ;;  %v4891_v14 = vld [vmem:[#allocation13 + $0xac] sm:$0xf] }
 0x539   : > { %v1969_v16 = vadd.f32 %v1966_v15, %v6841_v48  ;;  %v4499_v15 = vld [vmem:[#allocation13 + $0xb4] sm:$0xf0] }
 0x53a   : > { %v4502_v17 = vor.u32 %v4891_v14, %v4499_v15 }
 0x53b   : > { %1972 = vadd.xlane.f32.xlu2 %v1969_v16 }
 0x5a6   : > { %v1971_v48 = vpop.xlane.xlu2 %1970 }
 0x5a7   : > { %v1981_v29 = vmul.f32 %v6867_v28, %v1971_v48  ;;  %v4475_v48 = vld [vmem:[#allocation13 + $0x84] sm:$0xf0] }
 0x5a9   : > { %v6870_v30 = vsub.f32 %v1968_v13, %v1981_v29  ;;  %v4290_v13 = vor.u32 %v4838_v10, %v4287_v11  ;;  %v4473_v29 = vld [vmem:[#allocation13 + $0x78] sm:$0xf]  ;;  %v4413_v10 = vld [vmem:[#allocation13] sm:$0xf]  ;;  %v4871_v11 = vld [vmem:[#allocation13 + $0x8] sm:$0xf0] }
 0x5ab   : > { %v1985_v31 = vmul.f32 %v6870_v30, %v6870_v30  ;;  %2153 = vmatpush.bf16.msrb.mxu3 %v4290_v13  ;;  %v4414_v13 = vor.u32 %v4871_v11, %v4413_v10 }
 0x5ad   : > { %1987 = vadd.xlane.f32.xlu0 %v1985_v31  ;;  %v4478_v31 = vor.u32 %v4885_v47, %v4475_v48  ;;  %v4859_v47 = vld [vmem:[#allocation11 + $0x28] sm:$0xff] }
 0x5ae   : > { %v1973_v32 = vpop.xlane.xlu2 %1972  ;;  %v4867_v48 = vld [vmem:[#allocation11 + $0x68] sm:$0xff] }
 0x5af   : > { %v1982_v33 = vmul.f32 %v6867_v28, %v1973_v32  ;;  %2617 = vmatpush.bf16.msra.mxu3 %v4502_v17  ;;  %v4886_v32 = vld [vmem:[#allocation13 + $0x80] sm:$0xf0]  ;;  %2314 = vmatpush.bf16.msra.mxu1 %v4867_v48 }
 0x5b0   : > { %v4474_v36 = vor.u32 %v4886_v32, %v4473_v29 }
 0x5b1   : > { %v6875_v34 = vsub.f32 %v1969_v16, %v1982_v33  ;;  %v4839_v16 = vld [vmem:[#allocation10 + $0x4] sm:$0xf0]  ;;  %v4882_v33 = vld [vmem:[#allocation13 + $0x64] sm:$0xf] }
 0x5b2   : > { %v4286_v18 = vor.u32 %v4839_v16, %v4285_v12 }
 0x5b3   : > { %v1986_v35 = vmul.f32 %v6875_v34, %v6875_v34  ;;  %2618 = vmatpush.bf16.msra.mxu3 %v4490_v25 }
 0x5b4   : > { %2139 = vmatpush.bf16.msrb.mxu2 %v4286_v18  ;;  %v4861_v18 = vld [vmem:[#allocation11 + $0x38] sm:$0xff] }
 0x5b5   : > { %1989 = vadd.xlane.f32.xlu1 %v1986_v35  ;;  %v4463_v35 = vld [vmem:[#allocation13 + $0x6c] sm:$0xf0]  ;;  %2298 = vmatpush.bf16.msra.mxu0 %v4861_v18 }
 0x5b6   : > { %v4466_v38 = vor.u32 %v4882_v33, %v4463_v35  ;;  %v5230_v33 = vld [vmem:[%s7163_s7] ss:$0 sm:$0xff] }
 0x5b7   : > { %2619 = vmatpush.bf16.msra.mxu3 %v4478_v31 }
 0x5b8   : > { %2603 = vmatpush.bf16.msra.mxu2 %v4498_v21 }
 0x5b9   : > { %2299 = vmatpush.bf16.msra.mxu0 %v4860_v22  ;;  %v4493_v22 = vld [vmem:[#allocation13 + $0x98] sm:$0xf] }
 0x5bb   : > { %2620 = vmatpush.bf16.msra.mxu3 %v4466_v38 }
 0x5bc   : > { %2604 = vmatpush.bf16.msra.mxu2 %v4486_v27 }
 0x5bd   : > { %2300 = vmatpush.bf16.msra.mxu0 %v4859_v47 }
 0x5bf   : > { %2621 = vmatpush.bf16.msra.mxu3 %v4454_v49  ;;  %v4863_v49 = vld [vmem:[#allocation11 + $0x48] sm:$0xff] }
 0x5c0   : > { %2605 = vmatpush.bf16.msra.mxu2 %v4474_v36  ;;  %v4858_v36 = vld [vmem:[#allocation11 + $0x20] sm:$0xff] }
 0x5c1   : > { %2301 = vmatpush.bf16.msra.mxu0 %v4858_v36  ;;  %v4881_v36 = vld [vmem:[#allocation13 + $0x58] sm:$0xf0] }
 0x5c3   : > { %2622 = vmatpush.bf16.msra.mxu3 %v4442_v56  ;;  %v2048_v56 = vperm.slane %v2046_v53, 0 }
 0x5c4   : > { %2606 = vmatpush.bf16.msra.mxu2 %v4462_v42  ;;  %v4857_v42 = vld [vmem:[#allocation11 + $0x18] sm:$0xff] }
 0x5c5   : > { %2302 = vmatpush.bf16.msra.mxu0 %v4857_v42  ;;  %v4445_v42 = vld [vmem:[#allocation13 + $0x38] sm:$0xf] }
 0x5c7   : > { %2623 = vmatpush.bf16.msra.mxu3 %v4430_v3 }
 0x5c8   : > { %2607 = vmatpush.bf16.msra.mxu2 %v4450_v54 }
 0x5c9   : > { %2303 = vmatpush.bf16.msra.mxu0 %v4856_v44  ;;  %v5231_v44 = vld [vmem:[%s7166_s28] ss:$0 sm:$0xff] }
 0x5cb   : > { %2624 = vmatpush.bf16.msra.mxu3 %v4418_v9 }
 0x5cc   : > { %2608 = vmatpush.bf16.msra.mxu2 %v4438_v61 }
 0x5cd   : > { %2304 = vmatpush.bf16.msra.mxu0 %v4855_v46 }
 0x5d0   : > { %2609 = vmatpush.bf16.msra.mxu2 %v4426_v6  ;;  %v2470_v6 = vperm.slane %v6907_v63, 1 }
 0x5d1   : > { %2305 = vmatpush.bf16.msra.mxu0 %v4854_v50  ;;  %v4875_v50 = vld [vmem:[#allocation13 + $0x28] sm:$0xf0] }
 0x5d4   : > { %2610 = vmatpush.bf16.msra.mxu2 %v4414_v13 }
 0x620   : > { %v1988_v37 = vpop.xlane.xlu0 %1987 }
 0x621   : > { %v1991_v39 = vmul.f32 %v1988_v37, %v6867_v28 }
 0x623   : > { %v1993_v43 = vadd.f32 1e-05, %v1991_v39 }
 0x625   : > { %5258 = vrsqrt.f32 %v1993_v43  ;;  %vm2001_vm4 = vweird.f32 %v1993_v43 }
 0x628   : > { %v1990_v55 = vpop.xlane.xlu1 %1989 }
 0x629   : > { %v1992_v58 = vmul.f32 %v1990_v55, %v6867_v28 }
 0x62b   : > { %v5259_v0 = vpop.eup %5258  ;;  %v1994_v1 = vadd.f32 1e-05, %v1992_v58 }
 0x62c   : > { %v1996_v2 = vmul.f32 %v5259_v0, %v1993_v43  ;;  %vm2002_vm3 = vweird.f32 %v5259_v0  ;;  %v4865_v43 = vld [vmem:[#allocation11 + $0x58] sm:$0xff] }
 0x62d   : > { %5260 = vrsqrt.f32 %v1994_v1  ;;  %vm2003_vm5 = vmor %vm2001_vm4, %vm2002_vm3  ;;  %vm2011_vm7 = vweird.f32 %v1994_v1 }
 0x62e   : > { %v1997_v7 = vmul.f32 %v5259_v0, %v1996_v2 }
 0x630   : > { %v1998_v8 = vmul.f32 0.5, %v1997_v7 }
 0x632   : > { %v1999_v12 = vsub.f32 1.5, %v1998_v8  ;;  %v2469_v8 = vperm.slane %v6907_v63, 0 }
 0x633   : > { %v5261_v14 = vpop.eup %5260 }
 0x634   : > { %v2000_v15 = vmul.f32 %v5259_v0, %v1999_v12  ;;  %v2006_v16 = vmul.f32 %v5261_v14, %v1994_v1  ;;  %vm2012_vm6 = vweird.f32 %v5261_v14 }
 0x635   : > { %vm2013_vm8 = vmor %vm2011_vm7, %vm2012_vm6 }
 0x636   : > { %v2007_v17 = vmul.f32 %v5261_v14, %v2006_v16  ;;  %v2004_v20 = vsel %vm2003_vm5, %v5259_v0, %v2000_v15 }
 0x637   : > { %v2015_v25 = vmul.f32 %v2004_v20, %v6870_v30  ;;  %v4866_v30 = vld [vmem:[#allocation11 + $0x60] sm:$0xff]  ;;  %v4505_v20 = vld [vmem:[#allocation13 + $0xb0] sm:$0xf] }
 0x638   : > { %v2008_v21 = vmul.f32 0.5, %v2007_v17  ;;  %2315 = vmatpush.bf16.msra.mxu1 %v4866_v30 }
 0x639   : > { %v2021_v32 = vmul.f32 %v5229_v26, %v2015_v25 }
 0x63a   : > { %v2009_v24 = vsub.f32 1.5, %v2008_v21  ;;  %v4893_v21 = vld [vmem:[#allocation13 + $0xb8] sm:$0xf0] }
 0x63b   : > { %v6885_v37 = vadd.f32 %v5230_v33, %v2021_v32  ;;  %v4506_v23 = vor.u32 %v4893_v21, %v4505_v20  ;;  %v4884_v32 = vld [vmem:[#allocation13 + $0x70] sm:$0xf0] }
 0x63c   : > { %v2010_v27 = vmul.f32 %v5261_v14, %v2009_v24  ;;  %2316 = vmatpush.bf16.msra.mxu1 %v4865_v43  ;;  %v4890_v24 = vld [vmem:[#allocation13 + $0xa0] sm:$0xf0] }
 0x63d   : > { %2631 = vmatpush.bf16.msrb.mxu0 %v4506_v23  ;;  %v4494_v25 = vor.u32 %v4890_v24, %v4493_v22  ;;  %v4878_v43 = vld [vmem:[#allocation13 + $0x40] sm:$0xf0] }
 0x63e   : > { %v2014_v29 = vsel %vm2013_vm8, %v5261_v14, %v2010_v27  ;;  %v4887_v27 = vld [vmem:[#allocation13 + $0x88] sm:$0xf0]  ;;  %v4446_v46 = vor.u32 %v4878_v43, %v4445_v42 }
 0x63f   : > { %v2016_v31 = vmul.f32 %v2014_v29, %v6875_v34  ;;  %v6893_v34 = vld [vmem:[%s1358_s9] sm:$0xff]  ;;  %s3738_s9 = scalar_lea.hbm %s7173_s6, %s4966_s11 }
 0x640   : > { %v6901_v41 = vpack.c.bf16 %v6897_v40, %v6893_v34  ;;  %2317 = vmatpush.bf16.msra.mxu1 %v4864_v45  ;;  %s3741_s7 = sshll.u32 %s3738_s9, 4  ;;  %s3742_s7 = int_to_ptr.hbm [resolvable:$true] %s3741_s7 }
 0x641   : > { %v2022_v35 = vmul.f32 %v5229_v26, %v2016_v31  ;;  %v4481_v26 = vld [vmem:[#allocation13 + $0x80] sm:$0xf]  ;;  %2632 = vmatpush.bf16.msrb.mxu0 %v4494_v25  ;;  %v4469_v31 = vld [vmem:[#allocation13 + $0x68] sm:$0xf]  ;;  %s6020_s0 = sshra.s32 %s3742_s7, 4  ;;  %s6021_s0 = int_to_ptr.hbm [resolvable:$true] %s6020_s0 }
 0x642   : > { %v4482_v29 = vor.u32 %v4887_v27, %v4481_v26  ;;  %s6022_s1 = scalar_lea.hbm %s6021_s0, 16  ;;  %p6027_p3 = scmp.lt.s32.totalorder %s6021_s0, %s7173_s6 }
 0x643   : > { %v6887_v38 = vadd.f32 %v5230_v33, %v2022_v35  ;;  %v4470_v33 = vor.u32 %v4884_v32, %v4469_v31  ;;  %v4457_v35 = vld [vmem:[#allocation13 + $0x50] sm:$0xf]  ;;  %v4901_v32 = vld [vmem:[#allocation14 + $0x38] sm:$0xff]  ;;  %p6023_p4 = scmp.ne.s32.totalorder %s6021_s0, %s6022_s1  ;;  %p6028_p8 = scmp.lt.s32.totalorder %s6026_s2, %s6022_s1 }
 0x644   : > { %2318 = vmatpush.bf16.msra.mxu1 %v4863_v49  ;;  %v4433_v49 = vld [vmem:[#allocation13 + $0x20] sm:$0xf] }
 0x645   : > { %v2029_v39 = vpack.c.bf16 %v6887_v38, %v6885_v37  ;;  %2633 = vmatpush.bf16.msrb.mxu0 %v4482_v29  ;;  %p6024_p6 = pnand %p6023_p4, %p6450_p11  ;;  %p6029_p1 = por %p6028_p8, %p6027_p3 }
 0x647   : > { %2140 = vmatmul.bf16.vlgmr.msrb.gmra.mxu2 %v2029_v39  ;;  %2154 = vmatmul.bf16.vlgmr.msrb.gmra.mxu3 %v2029_v39  ;;  %v4458_v39 = vor.u32 %v4881_v36, %v4457_v35  ;;  %v4900_v35 = vld [vmem:[#allocation14 + $0x30] sm:$0xff]  ;;  %p6025_p13 = pneg %p6024_p6 }
 0x648   : > { %2319 = vmatpush.bf16.msra.mxu1 %v4862_v52 }
 0x649   : > { %2634 = vmatpush.bf16.msrb.mxu0 %v4470_v33  ;;  %p6030_p7 = pnand %p6029_p1, %p6025_p13 }
 0x64c   : > { %2808 = vmatpush.bf16.msrb.mxu1 %v4901_v32  ;;  %v4924_v32 = vld [vmem:[#allocation22 + $0x74] sm:$0xf] }
 0x64d   : > { %2635 = vmatpush.bf16.msrb.mxu0 %v4458_v39 }
 0x650   : > { %2809 = vmatpush.bf16.msrb.mxu1 %v4900_v35 }
 0x651   : > { %2636 = vmatpush.bf16.msrb.mxu0 %v4446_v46 }
 0x657   : > { %2625 = vmatmul.bf16.vlgmr.msra.gmra.mxu3 %v6901_v41  ;;  %2611 = vmatmul.bf16.vlgmr.msra.gmra.mxu2 %v6901_v41 }
 0x6ca   : > { %v2141_v54 = vpop.f32.mrf.mxu2  ;;  %v2155_v55 = vpop.f32.mrf.mxu3 }
 0x6cb   : > { %v2142_v57 = vadd.f32 %v2141_v54, %v2048_v56  ;;  %v2156_v58 = vadd.f32 %v2155_v55, %v2049_v51  ;;  %v4434_v55 = vor.u32 %v4875_v50, %v4433_v49 }
 0x6cd   : > { %v2160_v0 = vmax.f32 %v2142_v57, 0.0  ;;  %v2161_v1 = vmax.f32 %v2156_v58, 0.0  ;;  %2637 = vmatpush.bf16.msrb.mxu0 %v4434_v55 }
 0x6d2   : > { %v2143_v59 = vpop.f32.mrf.mxu2  ;;  %v2157_v60 = vpop.f32.mrf.mxu3 }
 0x6d3   : > { %v2144_v61 = vadd.f32 %v2143_v59, %v2048_v56  ;;  %v2158_v62 = vadd.f32 %v2157_v60, %v2049_v51  ;;  %v4421_v56 = vld [vmem:[#allocation13 + $0x8] sm:$0xf]  ;;  %v4872_v51 = vld [vmem:[#allocation13 + $0x10] sm:$0xf0] }
 0x6d4   : > { %v4422_v59 = vor.u32 %v4872_v51, %v4421_v56  ;;  %v5233_v56 = vld [vmem:[%s7168_s4] ss:$0 sm:$0xff] }
 0x6d5   : > { %v2162_v2 = vmax.f32 %v2144_v61, 0.0  ;;  %v2163_v3 = vmax.f32 %v2158_v62, 0.0 }
 0x6d6   : > { %2638 = vmatpush.bf16.msrb.mxu0 %v4422_v59  ;;  %v4898_v59 = vld [vmem:[#allocation14 + $0x20] sm:$0xff] }
 0x6d7   : > { %v2164_v4 = vpack.c.bf16 %v2162_v2, %v2160_v0  ;;  %v2165_v5 = vpack.c.bf16 %v2163_v3, %v2161_v1 }
 0x6d9   : > { %2306 = vmatmul.bf16.vlgmr.msra.gmra.mxu0 %v2164_v4  ;;  %2320 = vmatmul.bf16.vlgmr.msra.gmra.mxu1 %v2165_v5 }
 0x6da   : > { %v2626_v7 = vpop.f32.mrf.mxu3  ;;  %v2612_v11 = vpop.f32.mrf.mxu2 }
 0x6db   : > { %v2627_v9 = vadd.f32 %v2626_v7, %v2470_v6  ;;  %v2613_v12 = vadd.f32 %v2612_v11, %v2469_v8 }
 0x6dd   : > { %v2647_v10 = vpack.c.bf16 %v2627_v9, %v2627_v9  ;;  %v2645_v13 = vpack.c.bf16 %v2613_v12, %v2613_v12 }
 0x6df   : > { %2658 = vmatpush.bf16.xpose.msrb.mxu2 %v2647_v10 }
 0x6e2   : > { %v2628_v14 = vpop.f32.mrf.mxu3  ;;  %v2614_v17 = vpop.f32.mrf.mxu2 }
 0x6e3   : > { %v2629_v15 = vadd.f32 %v2628_v14, %v2470_v6  ;;  %v2615_v18 = vadd.f32 %v2614_v17, %v2469_v8 }
 0x6e5   : > { %v2648_v16 = vpack.c.bf16 %v2629_v15, %v2629_v15  ;;  %v2646_v19 = vpack.c.bf16 %v2615_v18, %v2615_v18  ;;  %v2471_v15 = vperm.slane %v6907_v63, 2 }
 0x6e6   : > { %2659 = vmatmul.bf16.vlgmr.msrb.gmra.mxu2 %v2645_v13 }
 0x6e7   : > { %2671 = vmatpush.bf16.xpose.msra.mxu2 %v2648_v16 }
 0x6e9   : > { %2639 = vmatmul.bf16.vlgmr.msrb.gmra.mxu0 %v6901_v41 }
 0x6f6   : > { %2672 = vmatmul.bf16.vlgmr.msra.gmra.mxu2 %v2646_v19 }
 0x756   : > { %v2307_v45 = vpop.f32.mrf.mxu0  ;;  %v2321_v57 = vpop.f32.mrf.mxu1 }
 0x757   : > { %v2308_v52 = vadd.f32 %v5231_v44, %v2307_v45 }
 0x759   : > { %v2322_v58 = vadd.f32 %v2321_v57, %v2308_v52 }
 0x75b   : > { %v2326_v61 = vadd.f32 %v2322_v58, %v6885_v37  ;;  %v4899_v58 = vld [vmem:[#allocation14 + $0x28] sm:$0xff] }
 0x75c   : > { %2810 = vmatpush.bf16.msrb.mxu1 %v4899_v58 }
 0x75e   : > { %v2309_v2 = vpop.f32.mrf.mxu0  ;;  %v2323_v6 = vpop.f32.mrf.mxu1 }
 0x75f   : > { %v2310_v4 = vadd.f32 %v5231_v44, %v2309_v2 }
 0x760   : > { %2811 = vmatpush.bf16.msrb.mxu1 %v4898_v59 }
 0x761   : > { %v2324_v7 = vadd.f32 %v2323_v6, %v2310_v4 }
 0x763   : > { %v2327_v37 = vadd.f32 %v2324_v7, %v6887_v38 }
 0x766   : > { %v2640_v17 = vpop.f32.mrf.mxu0 }
 0x767   : > { %v2641_v18 = vadd.f32 %v2640_v17, %v2471_v15 }
 0x769   : > { %v2660_v47 = vpop.f32.mrf.mxu2  ;;  %v2649_v19 = vpack.c.bf16 %v2641_v18, %v2641_v18 }
 0x76a   : > { %v2677_v48 = vsel %vm1821_vm0, %v2660_v47, -inf }
 0x76b   : > { %2678 = vmax.xlane.f32.xlu2 %v2677_v48  ;;  %v2705_v20 = vsel %vm1849_vm1, %v2649_v19, 0 }
 0x76c   : > { %2714 = vmatpush.bf16.msrb.mxu3 %v2705_v20 }
 0x76e   : > { %v2642_v38 = vpop.f32.mrf.mxu0 }
 0x76f   : > { %v2643_v21 = vadd.f32 %v2642_v38, %v2471_v15  ;;  %v5234_v38 = vld [vmem:[%s7169_s10] ss:$0 sm:$0xff] }
 0x771   : > { %v2662_v30 = vpop.f32.mrf.mxu2  ;;  %v2650_v22 = vpack.c.bf16 %v2643_v21, %v2643_v21 }
 0x773   : > { %v2724_v23 = vsel %vm1849_vm1, %v2650_v22, 0 }
 0x774   : > { %2733 = vmatpush.bf16.msra.mxu0 %v2724_v23 }
 0x779   : > { %v2673_v53 = vpop.f32.mrf.mxu2 }
 0x77a   : > { %v2680_v54 = vsel %vm1821_vm0, %v2673_v53, -inf }
 0x77b   : > { %2681 = vmax.xlane.f32.xlu0 %v2680_v54 }
 0x781   : > { %v2675_v60 = vpop.f32.mrf.mxu2 }
 0x782   : > { %v4897_v60 = vld [vmem:[#allocation14 + $0x18] sm:$0xff] }
 0x783   : > { %2328 = vadd.xlane.f32.xlu0 %v2326_v61  ;;  %2812 = vmatpush.bf16.msrb.mxu1 %v4897_v60  ;;  %v4599_v60 = vld [vmem:[#allocation22 + $0x30] sm:$0xf] }
 0x7de   : > { %v2679_v62 = vpop.xlane.xlu2 %2678 }
 0x7df   : > { %v2683_v0 = vsub.f32 %v2660_v47, %v2679_v62  ;;  %v4895_v62 = vld [vmem:[#allocation14 + $0x8] sm:$0xff] }
 0x7e1   : > { %v2685_v1 = vmul.f32 1.442695, %v2683_v0  ;;  %v4894_v0 = vld [vmem:[#allocation14] sm:$0xff] }
 0x7e3   : > { %5262 = vpow2.f32 %v2685_v1 }
 0x7e9   : > { %v5263_v3 = vpop.eup %5262 }
 0x7ea   : > { %v2689_v5 = vsel %vm1821_vm0, %v5263_v3, 0.0 }
 0x7eb   : > { %2690 = vadd.xlane.f32.xlu1 %v2689_v5 }
 0x7ee   : > { %v2682_v8 = vpop.xlane.xlu0 %2681 }
 0x7ef   : > { %v2684_v9 = vsub.f32 %v2673_v53, %v2682_v8  ;;  %v5232_v53 = vld [vmem:[%s7167_s15] ss:$0 sm:$0xff] }
 0x7f1   : > { %v2687_v10 = vmul.f32 1.442695, %v2684_v9 }
 0x7f3   : > { %5264 = vpow2.f32 %v2687_v10  ;;  %2330 = vadd.xlane.f32.xlu1 %v2327_v37 }
 0x7f6   : > { %v2329_v41 = vpop.xlane.xlu0 %2328 }
 0x7f7   : > { %v2332_v12 = vmul.f32 %v2329_v41, %v6867_v28 }
 0x7f9   : > { %v5265_v11 = vpop.eup %5264  ;;  %v2334_v14 = vsub.f32 %v2326_v61, %v2332_v12  ;;  %v4896_v61 = vld [vmem:[#allocation14 + $0x10] sm:$0xff] }
 0x7fa   : > { %v2692_v13 = vsel %vm1821_vm0, %v5265_v11, 0.0  ;;  %2813 = vmatpush.bf16.msrb.mxu1 %v4896_v61  ;;  %v4917_v61 = vld [vmem:[#allocation22 + $0x34] sm:$0xf0] }
 0x7fb   : > { %2693 = vadd.xlane.f32.xlu2 %v2692_v13  ;;  %v2336_v16 = vmul.f32 %v2334_v14, %v2334_v14 }
 0x7fe   : > { %2814 = vmatpush.bf16.msrb.mxu1 %v4895_v62  ;;  %v4916_v62 = vld [vmem:[#allocation22 + $0x34] sm:$0xf] }
 0x802   : > { %2815 = vmatpush.bf16.msrb.mxu1 %v4894_v0  ;;  %v4600_v0 = vor.u32 %v4917_v61, %v4599_v60  ;;  %v4906_v60 = vld [vmem:[#allocation19 + $0x20] sm:$0xff]  ;;  %v4905_v61 = vld [vmem:[#allocation19 + $0x18] sm:$0xff] }
 0x803   : > { %2338 = vadd.xlane.f32.xlu2 %v2336_v16 }
 0x85e   : > { %v2691_v24 = vpop.xlane.xlu1 %2690 }
 0x85f   : > { %5266 = vrcp.f32 %v2691_v24 }
 0x865   : > { %v5267_v25 = vpop.eup %5266 }
 0x866   : > { %v2697_v26 = vmul.f32 %v5267_v25, %v5263_v3  ;;  %v2331_v27 = vpop.xlane.xlu1 %2330 }
 0x867   : > { %v2333_v63 = vmul.f32 %v2331_v27, %v6867_v28 }
 0x868   : > { %v2699_v47 = vpack.c.bf16 %v2697_v26, %v2697_v26 }
 0x869   : > { %v6924_v48 = vsub.f32 %v2327_v37, %v2333_v63 }
 0x86a   : > { %4507 = vmatmul.msk.bf16.vlgmr.msrb.gmra.mxu3 %vm1821_vm0, %v2699_v47 }
 0x86b   : > { %v2337_v29 = vmul.f32 %v6924_v48, %v6924_v48 }
 0x86d   : > { %2340 = vadd.xlane.f32.xlu0 %v2337_v29  ;;  %v4631_v29 = vld [vmem:[#allocation22 + $0x70] sm:$0xf] }
 0x86e   : > { %v2694_v31 = vpop.xlane.xlu2 %2693 }
 0x86f   : > { %5268 = vrcp.f32 %v2694_v31  ;;  %v4925_v31 = vld [vmem:[#allocation22 + $0x74] sm:$0xf0] }
 0x875   : > { %v5269_v33 = vpop.eup %5268 }
 0x876   : > { %v2698_v36 = vmul.f32 %v5269_v33, %v5265_v11  ;;  %v2339_v30 = vpop.xlane.xlu2 %2338  ;;  %v4633_v33 = vld [vmem:[#allocation22 + $0x78] sm:$0xf0] }
 0x877   : > { %v2342_v39 = vmul.f32 %v2339_v30, %v6867_v28  ;;  %v4636_v35 = vor.u32 %v4924_v32, %v4633_v33  ;;  %v4923_v30 = vld [vmem:[#allocation22 + $0x64] sm:$0xf0] }
 0x878   : > { %v2700_v42 = vpack.c.bf16 %v2698_v36, %v2698_v36  ;;  %v4623_v36 = vld [vmem:[#allocation22 + $0x60] sm:$0xf] }
 0x879   : > { %v2344_v43 = vadd.f32 1e-05, %v2342_v39  ;;  %3076 = vmatpush.bf16.msrb.mxu0 %v4636_v35  ;;  %v4922_v39 = vld [vmem:[#allocation22 + $0x64] sm:$0xf] }
 0x87a   : > { %4508 = vmatmul.msk.bf16.vlgmr.msra.gmra.mxu0 %vm1821_vm0, %v2700_v42  ;;  %v4624_v42 = vor.u32 %v4923_v30, %v4623_v36 }
 0x87b   : > { %5270 = vrsqrt.f32 %v2344_v43  ;;  %vm2352_vm10 = vweird.f32 %v2344_v43 }
 0x881   : > { %v5271_v44 = vpop.eup %5270 }
 0x882   : > { %v2347_v45 = vmul.f32 %v5271_v44, %v2344_v43  ;;  %vm2353_vm9 = vweird.f32 %v5271_v44 }
 0x883   : > { %vm2354_vm11 = vmor %vm2352_vm10, %vm2353_vm9 }
 0x884   : > { %v2348_v46 = vmul.f32 %v5271_v44, %v2347_v45  ;;  %v4921_v45 = vld [vmem:[#allocation22 + $0x54] sm:$0xf0] }
 0x886   : > { %v2349_v49 = vmul.f32 0.5, %v2348_v46  ;;  %v4920_v46 = vld [vmem:[#allocation22 + $0x54] sm:$0xf] }
 0x888   : > { %v2350_v50 = vsub.f32 1.5, %v2349_v49 }
 0x88a   : > { %v2351_v52 = vmul.f32 %v5271_v44, %v2350_v50  ;;  %v4617_v50 = vld [vmem:[#allocation22 + $0x58] sm:$0xf0] }
 0x88c   : > { %v2355_v54 = vsel %vm2354_vm11, %v5271_v44, %v2351_v52  ;;  %v4615_v44 = vld [vmem:[#allocation22 + $0x50] sm:$0xf]  ;;  %v4620_v52 = vor.u32 %v4920_v46, %v4617_v50  ;;  %v5235_v46 = vld [vmem:[%s7170_s5] ss:$0 sm:$0xff] }
 0x88d   : > { %v2366_v55 = vmul.f32 %v2355_v54, %v2334_v14  ;;  %v4616_v49 = vor.u32 %v4921_v45, %v4615_v44  ;;  %v4607_v54 = vld [vmem:[#allocation22 + $0x40] sm:$0xf] }
 0x88f   : > { %v2372_v51 = vmul.f32 %v5232_v53, %v2366_v55  ;;  %v4919_v55 = vld [vmem:[#allocation22 + $0x44] sm:$0xf0] }
 0x891   : > { %v2378_v57 = vadd.f32 %v5233_v56, %v2372_v51  ;;  %v4608_v51 = vor.u32 %v4919_v55, %v4607_v54  ;;  %v5236_v54 = vld [vmem:[%s7171_s23] ss:$0 sm:$0xff] }
 0x893   : > { %2380 = vadd.xlane.f32.xlu1 %v2378_v57 }
 0x8e0   : > { %v2341_v1 = vpop.xlane.xlu0 %2340 }
 0x8e1   : > { %v2343_v2 = vmul.f32 %v2341_v1, %v6867_v28  ;;  %v4601_v1 = vld [vmem:[#allocation22 + $0x38] sm:$0xf0] }
 0x8e3   : > { %v2345_v3 = vadd.f32 1e-05, %v2343_v2 }
 0x8e5   : > { %5272 = vrsqrt.f32 %v2345_v3  ;;  %vm2362_vm13 = vweird.f32 %v2345_v3 }
 0x8eb   : > { %v5273_v4 = vpop.eup %5272 }
 0x8ec   : > { %v2357_v5 = vmul.f32 %v5273_v4, %v2345_v3  ;;  %vm2363_vm12 = vweird.f32 %v5273_v4  ;;  %v4604_v3 = vor.u32 %v4916_v62, %v4601_v1  ;;  %v4904_v62 = vld [vmem:[#allocation19 + $0x10] sm:$0xff]  ;;  %v4902_v1 = vld [vmem:[#allocation19] sm:$0xff] }
 0x8ed   : > { %v2716_v6 = vpop.f32.mrf.mxu3  ;;  %vm2364_vm14 = vmor %vm2362_vm13, %vm2363_vm12 }
 0x8ee   : > { %v2358_v7 = vmul.f32 %v5273_v4, %v2357_v5  ;;  %v4915_v5 = vld [vmem:[#allocation22 + $0x24] sm:$0xf0] }
 0x8f0   : > { %v2359_v8 = vmul.f32 0.5, %v2358_v7 }
 0x8f2   : > { %v2360_v9 = vsub.f32 1.5, %v2359_v8  ;;  %v4593_v8 = vld [vmem:[#allocation22 + $0x28] sm:$0xf0] }
 0x8f4   : > { %v2361_v10 = vmul.f32 %v5273_v4, %v2360_v9 }
 0x8f5   : > { %v2718_v37 = vpop.f32.mrf.mxu3 }
 0x8f6   : > { %v2365_v41 = vsel %vm2364_vm14, %v5273_v4, %v2361_v10  ;;  %v4591_v4 = vld [vmem:[#allocation22 + $0x20] sm:$0xf]  ;;  %v4583_v10 = vld [vmem:[#allocation22 + $0x10] sm:$0xf]  ;;  %v4913_v37 = vld [vmem:[#allocation22 + $0x14] sm:$0xf0] }
 0x8f7   : > { %v2735_v11 = vpop.f32.mrf.mxu0  ;;  %v2367_v12 = vmul.f32 %v2365_v41, %v6924_v48  ;;  %v4592_v7 = vor.u32 %v4915_v5, %v4591_v4  ;;  %v4912_v41 = vld [vmem:[#allocation22 + $0x14] sm:$0xf] }
 0x8f8   : > { %v2739_v13 = vpack.c.bf16 %v2735_v11, %v2716_v6  ;;  %v4914_v6 = vld [vmem:[#allocation22 + $0x24] sm:$0xf]  ;;  %v4584_v11 = vor.u32 %v4913_v37, %v4583_v10 }
 0x8f9   : > { %v2373_v14 = vmul.f32 %v5232_v53, %v2367_v12  ;;  %v4596_v9 = vor.u32 %v4914_v6, %v4593_v8  ;;  %v4585_v12 = vld [vmem:[#allocation22 + $0x18] sm:$0xf0] }
 0x8fa   : > { %2816 = vmatmul.bf16.vlgmr.msrb.gmra.mxu1 %v2739_v13  ;;  %v4588_v13 = vor.u32 %v4912_v41, %v4585_v12 }
 0x8fb   : > { %v2379_v15 = vadd.f32 %v5233_v56, %v2373_v14  ;;  %v4918_v56 = vld [vmem:[#allocation22 + $0x44] sm:$0xf]  ;;  %v4575_v14 = vld [vmem:[#allocation22] sm:$0xf] }
 0x8fd   : > { %2382 = vadd.xlane.f32.xlu2 %v2379_v15 }
 0x8ff   : > { %v2737_v16 = vpop.f32.mrf.mxu0 }
 0x900   : > { %v4910_v16 = vld [vmem:[#allocation22 + $0x4] sm:$0xf] }
 0x906   : > { %v2381_v17 = vpop.xlane.xlu1 %2380 }
 0x907   : > { %v2384_v18 = vmul.f32 %v2381_v17, %v6867_v28 }
 0x909   : > { %v6936_v19 = vsub.f32 %v2378_v57, %v2384_v18  ;;  %v4609_v57 = vld [vmem:[#allocation22 + $0x48] sm:$0xf0] }
 0x90a   : > { %v4612_v59 = vor.u32 %v4918_v56, %v4609_v57 }
 0x90b   : > { %v2388_v20 = vmul.f32 %v6936_v19, %v6936_v19 }
 0x90d   : > { %2390 = vadd.xlane.f32.xlu2 %v2388_v20  ;;  %v4577_v20 = vld [vmem:[#allocation22 + $0x8] sm:$0xf0] }
 0x970   : > { %v2383_v21 = vpop.xlane.xlu2 %2382 }
 0x971   : > { %v2385_v24 = vmul.f32 %v2383_v21, %v6867_v28 }
 0x973   : > { %v6946_v26 = vsub.f32 %v2379_v15, %v2385_v24  ;;  %v4911_v15 = vld [vmem:[#allocation22 + $0x4] sm:$0xf0] }
 0x974   : > { %v4576_v18 = vor.u32 %v4911_v15, %v4575_v14 }
 0x975   : > { %v2389_v48 = vmul.f32 %v6946_v26, %v6946_v26 }
 0x977   : > { %v2817_v22 = vpop.f32.mrf.mxu1 }
 0x978   : > { %v2818_v23 = vadd.f32 %v5234_v38, %v2817_v22  ;;  %v4580_v22 = vor.u32 %v4910_v16, %v4577_v20 }
 0x97a   : > { %v6943_v25 = vadd.f32 %v2818_v23, %v6893_v34  ;;  %v4632_v34 = vor.u32 %v4925_v31, %v4631_v29 }
 0x97c   : > { %2824 = vadd.xlane.f32.xlu0 %v6943_v25  ;;  %3062 = vmatpush.bf16.msra.mxu3 %v4632_v34 }
 0x97f   : > { %v2819_v27 = vpop.f32.mrf.mxu1 }
 0x980   : > { %v2820_v63 = vadd.f32 %v5234_v38, %v2819_v27  ;;  %3063 = vmatpush.bf16.msra.mxu3 %v4624_v42  ;;  %v2391_v53 = vpop.xlane.xlu2 %2390 }
 0x981   : > { %v2394_v58 = vmul.f32 %v2391_v53, %v6867_v28 }
 0x982   : > { %v6949_v47 = vadd.f32 %v2820_v63, %v6897_v40  ;;  %v4625_v40 = vld [vmem:[#allocation22 + $0x68] sm:$0xf0] }
 0x983   : > { %v4628_v43 = vor.u32 %v4922_v39, %v4625_v40  ;;  %v2396_v2 = vadd.f32 1e-05, %v2394_v58  ;;  %v4909_v58 = vld [vmem:[#allocation19 + $0x38] sm:$0xff] }
 0x984   : > { %2826 = vadd.xlane.f32.xlu1 %v6949_v47  ;;  %2392 = vadd.xlane.f32.xlu0 %v2389_v48 }
 0x985   : > { %3077 = vmatpush.bf16.msrb.mxu0 %v4628_v43  ;;  %3064 = vmatpush.bf16.msra.mxu3 %v4616_v49  ;;  %5274 = vrsqrt.f32 %v2396_v2  ;;  %vm2404_vm2 = vweird.f32 %v2396_v2 }
 0x986   : > { %2945 = vmatpush.bf16.msrb.mxu2 %v4909_v58 }
 0x989   : > { %3078 = vmatpush.bf16.msrb.mxu0 %v4620_v52  ;;  %3065 = vmatpush.bf16.msra.mxu3 %v4608_v51 }
 0x98b   : > { %v5275_v38 = vpop.eup %5274 }
 0x98c   : > { %v2399_v24 = vmul.f32 %v5275_v38, %v2396_v2  ;;  %vm2405_vm15 = vweird.f32 %v5275_v38 }
 0x98d   : > { %3079 = vmatpush.bf16.msrb.mxu0 %v4612_v59  ;;  %3066 = vmatpush.bf16.msra.mxu3 %v4600_v0  ;;  %vm2406_vm3 = vmor %vm2404_vm2, %vm2405_vm15  ;;  %v4908_v59 = vld [vmem:[#allocation19 + $0x30] sm:$0xff] }
 0x98e   : > { %v2400_v63 = vmul.f32 %v5275_v38, %v2399_v24  ;;  %2946 = vmatpush.bf16.msrb.mxu2 %v4908_v59  ;;  %v5238_v24 = vld [vmem:[#allocation17] ss:$0 sm:$0xff] }
 0x991   : > { %3080 = vmatpush.bf16.msrb.mxu0 %v4604_v3  ;;  %3067 = vmatpush.bf16.msra.mxu3 %v4592_v7 }
 0x995   : > { %3081 = vmatpush.bf16.msrb.mxu0 %v4596_v9  ;;  %3068 = vmatpush.bf16.msra.mxu3 %v4584_v11 }
 0x999   : > { %3082 = vmatpush.bf16.msrb.mxu0 %v4588_v13  ;;  %3069 = vmatpush.bf16.msra.mxu3 %v4576_v18  ;;  %v5237_v18 = vld [vmem:[#allocation16] ss:$0 sm:$0xff] }
 0x99d   : > { %3083 = vmatpush.bf16.msrb.mxu0 %v4580_v22 }
 0x9ef   : > { %v2825_v17 = vpop.xlane.xlu0 %2824 }
 0x9f0   : > { %v2828_v21 = vmul.f32 %v2825_v17, %v6867_v28 }
 0x9f2   : > { %v6957_v23 = vsub.f32 %v6943_v25, %v2828_v21  ;;  %v2401_v25 = vmul.f32 0.5, %v2400_v63 }
 0x9f4   : > { %v2832_v27 = vmul.f32 %v6957_v23, %v6957_v23  ;;  %v2402_v36 = vsub.f32 1.5, %v2401_v25 }
 0x9f6   : > { %2834 = vadd.xlane.f32.xlu1 %v2832_v27  ;;  %v2403_v39 = vmul.f32 %v5275_v38, %v2402_v36 }
 0x9f7   : > { %v2827_v48 = vpop.xlane.xlu1 %2826  ;;  %v2393_v29 = vpop.xlane.xlu0 %2392 }
 0x9f8   : > { %v2829_v31 = vmul.f32 %v2827_v48, %v6867_v28  ;;  %v2395_v32 = vmul.f32 %v2393_v29, %v6867_v28  ;;  %v2407_v43 = vsel %vm2406_vm3, %v5275_v38, %v2403_v39  ;;  %v2976_v29 = vld [vmem:[#allocation23] sm:$0x3] }
 0x9f9   : > { %v2418_v45 = vmul.f32 %v2407_v43, %v6936_v19  ;;  %v4907_v19 = vld [vmem:[#allocation19 + $0x28] sm:$0xff] }
 0x9fa   : > { %v6964_v34 = vsub.f32 %v6949_v47, %v2829_v31  ;;  %v2397_v33 = vadd.f32 1e-05, %v2395_v32  ;;  %2947 = vmatpush.bf16.msrb.mxu2 %v4907_v19 }
 0x9fb   : > { %v2424_v53 = vmul.f32 %v5235_v46, %v2418_v45 }
 0x9fc   : > { %5276 = vrsqrt.f32 %v2397_v33  ;;  %v2833_v35 = vmul.f32 %v6964_v34, %v6964_v34  ;;  %vm2414_vm5 = vweird.f32 %v2397_v33 }
 0x9fd   : > { %v2430_v56 = vadd.f32 %v5236_v54, %v2424_v53 }
 0x9fe   : > { %2836 = vadd.xlane.f32.xlu2 %v2833_v35  ;;  %2948 = vmatpush.bf16.msrb.mxu2 %v4906_v60  ;;  %v2978_v35 = vperm.slane %v2976_v29, 0 }
 0xa02   : > { %v5277_v30 = vpop.eup %5276  ;;  %2949 = vmatpush.bf16.msrb.mxu2 %v4905_v61 }
 0xa03   : > { %v2409_v42 = vmul.f32 %v5277_v30, %v2397_v33  ;;  %vm2415_vm4 = vweird.f32 %v5277_v30 }
 0xa04   : > { %vm2416_vm6 = vmor %vm2414_vm5, %vm2415_vm4 }
 0xa05   : > { %v2410_v40 = vmul.f32 %v5277_v30, %v2409_v42 }
 0xa06   : > { %2950 = vmatpush.bf16.msrb.mxu2 %v4904_v62 }
 0xa07   : > { %v2411_v47 = vmul.f32 0.5, %v2410_v40 }
 0xa09   : > { %v2412_v44 = vsub.f32 1.5, %v2411_v47 }
 0xa0b   : > { %v2413_v49 = vmul.f32 %v5277_v30, %v2412_v44 }
 0xa0d   : > { %v2417_v50 = vsel %vm2416_vm6, %v5277_v30, %v2413_v49  ;;  %v5239_v49 = vld [vmem:[#allocation20] ss:$0 sm:$0xff] }
 0xa0e   : > { %v2419_v52 = vmul.f32 %v2417_v50, %v6946_v26  ;;  %v4903_v26 = vld [vmem:[#allocation19 + $0x8] sm:$0xff] }
 0xa0f   : > { %2951 = vmatpush.bf16.msrb.mxu2 %v4903_v26 }
 0xa10   : > { %v2425_v55 = vmul.f32 %v5235_v46, %v2419_v52 }
 0xa12   : > { %v2431_v51 = vadd.f32 %v5236_v54, %v2425_v55 }
 0xa13   : > { %2952 = vmatpush.bf16.msrb.mxu2 %v4902_v1 }
 0xa14   : > { %v2959_v57 = vpack.c.bf16 %v2431_v51, %v2430_v56 }
 0xa16   : > { %3070 = vmatmul.bf16.vlgmr.msra.gmra.mxu3 %v2959_v57  ;;  %3084 = vmatmul.bf16.vlgmr.msrb.gmra.mxu0 %v2959_v57 }
 0xa69   : > { %v2835_v0 = vpop.xlane.xlu1 %2834 }
 0xa6a   : > { %v2838_v2 = vmul.f32 %v2835_v0, %v6867_v28 }
 0xa6c   : > { %v2840_v3 = vadd.f32 1e-05, %v2838_v2 }
 0xa6e   : > { %5278 = vrsqrt.f32 %v2840_v3  ;;  %vm2848_vm8 = vweird.f32 %v2840_v3 }
 0xa71   : > { %v2837_v4 = vpop.xlane.xlu2 %2836 }
 0xa72   : > { %v2839_v5 = vmul.f32 %v2837_v4, %v6867_v28 }
 0xa74   : > { %v5279_v6 = vpop.eup %5278  ;;  %v2841_v7 = vadd.f32 1e-05, %v2839_v5 }
 0xa75   : > { %v2843_v8 = vmul.f32 %v5279_v6, %v2840_v3  ;;  %vm2849_vm7 = vweird.f32 %v5279_v6 }
 0xa76   : > { %5280 = vrsqrt.f32 %v2841_v7  ;;  %vm2850_vm9 = vmor %vm2848_vm8, %vm2849_vm7  ;;  %vm2858_vm11 = vweird.f32 %v2841_v7 }
 0xa77   : > { %v2844_v9 = vmul.f32 %v5279_v6, %v2843_v8  ;;  %v4932_v8 = vld [vmem:[#allocation25 + $0x30] sm:$0xff] }
 0xa79   : > { %v2845_v10 = vmul.f32 0.5, %v2844_v9 }
 0xa7b   : > { %v2846_v37 = vsub.f32 1.5, %v2845_v10  ;;  %v4931_v10 = vld [vmem:[#allocation25 + $0x28] sm:$0xff] }
 0xa7c   : > { %v5281_v41 = vpop.eup %5280 }
 0xa7d   : > { %v2847_v11 = vmul.f32 %v5279_v6, %v2846_v37  ;;  %v2853_v12 = vmul.f32 %v5281_v41, %v2841_v7  ;;  %vm2859_vm10 = vweird.f32 %v5281_v41  ;;  %v4933_v7 = vld [vmem:[#allocation25 + $0x38] sm:$0xff]  ;;  %v4930_v37 = vld [vmem:[#allocation25 + $0x20] sm:$0xff] }
 0xa7e   : > { %vm2860_vm12 = vmor %vm2858_vm11, %vm2859_vm10 }
 0xa7f   : > { %v2854_v13 = vmul.f32 %v5281_v41, %v2853_v12  ;;  %v2851_v14 = vsel %vm2850_vm9, %v5279_v6, %v2847_v11  ;;  %v4929_v12 = vld [vmem:[#allocation25 + $0x18] sm:$0xff] }
 0xa80   : > { %v2862_v17 = vmul.f32 %v2851_v14, %v6957_v23  ;;  %v2979_v23 = vperm.slane %v2976_v29, 1 }
 0xa81   : > { %v2855_v15 = vmul.f32 0.5, %v2854_v13 }
 0xa82   : > { %v2868_v22 = vmul.f32 %v5237_v18, %v2862_v17 }
 0xa83   : > { %v2856_v16 = vsub.f32 1.5, %v2855_v15 }
 0xa84   : > { %v6976_v63 = vadd.f32 %v5238_v24, %v2868_v22 }
 0xa85   : > { %v2857_v20 = vmul.f32 %v5281_v41, %v2856_v16 }
 0xa87   : > { %v2861_v38 = vsel %vm2860_vm12, %v5281_v41, %v2857_v20  ;;  %v4927_v20 = vld [vmem:[#allocation25 + $0x8] sm:$0xff] }
 0xa88   : > { %v2863_v21 = vmul.f32 %v2861_v38, %v6964_v34  ;;  %v4926_v38 = vld [vmem:[#allocation25] sm:$0xff] }
 0xa8a   : > { %v2869_v27 = vmul.f32 %v5237_v18, %v2863_v21  ;;  %v4928_v18 = vld [vmem:[#allocation25 + $0x10] sm:$0xff] }
 0xa8c   : > { %v6978_v48 = vadd.f32 %v5238_v24, %v2869_v27 }
 0xa8e   : > { %v2876_v31 = vpack.c.bf16 %v6978_v48, %v6976_v63 }
 0xa90   : > { %2953 = vmatmul.bf16.vlgmr.msrb.gmra.mxu2 %v2876_v31  ;;  %v5240_v31 = vld [vmem:[#allocation26] ss:$0 sm:$0xff] }
 0xa93   : > { %v3085_v32 = vpop.f32.mrf.mxu0 }
 0xa94   : > { %v3086_v33 = vadd.f32 %v3085_v32, %v2979_v23 }
 0xa96   : > { %v3094_v25 = vpack.c.bf16 %v3086_v33, %v3086_v33 }
 0xa98   : > { %v3150_v36 = vsel %vm1849_vm1, %v3094_v25, 0 }
 0xa99   : > { %v3071_v34 = vpop.f32.mrf.mxu3  ;;  %3159 = vmatpush.bf16.msrb.mxu3 %v3150_v36 }
 0xa9a   : > { %v3072_v30 = vadd.f32 %v3071_v34, %v2978_v35 }
 0xa9b   : > { %v3087_v39 = vpop.f32.mrf.mxu0 }
 0xa9c   : > { %v3092_v42 = vpack.c.bf16 %v3072_v30, %v3072_v30  ;;  %v3088_v40 = vadd.f32 %v3087_v39, %v2979_v23 }
 0xa9e   : > { %v3095_v43 = vpack.c.bf16 %v3088_v40, %v3088_v40  ;;  %3103 = vmatpush.bf16.xpose.msra.mxu1 %v3092_v42 }
 0xaa0   : > { %v3169_v47 = vsel %vm1849_vm1, %v3095_v43, 0 }
 0xaa1   : > { %v3073_v44 = vpop.f32.mrf.mxu3  ;;  %3178 = vmatpush.bf16.msra.mxu0 %v3169_v47 }
 0xaa2   : > { %v3074_v45 = vadd.f32 %v3073_v44, %v2978_v35  ;;  %v4949_v44 = vld [vmem:[#allocation31 + $0x74] sm:$0xf0] }
 0xaa4   : > { %v3093_v46 = vpack.c.bf16 %v3074_v45, %v3074_v45  ;;  %v4948_v45 = vld [vmem:[#allocation31 + $0x74] sm:$0xf] }
 0xaa6   : > { %3116 = vmatpush.bf16.xpose.msra.mxu2 %v3093_v46  ;;  %3253 = vmatpush.bf16.msrb.mxu1 %v4933_v7 }
 0xaaa   : > { %3254 = vmatpush.bf16.msrb.mxu1 %v4932_v8  ;;  %v4699_v8 = vld [vmem:[#allocation31 + $0x38] sm:$0xf0] }
 0xaae   : > { %3255 = vmatpush.bf16.msrb.mxu1 %v4931_v10  ;;  %v4689_v10 = vld [vmem:[#allocation31 + $0x20] sm:$0xf] }
 0xab2   : > { %3256 = vmatpush.bf16.msrb.mxu1 %v4930_v37  ;;  %v4939_v37 = vld [vmem:[#allocation31 + $0x24] sm:$0xf0] }
 0xab6   : > { %3257 = vmatpush.bf16.msrb.mxu1 %v4929_v12  ;;  %v4691_v12 = vld [vmem:[#allocation31 + $0x28] sm:$0xf0] }
 0xaba   : > { %3258 = vmatpush.bf16.msrb.mxu1 %v4928_v18  ;;  %v4683_v18 = vld [vmem:[#allocation31 + $0x18] sm:$0xf0] }
 0xabe   : > { %3259 = vmatpush.bf16.msrb.mxu1 %v4927_v20 }
 0xac2   : > { %3260 = vmatpush.bf16.msrb.mxu1 %v4926_v38  ;;  %v4673_v38 = vld [vmem:[#allocation31] sm:$0xf] }
 0xb13   : > { %v2954_v50 = vpop.f32.mrf.mxu2 }
 0xb14   : > { %v2955_v52 = vadd.f32 %v5239_v49, %v2954_v50 }
 0xb16   : > { %v3090_v53 = vpack.c.bf16 %v2955_v52, %v2955_v52  ;;  %v4721_v52 = vld [vmem:[#allocation31 + $0x60] sm:$0xf] }
 0xb18   : > { %3104 = vmatmul.bf16.vlgmr.msra.gmra.mxu1 %v3090_v53  ;;  %v4947_v53 = vld [vmem:[#allocation31 + $0x64] sm:$0xf0] }
 0xb1b   : > { %v2956_v54 = vpop.f32.mrf.mxu2 }
 0xb1c   : > { %v2957_v55 = vadd.f32 %v5239_v49, %v2956_v54  ;;  %v4731_v49 = vld [vmem:[#allocation31 + $0x78] sm:$0xf0]  ;;  %v4946_v54 = vld [vmem:[#allocation31 + $0x64] sm:$0xf] }
 0xb1d   : > { %v4734_v50 = vor.u32 %v4948_v45, %v4731_v49  ;;  %v4962_v49 = vld [vmem:[#allocation34 + $0x60] sm:$0xff] }
 0xb1e   : > { %v3091_v56 = vpack.c.bf16 %v2957_v55, %v2957_v55  ;;  %v4722_v55 = vor.u32 %v4947_v53, %v4721_v52 }
 0xb1f   : > { %3438 = vmatpush.bf16.msra.mxu3 %v4734_v50 }
 0xb20   : > { %3117 = vmatmul.bf16.vlgmr.msra.gmra.mxu2 %v3091_v56  ;;  %v4723_v56 = vld [vmem:[#allocation31 + $0x68] sm:$0xf0] }
 0xb95   : > { %v3105_v51 = vpop.f32.mrf.mxu1 }
 0xb96   : > { %v3122_v57 = vsel %vm1821_vm0, %v3105_v51, -inf }
 0xb97   : > { %3123 = vmax.xlane.f32.xlu0 %v3122_v57  ;;  %v4713_v57 = vld [vmem:[#allocation31 + $0x50] sm:$0xf] }
 0xb9d   : > { %v3107_v58 = vpop.f32.mrf.mxu1 }
 0xb9e   : > { %v4945_v58 = vld [vmem:[#allocation31 + $0x54] sm:$0xf0] }
 0xba3   : > { %v3118_v59 = vpop.f32.mrf.mxu2 }
 0xba4   : > { %v3125_v19 = vsel %vm1821_vm0, %v3118_v59, -inf }
 0xba5   : > { %3126 = vmax.xlane.f32.xlu1 %v3125_v19  ;;  %v4714_v19 = vor.u32 %v4945_v58, %v4713_v57 }
 0xbab   : > { %v3120_v60 = vpop.f32.mrf.mxu2 }
 0xbac   : > { %v4715_v60 = vld [vmem:[#allocation31 + $0x58] sm:$0xf0] }
 0xc0a   : > { %v3124_v61 = vpop.xlane.xlu0 %3123 }
 0xc0b   : > { %v3128_v62 = vsub.f32 %v3105_v51, %v3124_v61  ;;  %v4726_v51 = vor.u32 %v4946_v54, %v4723_v56 }
 0xc0d   : > { %v3130_v26 = vmul.f32 1.442695, %v3128_v62  ;;  %3439 = vmatpush.bf16.msra.mxu3 %v4726_v51  ;;  %v4705_v62 = vld [vmem:[#allocation31 + $0x40] sm:$0xf] }
 0xc0f   : > { %5282 = vpow2.f32 %v3130_v26  ;;  %v4943_v26 = vld [vmem:[#allocation31 + $0x44] sm:$0xf0] }
 0xc15   : > { %v5283_v0 = vpop.eup %5282 }
 0xc16   : > { %v3134_v1 = vsel %vm1821_vm0, %v5283_v0, 0.0 }
 0xc17   : > { %3135 = vadd.xlane.f32.xlu2 %v3134_v1  ;;  %v4706_v1 = vor.u32 %v4943_v26, %v4705_v62  ;;  %v5242_v26 = vld [vmem:[#allocation29] ss:$0 sm:$0xff] }
 0xc18   : > { %v3127_v2 = vpop.xlane.xlu1 %3126 }
 0xc19   : > { %v3129_v3 = vsub.f32 %v3118_v59, %v3127_v2  ;;  %v4944_v59 = vld [vmem:[#allocation31 + $0x54] sm:$0xf]  ;;  %v4707_v2 = vld [vmem:[#allocation31 + $0x48] sm:$0xf0] }
 0xc1a   : > { %v4718_v61 = vor.u32 %v4944_v59, %v4715_v60  ;;  %v5241_v59 = vld [vmem:[#allocation28] ss:$0 sm:$0xff] }
 0xc1b   : > { %v3132_v4 = vmul.f32 1.442695, %v3129_v3 }
 0xc1c   : > { %3440 = vmatpush.bf16.msra.mxu3 %v4718_v61 }
 0xc1d   : > { %5284 = vpow2.f32 %v3132_v4  ;;  %v4697_v4 = vld [vmem:[#allocation31 + $0x30] sm:$0xf] }
 0xc23   : > { %v5285_v5 = vpop.eup %5284 }
 0xc24   : > { %v3137_v6 = vsel %vm1821_vm0, %v5285_v5, 0.0 }
 0xc25   : > { %3138 = vadd.xlane.f32.xlu0 %v3137_v6  ;;  %v4940_v6 = vld [vmem:[#allocation31 + $0x34] sm:$0xf] }
 0xc8a   : > { %v3136_v9 = vpop.xlane.xlu2 %3135 }
 0xc8b   : > { %5286 = vrcp.f32 %v3136_v9  ;;  %v4702_v9 = vor.u32 %v4940_v6, %v4699_v8  ;;  %v4960_v6 = vld [vmem:[#allocation34 + $0x50] sm:$0xff]  ;;  %v4959_v8 = vld [vmem:[#allocation34 + $0x48] sm:$0xff] }
 0xc91   : > { %v5287_v41 = vpop.eup %5286 }
 0xc92   : > { %v3142_v11 = vmul.f32 %v5287_v41, %v5283_v0  ;;  %v4942_v0 = vld [vmem:[#allocation31 + $0x44] sm:$0xf] }
 0xc93   : > { %v4710_v3 = vor.u32 %v4942_v0, %v4707_v2  ;;  %v4938_v41 = vld [vmem:[#allocation31 + $0x24] sm:$0xf] }
 0xc94   : > { %v3144_v13 = vpack.c.bf16 %v3142_v11, %v3142_v11  ;;  %v4690_v11 = vor.u32 %v4939_v37, %v4689_v10  ;;  %v3338_v10 = vld [vmem:[#allocation32] sm:$0x3] }
 0xc95   : > { %3441 = vmatpush.bf16.msra.mxu3 %v4710_v3 }
 0xc96   : > { %4637 = vmatmul.msk.bf16.vlgmr.msrb.gmra.mxu3 %vm1821_vm0, %v3144_v13  ;;  %v4694_v13 = vor.u32 %v4938_v41, %v4691_v12  ;;  %v3341_v12 = vperm.slane %v3338_v10, 1 }
 0xc98   : > { %v3139_v14 = vpop.xlane.xlu0 %3138 }
 0xc99   : > { %5288 = vrcp.f32 %v3139_v14  ;;  %3442 = vmatpush.bf16.msra.mxu3 %v4702_v9  ;;  %v4681_v14 = vld [vmem:[#allocation31 + $0x10] sm:$0xf]  ;;  %v4958_v9 = vld [vmem:[#allocation34 + $0x40] sm:$0xff] }
 0xc9d   : > { %3443 = vmatpush.bf16.msra.mxu3 %v4694_v13 }
 0xc9f   : > { %v5289_v15 = vpop.eup %5288 }
 0xca0   : > { %v3143_v16 = vmul.f32 %v5289_v15, %v5285_v5  ;;  %v4941_v5 = vld [vmem:[#allocation31 + $0x34] sm:$0xf0] }
 0xca1   : > { %v4698_v7 = vor.u32 %v4941_v5, %v4697_v4  ;;  %v4937_v15 = vld [vmem:[#allocation31 + $0x14] sm:$0xf0] }
 0xca2   : > { %v3145_v17 = vpack.c.bf16 %v3143_v16, %v3143_v16  ;;  %v4936_v16 = vld [vmem:[#allocation31 + $0x14] sm:$0xf]  ;;  %v4953_v4 = vld [vmem:[#allocation34 + $0x18] sm:$0xff] }
 0xca3   : > { %v4686_v20 = vor.u32 %v4936_v16, %v4683_v18  ;;  %v4961_v5 = vld [vmem:[#allocation34 + $0x58] sm:$0xff] }
 0xca4   : > { %4638 = vmatmul.msk.bf16.vlgmr.msra.gmra.mxu0 %vm1821_vm0, %v3145_v17  ;;  %v4682_v17 = vor.u32 %v4937_v15, %v4681_v14 }
 0xca5   : > { %3444 = vmatpush.bf16.msra.mxu3 %v4686_v20 }
 0xd19   : > { %v3161_v21 = vpop.f32.mrf.mxu3 }
 0xd21   : > { %v3163_v22 = vpop.f32.mrf.mxu3  ;;  %v3180_v24 = vpop.f32.mrf.mxu0 }
 0xd22   : > { %v3184_v27 = vpack.c.bf16 %v3180_v24, %v3161_v21  ;;  %v4935_v21 = vld [vmem:[#allocation31 + $0x4] sm:$0xf0]  ;;  %v4934_v22 = vld [vmem:[#allocation31 + $0x4] sm:$0xf] }
 0xd24   : > { %3261 = vmatmul.bf16.vlgmr.msrb.gmra.mxu1 %v3184_v27  ;;  %v4674_v27 = vor.u32 %v4935_v21, %v4673_v38 }
 0xd29   : > { %v3182_v29 = vpop.f32.mrf.mxu0 }
 0xd2a   : > { %v4675_v29 = vld [vmem:[#allocation31 + $0x8] sm:$0xf0] }
 0xda1   : > { %v3262_v23 = vpop.f32.mrf.mxu1 }
 0xda2   : > { %v3263_v32 = vadd.f32 %v5240_v31, %v3262_v23  ;;  %v4678_v23 = vor.u32 %v4934_v22, %v4675_v29  ;;  %v5243_v29 = vld [vmem:[#allocation35] ss:$0 sm:$0xff] }
 0xda4   : > { %v3267_v33 = vadd.f32 %v3263_v32, %v6976_v63  ;;  %3445 = vmatpush.bf16.msra.mxu3 %v4678_v23 }
 0xda6   : > { %3269 = vadd.xlane.f32.xlu1 %v3267_v33 }
 0xda9   : > { %v3264_v25 = vpop.f32.mrf.mxu1 }
 0xdaa   : > { %v3265_v35 = vadd.f32 %v5240_v31, %v3264_v25  ;;  %v4965_v25 = vld [vmem:[#allocation34 + $0x78] sm:$0xff] }
 0xdab   : > { %3604 = vmatpush.bf16.msra.mxu1 %v4965_v25 }
 0xdac   : > { %v3268_v36 = vadd.f32 %v3265_v35, %v6978_v48  ;;  %v4729_v48 = vld [vmem:[#allocation31 + $0x70] sm:$0xf] }
 0xdad   : > { %v4730_v46 = vor.u32 %v4949_v44, %v4729_v48  ;;  %v4963_v48 = vld [vmem:[#allocation34 + $0x68] sm:$0xff] }
 0xdae   : > { %3271 = vadd.xlane.f32.xlu2 %v3268_v36 }
 0xdaf   : > { %3424 = vmatpush.bf16.msrb.mxu2 %v4730_v46  ;;  %v4954_v46 = vld [vmem:[#allocation34 + $0x20] sm:$0xff] }
 0xdb3   : > { %3425 = vmatpush.bf16.msrb.mxu2 %v4722_v55 }
 0xdb7   : > { %3426 = vmatpush.bf16.msrb.mxu2 %v4714_v19 }
 0xdbb   : > { %3427 = vmatpush.bf16.msrb.mxu2 %v4706_v1 }
 0xdbf   : > { %3428 = vmatpush.bf16.msrb.mxu2 %v4698_v7  ;;  %v4951_v7 = vld [vmem:[#allocation34 + $0x8] sm:$0xff] }
 0xdc3   : > { %3429 = vmatpush.bf16.msrb.mxu2 %v4690_v11  ;;  %v3340_v11 = vperm.slane %v3338_v10, 0 }
 0xdc7   : > { %3430 = vmatpush.bf16.msrb.mxu2 %v4682_v17 }
 0xdcb   : > { %3431 = vmatpush.bf16.msrb.mxu2 %v4674_v27 }
 0xe19   : > { %v3270_v34 = vpop.xlane.xlu1 %3269 }
 0xe1a   : > { %v3273_v30 = vmul.f32 %v3270_v34, %v6867_v28  ;;  %v4956_v34 = vld [vmem:[#allocation34 + $0x30] sm:$0xff] }
 0xe1c   : > { %v6993_v39 = vsub.f32 %v3267_v33, %v3273_v30  ;;  %v4957_v33 = vld [vmem:[#allocation34 + $0x38] sm:$0xff]  ;;  %v4964_v30 = vld [vmem:[#allocation34 + $0x70] sm:$0xff] }
 0xe1d   : > { %3590 = vmatpush.bf16.msrb.mxu0 %v4957_v33  ;;  %3605 = vmatpush.bf16.msra.mxu1 %v4964_v30 }
 0xe1e   : > { %v3277_v42 = vmul.f32 %v6993_v39, %v6993_v39 }
 0xe20   : > { %3279 = vadd.xlane.f32.xlu0 %v3277_v42 }
 0xe21   : > { %v3272_v40 = vpop.xlane.xlu2 %3271  ;;  %3591 = vmatpush.bf16.msrb.mxu0 %v4956_v34  ;;  %3606 = vmatpush.bf16.msra.mxu1 %v4963_v48 }
 0xe22   : > { %v3274_v43 = vmul.f32 %v3272_v40, %v6867_v28 }
 0xe24   : > { %v6998_v47 = vsub.f32 %v3268_v36, %v3274_v43 }
 0xe25   : > { %3607 = vmatpush.bf16.msra.mxu1 %v4962_v49 }
 0xe26   : > { %v3278_v63 = vmul.f32 %v6998_v47, %v6998_v47 }
 0xe28   : > { %3281 = vadd.xlane.f32.xlu1 %v3278_v63  ;;  %v4955_v63 = vld [vmem:[#allocation34 + $0x28] sm:$0xff] }
 0xe29   : > { %3592 = vmatpush.bf16.msrb.mxu0 %v4955_v63  ;;  %3608 = vmatpush.bf16.msra.mxu1 %v4961_v5 }
 0xe2d   : > { %3593 = vmatpush.bf16.msrb.mxu0 %v4954_v46  ;;  %3609 = vmatpush.bf16.msra.mxu1 %v4960_v6 }
 0xe31   : > { %3594 = vmatpush.bf16.msrb.mxu0 %v4953_v4  ;;  %3610 = vmatpush.bf16.msra.mxu1 %v4959_v8 }
 0xe35   : > { %3611 = vmatpush.bf16.msra.mxu1 %v4958_v9 }
 0xe93   : > { %v3280_v24 = vpop.xlane.xlu0 %3279 }
 0xe94   : > { %v3283_v31 = vmul.f32 %v3280_v24, %v6867_v28 }
 0xe96   : > { %v3285_v32 = vadd.f32 1e-05, %v3283_v31 }
 0xe98   : > { %5290 = vrsqrt.f32 %v3285_v32  ;;  %vm3293_vm1 = vweird.f32 %v3285_v32 }
 0xe9b   : > { %v3282_v35 = vpop.xlane.xlu1 %3281 }
 0xe9c   : > { %v3284_v36 = vmul.f32 %v3282_v35, %v6867_v28 }
 0xe9e   : > { %v5291_v42 = vpop.eup %5290  ;;  %v3286_v40 = vadd.f32 1e-05, %v3284_v36 }
 0xe9f   : > { %v3288_v43 = vmul.f32 %v5291_v42, %v3285_v32  ;;  %vm3294_vm0 = vweird.f32 %v5291_v42 }
 0xea0   : > { %5292 = vrsqrt.f32 %v3286_v40  ;;  %vm3295_vm13 = vmor %vm3293_vm1, %vm3294_vm0  ;;  %vm3303_vm15 = vweird.f32 %v3286_v40 }
 0xea1   : > { %v3289_v44 = vmul.f32 %v5291_v42, %v3288_v43 }
 0xea3   : > { %v3290_v45 = vmul.f32 0.5, %v3289_v44 }
 0xea5   : > { %v3291_v50 = vsub.f32 1.5, %v3290_v45 }
 0xea6   : > { %v5293_v52 = vpop.eup %5292 }
 0xea7   : > { %v3292_v53 = vmul.f32 %v5291_v42, %v3291_v50  ;;  %v3298_v54 = vmul.f32 %v5293_v52, %v3286_v40  ;;  %vm3304_vm14 = vweird.f32 %v5293_v52 }
 0xea8   : > { %vm3305_vm2 = vmor %vm3303_vm15, %vm3304_vm14 }
 0xea9   : > { %v3299_v55 = vmul.f32 %v5293_v52, %v3298_v54  ;;  %v3296_v56 = vsel %vm3295_vm13, %v5291_v42, %v3292_v53 }
 0xeaa   : > { %v3307_v58 = vmul.f32 %v3296_v56, %v6993_v39  ;;  %v4952_v39 = vld [vmem:[#allocation34 + $0x10] sm:$0xff] }
 0xeab   : > { %v3300_v51 = vmul.f32 0.5, %v3299_v55  ;;  %3595 = vmatpush.bf16.msrb.mxu0 %v4952_v39 }
 0xeac   : > { %v3313_v62 = vmul.f32 %v5241_v59, %v3307_v58 }
 0xead   : > { %v3301_v57 = vsub.f32 1.5, %v3300_v51 }
 0xeae   : > { %v3319_v1 = vadd.f32 %v5242_v26, %v3313_v62 }
 0xeaf   : > { %v3302_v19 = vmul.f32 %v5293_v52, %v3301_v57  ;;  %3596 = vmatpush.bf16.msrb.mxu0 %v4951_v7 }
 0xeb1   : > { %v3306_v60 = vsel %vm3305_vm2, %v5293_v52, %v3302_v19 }
 0xeb2   : > { %v3308_v61 = vmul.f32 %v3306_v60, %v6998_v47  ;;  %v4950_v47 = vld [vmem:[#allocation34] sm:$0xff] }
 0xeb3   : > { %3597 = vmatpush.bf16.msrb.mxu0 %v4950_v47 }
 0xeb4   : > { %v3314_v0 = vmul.f32 %v5241_v59, %v3308_v61 }
 0xeb6   : > { %v3320_v2 = vadd.f32 %v5242_v26, %v3314_v0  ;;  %v5244_v26 = vld [vmem:[%s7172_s13] ss:$0 sm:$0xff] }
 0xeb8   : > { %v3321_v3 = vpack.c.bf16 %v3320_v2, %v3319_v1 }
 0xeba   : > { %3432 = vmatmul.bf16.vlgmr.msrb.gmra.mxu2 %v3321_v3  ;;  %3446 = vmatmul.bf16.vlgmr.msra.gmra.mxu3 %v3321_v3  ;;  %v5245_v3 = vld [vmem:[#allocation37] ss:$0 sm:$0xff] }
 0xf3d   : > { %v3433_v37 = vpop.f32.mrf.mxu2  ;;  %v3447_v41 = vpop.f32.mrf.mxu3 }
 0xf3e   : > { %v3434_v13 = vadd.f32 %v3433_v37, %v3340_v11  ;;  %v3448_v14 = vadd.f32 %v3447_v41, %v3341_v12 }
 0xf40   : > { %v3452_v20 = vmax.f32 %v3434_v13, 0.0  ;;  %v3453_v38 = vmax.f32 %v3448_v14, 0.0 }
 0xf45   : > { %v3435_v15 = vpop.f32.mrf.mxu2  ;;  %v3449_v16 = vpop.f32.mrf.mxu3 }
 0xf46   : > { %v3436_v17 = vadd.f32 %v3435_v15, %v3340_v11  ;;  %v3450_v18 = vadd.f32 %v3449_v16, %v3341_v12 }
 0xf48   : > { %v3454_v21 = vmax.f32 %v3436_v17, 0.0  ;;  %v3455_v22 = vmax.f32 %v3450_v18, 0.0 }
 0xf4a   : > { %v3456_v24 = vpack.c.bf16 %v3454_v21, %v3452_v20  ;;  %v3457_v27 = vpack.c.bf16 %v3455_v22, %v3453_v38 }
 0xf4c   : > { %3598 = vmatmul.bf16.vlgmr.msrb.gmra.mxu0 %v3456_v24  ;;  %3612 = vmatmul.bf16.vlgmr.msra.gmra.mxu1 %v3457_v27 }
 0xfc9   : > { %v3599_v31 = vpop.f32.mrf.mxu0  ;;  %v3613_v23 = vpop.f32.mrf.mxu1 }
 0xfca   : > { %v3600_v32 = vadd.f32 %v5243_v29, %v3599_v31 }
 0xfcc   : > { %v3614_v33 = vadd.f32 %v3613_v23, %v3600_v32 }
 0xfce   : > { %v3618_v25 = vadd.f32 %v3614_v33, %v3319_v1 }
 0xfd0   : > { %3620 = vadd.xlane.f32.xlu2 %v3618_v25 }
 0xfd1   : > { %v3601_v35 = vpop.f32.mrf.mxu0  ;;  %v3615_v34 = vpop.f32.mrf.mxu1 }
 0xfd2   : > { %v3602_v36 = vadd.f32 %v5243_v29, %v3601_v35  ;;  %v5246_v35 = vld [vmem:[#allocation38] ss:$0 sm:$0xff] }
 0xfd4   : > { %v3616_v30 = vadd.f32 %v3615_v34, %v3602_v36 }
 0xfd6   : > { %v3619_v42 = vadd.f32 %v3616_v30, %v3320_v2 }
 0xfd8   : > { %3622 = vadd.xlane.f32.xlu0 %v3619_v42 }
0x1043   : > { %v3621_v40 = vpop.xlane.xlu2 %3620 }
0x1044   : > { %v3624_v43 = vmul.f32 %v3621_v40, %v6867_v28 }
0x1046   : > { %v3626_v63 = vsub.f32 %v3618_v25, %v3624_v43 }
0x1048   : > { %v3628_v48 = vmul.f32 %v3626_v63, %v3626_v63 }
0x104a   : > { %3630 = vadd.xlane.f32.xlu1 %v3628_v48 }
0x104b   : > { %v3623_v44 = vpop.xlane.xlu0 %3622 }
0x104c   : > { %v3625_v45 = vmul.f32 %v3623_v44, %v6867_v28 }
0x104e   : > { %v3627_v46 = vsub.f32 %v3619_v42, %v3625_v45 }
0x1050   : > { %v3629_v49 = vmul.f32 %v3627_v46, %v3627_v46 }
0x1052   : > { %3632 = vadd.xlane.f32.xlu2 %v3629_v49 }
0x10bd   : > { %v3631_v50 = vpop.xlane.xlu1 %3630 }
0x10be   : > { %v3634_v52 = vmul.f32 %v3631_v50, %v6867_v28 }
0x10c0   : > { %v3636_v53 = vadd.f32 1e-05, %v3634_v52 }
0x10c2   : > { %5294 = vrsqrt.f32 %v3636_v53  ;;  %vm3644_vm4 = vweird.f32 %v3636_v53 }
0x10c5   : > { %v3633_v54 = vpop.xlane.xlu2 %3632 }
0x10c6   : > { %v3635_v55 = vmul.f32 %v3633_v54, %v6867_v28 }
0x10c8   : > { %v5295_v56 = vpop.eup %5294  ;;  %v3637_v51 = vadd.f32 1e-05, %v3635_v55 }
0x10c9   : > { %v3639_v57 = vmul.f32 %v5295_v56, %v3636_v53  ;;  %vm3645_vm3 = vweird.f32 %v5295_v56 }
0x10ca   : > { %5296 = vrsqrt.f32 %v3637_v51  ;;  %vm3646_vm5 = vmor %vm3644_vm4, %vm3645_vm3  ;;  %vm3654_vm7 = vweird.f32 %v3637_v51 }
0x10cb   : > { %v3640_v58 = vmul.f32 %v5295_v56, %v3639_v57 }
0x10cd   : > { %v3641_v59 = vmul.f32 0.5, %v3640_v58 }
0x10cf   : > { %v3642_v19 = vsub.f32 1.5, %v3641_v59 }
0x10d0   : > { %v5297_v60 = vpop.eup %5296 }
0x10d1   : > { %v3643_v61 = vmul.f32 %v5295_v56, %v3642_v19  ;;  %v3649_v62 = vmul.f32 %v5297_v60, %v3637_v51  ;;  %vm3655_vm6 = vweird.f32 %v5297_v60 }
0x10d2   : > { %vm3656_vm8 = vmor %vm3654_vm7, %vm3655_vm6 }
0x10d3   : > { %v3650_v0 = vmul.f32 %v5297_v60, %v3649_v62  ;;  %v3647_v1 = vsel %vm3646_vm5, %v5295_v56, %v3643_v61 }
0x10d4   : > { %v3658_v2 = vmul.f32 %v3647_v1, %v3626_v63 }
0x10d5   : > { %v3651_v4 = vmul.f32 0.5, %v3650_v0 }
0x10d6   : > { %v3664_v5 = vmul.f32 %v5244_v26, %v3658_v2 }
0x10d7   : > { %v3652_v39 = vsub.f32 1.5, %v3651_v4 }
0x10d8   : > { %v3670_v6 = vadd.f32 %v5245_v3, %v3664_v5 }
0x10d9   : > { %v3653_v7 = vmul.f32 %v5297_v60, %v3652_v39 }
0x10da   : > { %3672 = vadd.xlane.f32.xlu0 %v3670_v6 }
0x10db   : > { %v3657_v8 = vsel %vm3656_vm8, %v5297_v60, %v3653_v7 }
0x10dc   : > { %v3659_v47 = vmul.f32 %v3657_v8, %v3627_v46 }
0x10de   : > { %v3665_v9 = vmul.f32 %v5244_v26, %v3659_v47 }
0x10e0   : > { %v3671_v10 = vadd.f32 %v5245_v3, %v3665_v9 }
0x10e2   : > { %3674 = vadd.xlane.f32.xlu1 %v3671_v10 }
0x114d   : > { %v3673_v37 = vpop.xlane.xlu0 %3672 }
0x114e   : > { %v3676_v41 = vmul.f32 %v3673_v37, %v6867_v28 }
0x1150   : > { %v3678_v11 = vsub.f32 %v3670_v6, %v3676_v41 }
0x1152   : > { %v3680_v12 = vmul.f32 %v3678_v11, %v3678_v11 }
0x1154   : > { %3682 = vadd.xlane.f32.xlu2 %v3680_v12 }
0x1155   : > { %v3675_v13 = vpop.xlane.xlu1 %3674 }
0x1156   : > { %v3677_v14 = vmul.f32 %v3675_v13, %v6867_v28 }
0x1158   : > { %v3679_v15 = vsub.f32 %v3671_v10, %v3677_v14 }
0x115a   : > { %v3681_v16 = vmul.f32 %v3679_v15, %v3679_v15 }
0x115c   : > { %3684 = vadd.xlane.f32.xlu0 %v3681_v16 }
0x11c7   : > { %v3683_v17 = vpop.xlane.xlu2 %3682 }
0x11c8   : > { %v3686_v18 = vmul.f32 %v3683_v17, %v6867_v28 }
0x11ca   : > { %v3688_v20 = vadd.f32 1e-05, %v3686_v18 }
0x11cc   : > { %5298 = vrsqrt.f32 %v3688_v20  ;;  %vm3696_vm10 = vweird.f32 %v3688_v20 }
0x11cf   : > { %v3685_v38 = vpop.xlane.xlu0 %3684 }
0x11d0   : > { %v3687_v21 = vmul.f32 %v3685_v38, %v6867_v28  ;;  %v5247_v28 = vld [vmem:[#allocation40] ss:$0 sm:$0xff] }
0x11d2   : > { %v5299_v22 = vpop.eup %5298  ;;  %v3689_v24 = vadd.f32 1e-05, %v3687_v21 }
0x11d3   : > { %v3691_v27 = vmul.f32 %v5299_v22, %v3688_v20  ;;  %vm3697_vm9 = vweird.f32 %v5299_v22 }
0x11d4   : > { %5300 = vrsqrt.f32 %v3689_v24  ;;  %vm3698_vm11 = vmor %vm3696_vm10, %vm3697_vm9  ;;  %vm3706_vm0 = vweird.f32 %v3689_v24 }
0x11d5   : > { %v3692_v29 = vmul.f32 %v5299_v22, %v3691_v27 }
0x11d7   : > { %v3693_v31 = vmul.f32 0.5, %v3692_v29 }
0x11d9   : > { %v3694_v23 = vsub.f32 1.5, %v3693_v31 }
0x11da   : > { %v5301_v32 = vpop.eup %5300 }
0x11db   : > { %v3695_v33 = vmul.f32 %v5299_v22, %v3694_v23  ;;  %v3701_v25 = vmul.f32 %v5301_v32, %v3689_v24  ;;  %vm3707_vm12 = vweird.f32 %v5301_v32 }
0x11dc   : > { %vm3708_vm1 = vmor %vm3706_vm0, %vm3707_vm12 }
0x11dd   : > { %v3699_v36 = vsel %vm3698_vm11, %v5299_v22, %v3695_v33  ;;  %v3702_v34 = vmul.f32 %v5301_v32, %v3701_v25 }
0x11de   : > { %v3710_v30 = vmul.f32 %v3699_v36, %v3678_v11 }
0x11df   : > { %v3703_v42 = vmul.f32 0.5, %v3702_v34 }
0x11e0   : > { %v3716_v40 = vmul.f32 %v5246_v35, %v3710_v30 }
0x11e1   : > { %v3704_v43 = vsub.f32 1.5, %v3703_v42 }
0x11e2   : > { %v3722_v63 = vadd.f32 %v5247_v28, %v3716_v40 }
0x11e3   : > { %v3705_v48 = vmul.f32 %v5301_v32, %v3704_v43 }
0x11e4   : > { %3724 = vst [vmem:[%s1571_s26] sm:$0xff] %v3722_v63 }
0x11e5   : > { %v3709_v44 = vsel %vm3708_vm1, %v5301_v32, %v3705_v48 }
0x11e6   : > { %v3711_v45 = vmul.f32 %v3709_v44, %v3679_v15 }
0x11e8   : > { %v3717_v46 = vmul.f32 %v5246_v35, %v3711_v45 }
0x11ea   : > { %v3723_v49 = vadd.f32 %v5247_v28, %v3717_v46 }
0x11ec   : > { %3725 = vst [vmem:[%s1571_s26 + $0x8] sm:$0xff] %v3723_v49 }
0x11ed   : > { %6033 = shalt.err (!%p6030_p7)
}
0x11ee   : > { %s6196_s28 = smov 128   ;;  %s6197_s15 = smov 8  }
0x11ef   : > { %5063 = dma.vmem_to_hbm [thread:$0]  (%p6450_p11), %s3740_s12, 256, %s3742_s7, %s3727_s22, %s6196_s28, %s6196_s28, %s6197_s15  }
0x11f0 PF: > { %s7175_s3 = sld [smem:[#allocation87_spill]]  ;;  %p7177_p9 = scmp.ge.s32.totalorder %s6124_s18, 2 }
0x11f2   : > { %p5073_p10 = pnand %p7177_p9, %p6454_p12 }
0x11f4   : > { %p5074_p0 = pneg %p5073_p10 }
0x11f6   : > { %s3756_s10 = sand.u32 1, %s7175_s3  }
0x11f7   : > { %s3757_s5 = scalar_lea.sflag [#allocation4], %s3756_s10 }
0x11f8   : > { %6107 = dma.done.wait (%p5074_p0), %s3757_s5, 256  }
0x11f9   : > { %6109 = vsyncadd (%p5074_p0), %s3757_s5, 4294967040  ;;  %s7178_s18 = sld [smem:[#allocation89_spill]]  ;;  %s7181_s0 = smov %s6120_s16 }
0x11fa   : > { %s7179_s15 = sld [smem:[#allocation88_spill]] }
0x11fb   : > { %s7180_s23 = sld [smem:[#allocation90_spill]] }
0x11ff   : > { %p104_p5 = scmp.ge.s32.totalorder %s7178_s18, 4  }
0x1201   : > { %s7182_s16 = smov %s7180_s23  ;;  %106 = sbr.rel (!%p104_p5) target bundleno = 93 (0x5d), region = 360 }
0x1206   :  { %3763 = vsyncpa [#allocation3], 1 }
0x1207   :  { %3765 = vsyncpa [#allocation3 + $0x1], 1 }
0x1208   :  { %3766 = vsyncpa [#allocation6], 1 }
0x1209   :  { %3768 = vsyncpa [#allocation6 + $0x1], 1 }
0x120a   :  { %3769 = vsyncpa [#allocation9], 1 }
0x120b   :  { %3770 = vsyncpa [#allocation12], 1 }
0x120c   :  { %3771 = vsyncpa [#allocation15], 1 }
0x120d   :  { %3772 = vsyncpa [#allocation18], 1 }
0x120e   :  { %3773 = vsyncpa [#allocation21], 1 }
0x120f   :  { %3774 = vsyncpa [#allocation24], 1 }
0x1210   :  { %3775 = vsyncpa [#allocation27], 1 }
0x1211   :  { %3776 = vsyncpa [#allocation30], 1 }
0x1212   :  { %3777 = vsyncpa [#allocation33], 1 }
0x1213   :  { %3778 = vsyncpa [#allocation36], 1 }
0x1214   :  { %3779 = vsyncpa [#allocation39], 1 }
0x1215   :  { %3780 = vsyncpa [#allocation4], 1 }
0x1216   :  { %3782 = vsyncpa [#allocation4 + $0x1], 1 }

</bundles_post_ra>
